<compile_context>
chip_gen: v7x
topology: tpu7x:2x2x1
jax: 0.10.0
libtpu: 0.0.40
codegen_flags: <defaults>
</compile_context>

<pallas_src>
import functools

import jax
import jax.numpy as jnp
from jax import lax
from jax.experimental import pallas as pl
from jax.experimental.pallas import tpu as pltpu


def _round_up(x, m):
    return (x + m - 1) // m * m


def _chip_config():
    """(vmem_limit_bytes, default_batch_tile) chosen per TPU generation."""
    try:
        kind = jax.devices()[0].device_kind.lower()
    except Exception:  # pragma: no cover - defensive
        kind = ""
    if "v5" in kind or "v6" in kind:
        # 128 MiB physical VMEM: bigger tiles amortize per-grid-step overhead.
        return 64 * 1024 * 1024, 1024
    # Conservative default that also fits v7x's 64 MiB per TensorCore.
    return 32 * 1024 * 1024, 512


def _choose_batch_tile(b, batch_tile):
    """Batch tile: multiple of 128, <= batch_tile, >= 2 tiles when b > 128."""
    if b <= 128:
        return _round_up(b, 8)          # single tile == full (padded) array
    half = _round_up(-(-b // 2), 128)   # ceil(b/2) rounded up to 128
    tb = min(batch_tile, half)
    return max(128, (tb // 128) * 128)


def _matmul_store_stats(xu, xi, wu_ref, wi_ref, h_ref, stats_ref):
    """Two per-tower matmuls -> lane-aligned concat -> store h + BN partials."""
    prec = lax.Precision.HIGHEST if wu_ref.dtype == jnp.float32 else None
    hu = jnp.dot(xu.astype(wu_ref.dtype), wu_ref[...],
                 preferred_element_type=jnp.float32, precision=prec)
    hi = jnp.dot(xi.astype(wi_ref.dtype), wi_ref[...],
                 preferred_element_type=jnp.float32, precision=prec)
    h = jnp.concatenate([hu, hi], axis=1)            # (tb, pu + pi), f32
    h_store = h.astype(h_ref.dtype)
    h_ref[...] = h_store
    # Statistics from the *stored* activations so the next layer normalises
    # exactly what it reads back (identical in f32 mode).
    hs = h_store.astype(jnp.float32)
    s1 = jnp.sum(hs, axis=0, keepdims=True)          # (1, P)
    s2 = jnp.sum(hs * hs, axis=0, keepdims=True)     # (1, P)
    stats_ref[...] = jnp.concatenate([s1, s2], axis=0)[None]   # (1, 2, P)


def _make_layer0_kernel(tb, row_limit):
    """Layer 0: gathered user/item embeddings -> matmuls -> h + BN partials."""

    def kernel(u_ref, i_ref, wu_ref, wi_ref, h_ref, stats_ref):
        u = u_ref[...]
        v = i_ref[...]
        if row_limit is not None:
            # Padded batch rows hold *real* embedding rows (padded ids == 0);
            # zero them so they never contaminate the BN statistics.
            rows = pl.program_id(0) * tb + lax.broadcasted_iota(
                jnp.int32, (tb, 1), 0)
            keep = rows < row_limit
            u = jnp.where(keep, u, jnp.zeros_like(u))
            v = jnp.where(keep, v, jnp.zeros_like(v))
        _matmul_store_stats(u, v, wu_ref, wi_ref, h_ref, stats_ref)

    return kernel


def _make_layer_kernel(tb, row_limit, din_u, din_i, pu_in, eps, inv_b):
    """Layer l>=1: fold prev BN in-kernel -> ReLU -> matmuls -> h + partials."""

    def kernel(x_ref, prev_stats_ref, prev_gb_ref, wu_ref, wi_ref,
               h_ref, stats_ref):
        # Reduce the previous layer's per-tile partials (tiny) and fold the
        # exact full-batch, training-mode BatchNorm into scale/shift.
        ps = jnp.sum(prev_stats_ref[...], axis=0)             # (2, P_in) f32
        mean = ps[0:1, :] * inv_b
        var = jnp.maximum(ps[1:2, :] * inv_b - mean * mean, 0.0)
        scale = prev_gb_ref[0:1, :] * lax.rsqrt(var + eps)
        shift = prev_gb_ref[1:2, :] - mean * scale

        x = x_ref[...].astype(jnp.float32)
        x = jnp.maximum(x * scale + shift, 0.0)
        if row_limit is not None:
            rows = pl.program_id(0) * tb + lax.broadcasted_iota(
                jnp.int32, (tb, 1), 0)
            x = jnp.where(rows < row_limit, x, 0.0)

        xu = x[:, :din_u]                                      # user half
        xi = x[:, pu_in:pu_in + din_i]                         # item half
        _matmul_store_stats(xu, xi, wu_ref, wi_ref, h_ref, stats_ref)

    return kernel


def _make_final_kernel(du, pu_in, di, eps, inv_b):
    """Fold the last layer's BN+ReLU and compute the per-row user.item dot."""

    def kernel(x_ref, stats_ref, gb_ref, out_ref):
        ps = jnp.sum(stats_ref[...], axis=0)                   # (2, P_in)
        mean = ps[0:1, :] * inv_b
        var = jnp.maximum(ps[1:2, :] * inv_b - mean * mean, 0.0)
        scale = gb_ref[0:1, :] * lax.rsqrt(var + eps)
        shift = gb_ref[1:2, :] - mean * scale

        x = jnp.maximum(x_ref[...].astype(jnp.float32) * scale + shift, 0.0)
        u = x[:, :du]
        v = x[:, pu_in:pu_in + di]
        logits = jnp.sum(u * v, axis=1, keepdims=True)         # (tb, 1)
        out_ref[...] = logits.reshape(1, -1)                   # lane-dense (1, tb)

    return kernel


def two_tower_forward(user_ids, item_ids, user_emb_table, item_emb_table,
                      user_tower_params, item_tower_params, *,
                      compute_dtype=jnp.bfloat16, batch_tile=None, eps=1e-5):
    """TwoTowerRecommender.forward with batch-tiled, chained Pallas kernels."""
    n_layers = len(user_tower_params)
    assert n_layers == len(item_tower_params) and n_layers >= 1

    b = int(user_ids.shape[0])
    vmem_limit, default_bt = _chip_config()
    bt = default_bt if batch_tile is None else batch_tile
    tb = _choose_batch_tile(b, bt)
    b_pad = _round_up(b, tb)
    n_tiles = b_pad // tb
    row_limit = b if b_pad > b else None
    inv_b = 1.0 / float(b)

    cparams = pltpu.CompilerParams(dimension_semantics=("parallel",),
                                   vmem_limit_bytes=vmem_limit)

    # Pad the cheap 1-D id vectors instead of the gathered feature matrices,
    # then one fused XLA gather (+cast) per tower feeds the first kernel.
    if b_pad > b:
        user_ids = jnp.pad(user_ids, (0, b_pad - b))
        item_ids = jnp.pad(item_ids, (0, b_pad - b))
    uvec = jnp.take(user_emb_table, user_ids, axis=0).astype(compute_dtype)
    ivec = jnp.take(item_emb_table, item_ids, axis=0).astype(compute_dtype)

    # Per-layer parameter prep: lane-pad each tower's output width to a
    # multiple of 128 and drop the Linear bias (cancelled by training-mode BN).
    # Layout of the concatenated activations: [user 0..du) | pad | item
    # pu..pu+di) | pad], so both halves start lane-aligned.
    layer_meta = []
    for (wu, _bu, gu, betau), (wi, _bi, gi, betai) in zip(user_tower_params,
                                                          item_tower_params):
        din_u, du = wu.shape
        din_i, di = wi.shape
        pu, pi = _round_up(du, 128), _round_up(di, 128)
        wu_pad = (jnp.zeros((din_u, pu), jnp.float32)
                  .at[:, :du].set(wu).astype(compute_dtype))
        wi_pad = (jnp.zeros((din_i, pi), jnp.float32)
                  .at[:, :di].set(wi).astype(compute_dtype))
        gamma = (jnp.zeros((pu + pi,), jnp.float32)
                 .at[:du].set(gu).at[pu:pu + di].set(gi))
        beta = (jnp.zeros((pu + pi,), jnp.float32)
                .at[:du].set(betau).at[pu:pu + di].set(betai))
        gb = jnp.stack([gamma, beta], axis=0)                  # (2, pu+pi) f32
        layer_meta.append((wu_pad, wi_pad, gb, din_u, din_i, du, di, pu, pi))

    x = None
    prev = None          # (stats, gb, du, di, pu, pi) of the previous layer
    for li, (wu_p, wi_p, gb, din_u, din_i, du, di, pu, pi) in enumerate(layer_meta):
        p_out = pu + pi
        out_shape = (jax.ShapeDtypeStruct((b_pad, p_out), compute_dtype),
                     jax.ShapeDtypeStruct((n_tiles, 2, p_out), jnp.float32))
        out_specs = (pl.BlockSpec((tb, p_out), lambda t: (t, 0)),
                     pl.BlockSpec((1, 2, p_out), lambda t: (t, 0, 0)))
        w_specs = [pl.BlockSpec((din_u, pu), lambda t: (0, 0)),
                   pl.BlockSpec((din_i, pi), lambda t: (0, 0))]

        if li == 0:
            kernel = _make_layer0_kernel(tb, row_limit)
            in_specs = [pl.BlockSpec((tb, din_u), lambda t: (t, 0)),
                        pl.BlockSpec((tb, din_i), lambda t: (t, 0))] + w_specs
            args = (uvec, ivec, wu_p, wi_p)
        else:
            p_stats, p_gb, _pdu, _pdi, ppu, ppi = prev
            p_in = ppu + ppi
            kernel = _make_layer_kernel(tb, row_limit, din_u, din_i, ppu,
                                        eps, inv_b)
            in_specs = [pl.BlockSpec((tb, p_in), lambda t: (t, 0)),
                        pl.BlockSpec((n_tiles, 2, p_in), lambda t: (0, 0, 0)),
                        pl.BlockSpec((2, p_in), lambda t: (0, 0))] + w_specs
            args = (x, p_stats, p_gb, wu_p, wi_p)

        x, stats = pl.pallas_call(
            kernel, grid=(n_tiles,),
            in_specs=in_specs, out_specs=out_specs, out_shape=out_shape,
            compiler_params=cparams,
        )(*args)
        prev = (stats, gb, du, di, pu, pi)

    stats, gb, du, di, pu, pi = prev
    assert du == di, "both towers must end with the same width"
    p_in = pu + pi
    logits = pl.pallas_call(
        _make_final_kernel(du, pu, di, eps, inv_b),
        grid=(n_tiles,),
        in_specs=[pl.BlockSpec((tb, p_in), lambda t: (t, 0)),
                  pl.BlockSpec((n_tiles, 2, p_in), lambda t: (0, 0, 0)),
                  pl.BlockSpec((2, p_in), lambda t: (0, 0))],
        out_specs=pl.BlockSpec((1, tb), lambda t: (0, t)),
        out_shape=jax.ShapeDtypeStruct((1, b_pad), jnp.float32),
        compiler_params=cparams,
    )(x, stats, gb)

    return logits[0, :b].reshape(b, 1)


def two_tower_forward_ref(user_ids, item_ids, user_emb_table, item_emb_table,
                          user_tower_params, item_tower_params, eps=1e-5):
    """Pure-JAX reference faithful to the PyTorch module (training-mode BN)."""
    def tower(x, params):
        for (w, b, g, beta) in params:
            h = x @ w + b
            mean = jnp.mean(h, axis=0, keepdims=True)
            var = jnp.mean((h - mean) ** 2, axis=0, keepdims=True)
            h = (h - mean) / jnp.sqrt(var + eps)
            h = h * g + beta
            x = jnp.maximum(h, 0.0)
        return x

    u = tower(jnp.take(user_emb_table, user_ids, axis=0), user_tower_params)
    v = tower(jnp.take(item_emb_table, item_ids, axis=0), item_tower_params)
    return jnp.sum(u * v, axis=1, keepdims=True)


def _init_tower_params(key, input_dim, layer_dims):
    """Deterministic init of [Linear, BatchNorm] parameters for one tower."""
    params = []
    cur = input_dim
    for h in layer_dims:
        key, kw, kb, kg, kbeta = jax.random.split(key, 5)
        w = jax.random.normal(kw, (cur, h), jnp.float32) * 0.1
        b = jax.random.normal(kb, (h,), jnp.float32) * 0.05
        g = 1.0 + 0.1 * jax.random.normal(kg, (h,), jnp.float32)
        beta = 0.05 * jax.random.normal(kbeta, (h,), jnp.float32)
        params.append((w, b, g, beta))
        cur = h
    return params, key


if __name__ == "__main__":
    key = jax.random.PRNGKey(0)

    # Small deterministic problem, consistent with the module defaults.
    num_users = 50
    num_items = 64
    layers = [32, 32]          # tower hidden layer sizes
    emb_dim = layers[0]        # nn.Embedding dim = layers[0]
    batch = 200                # deliberately NOT a multiple of the batch tile

    key, k_ue, k_ie, k_uid, k_iid = jax.random.split(key, 5)
    user_emb_table = jax.random.normal(k_ue, (num_users, emb_dim), jnp.float32) * 0.1
    item_emb_table = jax.random.normal(k_ie, (num_items, emb_dim), jnp.float32) * 0.1

    user_tower_params, key = _init_tower_params(key, emb_dim, layers)
    item_tower_params, key = _init_tower_params(key, emb_dim, layers)

    user_ids = jax.random.randint(k_uid, (batch,), 0, num_users, jnp.int32)
    item_ids = jax.random.randint(k_iid, (batch,), 0, num_items, jnp.int32)

    ref = two_tower_forward_ref(user_ids, item_ids, user_emb_table,
                                item_emb_table, user_tower_params,
                                item_tower_params)

    # 1) Exact-semantics check: f32 operands, tight tolerance, forced 128-row
    #    tiles (exercises 2 batch tiles + row masking for the padded tail).
    fwd_f32 = jax.jit(functools.partial(
        two_tower_forward,
        user_emb_table=user_emb_table, item_emb_table=item_emb_table,
        user_tower_params=user_tower_params,
        item_tower_params=item_tower_params,
        compute_dtype=jnp.float32, batch_tile=128))
    out_f32 = fwd_f32(user_ids, item_ids)
    jax.block_until_ready(out_f32)
    assert out_f32.shape == (batch, 1)
    err_f32 = float(jnp.max(jnp.abs(out_f32 - ref)))
    assert jnp.allclose(out_f32, ref, atol=2e-3, rtol=2e-3), err_f32

    # 2) Performance configuration: bf16 MXU operands / bf16 staged
    #    activations (f32 accumulation + f32 BN stats), chip-default tiling.
    fwd_bf16 = jax.jit(functools.partial(
        two_tower_forward,
        user_emb_table=user_emb_table, item_emb_table=item_emb_table,
        user_tower_params=user_tower_params,
        item_tower_params=item_tower_params,
        compute_dtype=jnp.bfloat16, batch_tile=None))
    out_bf16 = fwd_bf16(user_ids, item_ids)
    jax.block_until_ready(out_bf16)
    assert out_bf16.shape == (batch, 1)
    err_bf16 = float(jnp.max(jnp.abs(out_bf16 - ref)))
    assert jnp.allclose(out_bf16, ref, atol=0.3, rtol=0.1), err_bf16

    print("KERNEL_OK")
</pallas_src>

<mosaic_0001>
module attributes {stable_mosaic.version = 11 : i64} {
  func.func @kernel(%arg0: i32, %arg1: memref<128x32xf32, #tpu.memory_space<vmem>>, %arg2: memref<128x32xf32, #tpu.memory_space<vmem>>, %arg3: memref<32x128xf32, #tpu.memory_space<vmem>>, %arg4: memref<32x128xf32, #tpu.memory_space<vmem>>, %arg5: memref<128x256xf32, #tpu.memory_space<vmem>>, %arg6: memref<1x2x256xf32, #tpu.memory_space<vmem>>) attributes {dimension_semantics = [#tpu.dimension_semantics<parallel>], iteration_bounds = array<i64: 2>, scalar_prefetch = 0 : i64, scratch_operands = 0 : i64, tpu.core_type = #tpu.core_type<tc>, window_params = [{transform_indices = @transform_0, window_bounds = array<i64: 128, 32>}, {transform_indices = @transform_1, window_bounds = array<i64: 128, 32>}, {pipeline_mode = #tpu.pipeline_mode<synchronous>, transform_indices = @transform_2, window_bounds = array<i64: 32, 128>}, {pipeline_mode = #tpu.pipeline_mode<synchronous>, transform_indices = @transform_3, window_bounds = array<i64: 32, 128>}, {transform_indices = @transform_4, window_bounds = array<i64: 128, 256>}, {transform_indices = @transform_5, window_bounds = array<i64: 1, 2, 256>}]} {
    %c0 = arith.constant 0 : index
    %c0_0 = arith.constant 0 : index
    %0 = vector.load %arg1[%c0, %c0_0] : memref<128x32xf32, #tpu.memory_space<vmem>>, vector<128x32xf32>
    %c0_1 = arith.constant 0 : index
    %c0_2 = arith.constant 0 : index
    %1 = vector.load %arg2[%c0_1, %c0_2] : memref<128x32xf32, #tpu.memory_space<vmem>>, vector<128x32xf32>
    %c128_i32 = arith.constant 128 : i32
    %2 = arith.muli %arg0, %c128_i32 : i32
    %3 = tpu.iota {dimensions = array<i32: 0>} : vector<128x1xi32>
    %4 = vector.broadcast %2 : i32 to vector<128x1xi32>
    %5 = arith.addi %4, %3 : vector<128x1xi32>
    %c200_i32 = arith.constant 200 : i32
    %6 = vector.broadcast %c200_i32 : i32 to vector<128x1xi32>
    %7 = arith.cmpi slt, %5, %6 : vector<128x1xi32>
    %cst = arith.constant 0.000000e+00 : f32
    %8 = vector.broadcast %cst : f32 to vector<128x32xf32>
    %9 = vector.shape_cast %7 : vector<128x1xi1> to vector<128x1xi1>
    %10 = vector.broadcast %9 : vector<128x1xi1> to vector<128x32xi1>
    %11 = arith.select %10, %0, %8 : vector<128x32xi1>, vector<128x32xf32>
    %cst_3 = arith.constant 0.000000e+00 : f32
    %12 = vector.broadcast %cst_3 : f32 to vector<128x32xf32>
    %13 = vector.shape_cast %7 : vector<128x1xi1> to vector<128x1xi1>
    %14 = vector.broadcast %13 : vector<128x1xi1> to vector<128x32xi1>
    %15 = arith.select %14, %1, %12 : vector<128x32xi1>, vector<128x32xf32>
    %c0_4 = arith.constant 0 : index
    %c0_5 = arith.constant 0 : index
    %16 = vector.load %arg3[%c0_4, %c0_5] : memref<32x128xf32, #tpu.memory_space<vmem>>, vector<32x128xf32>
    %cst_6 = arith.constant dense<0.000000e+00> : vector<128x128xf32>
    %17 = tpu.matmul %11, %16, %cst_6 {dimension_numbers = #tpu.dot_dimension_numbers<[1], [0], [0], [1], [0, 0, 1, 1], [], []>, precision = #tpu.contract_precision<fp32>} : vector<128x32xf32>, vector<32x128xf32>, vector<128x128xf32> -> vector<128x128xf32>
    %c0_7 = arith.constant 0 : index
    %c0_8 = arith.constant 0 : index
    %18 = vector.load %arg4[%c0_7, %c0_8] : memref<32x128xf32, #tpu.memory_space<vmem>>, vector<32x128xf32>
    %cst_9 = arith.constant dense<0.000000e+00> : vector<128x128xf32>
    %19 = tpu.matmul %15, %18, %cst_9 {dimension_numbers = #tpu.dot_dimension_numbers<[1], [0], [0], [1], [0, 0, 1, 1], [], []>, precision = #tpu.contract_precision<fp32>} : vector<128x32xf32>, vector<32x128xf32>, vector<128x128xf32> -> vector<128x128xf32>
    %20 = tpu.concatenate %17, %19 in 1 : vector<128x128xf32>, vector<128x128xf32> -> vector<128x256xf32>
    %c0_10 = arith.constant 0 : index
    %c0_11 = arith.constant 0 : index
    %21 = vector.load %arg5[%c0_10, %c0_11] : memref<128x256xf32, #tpu.memory_space<vmem>>, vector<128x256xf32>
    tpu.vector_store %arg5[%c0_10, %c0_11], %20 {strides = array<i32>} : memref<128x256xf32, #tpu.memory_space<vmem>>, vector<128x256xf32>,
    %cst_12 = arith.constant dense<0.000000e+00> : vector<256xf32>
    %22 = vector.multi_reduction <add>, %20, %cst_12 [0] : vector<128x256xf32> to vector<256xf32>
    %23 = vector.shape_cast %22 : vector<256xf32> to vector<1x256xf32>
    %24 = arith.mulf %20, %20 : vector<128x256xf32>
    %cst_13 = arith.constant dense<0.000000e+00> : vector<256xf32>
    %25 = vector.multi_reduction <add>, %24, %cst_13 [0] : vector<128x256xf32> to vector<256xf32>
    %26 = vector.shape_cast %25 : vector<256xf32> to vector<1x256xf32>
    %27 = tpu.concatenate %23, %26 in 0 : vector<1x256xf32>, vector<1x256xf32> -> vector<2x256xf32>
    %28 = vector.shape_cast %27 : vector<2x256xf32> to vector<1x2x256xf32>
    %c0_14 = arith.constant 0 : index
    %c0_15 = arith.constant 0 : index
    %c0_16 = arith.constant 0 : index
    %29 = vector.load %arg6[%c0_14, %c0_15, %c0_16] : memref<1x2x256xf32, #tpu.memory_space<vmem>>, vector<1x2x256xf32>
    tpu.vector_store %arg6[%c0_14, %c0_15, %c0_16], %28 {strides = array<i32>} : memref<1x2x256xf32, #tpu.memory_space<vmem>>, vector<1x2x256xf32>,
    return
  }
  func.func @transform_0(%arg0: i32) -> (i32, i32) {
    %c0_i32 = arith.constant 0 : i32
    %c0_i32_0 = arith.constant 0 : i32
    return %arg0, %c0_i32 : i32, i32
  }
  func.func @transform_1(%arg0: i32) -> (i32, i32) {
    %c0_i32 = arith.constant 0 : i32
    %c0_i32_0 = arith.constant 0 : i32
    return %arg0, %c0_i32 : i32, i32
  }
  func.func @transform_2(%arg0: i32) -> (i32, i32) {
    %c0_i32 = arith.constant 0 : i32
    %c0_i32_0 = arith.constant 0 : i32
    %c0_i32_1 = arith.constant 0 : i32
    return %c0_i32, %c0_i32_0 : i32, i32
  }
  func.func @transform_3(%arg0: i32) -> (i32, i32) {
    %c0_i32 = arith.constant 0 : i32
    %c0_i32_0 = arith.constant 0 : i32
    %c0_i32_1 = arith.constant 0 : i32
    return %c0_i32, %c0_i32_0 : i32, i32
  }
  func.func @transform_4(%arg0: i32) -> (i32, i32) {
    %c0_i32 = arith.constant 0 : i32
    %c0_i32_0 = arith.constant 0 : i32
    return %arg0, %c0_i32 : i32, i32
  }
  func.func @transform_5(%arg0: i32) -> (i32, i32, i32) {
    %c0_i32 = arith.constant 0 : i32
    %c0_i32_0 = arith.constant 0 : i32
    %c0_i32_1 = arith.constant 0 : i32
    return %arg0, %c0_i32, %c0_i32_0 : i32, i32, i32
  }
}

module attributes {stable_mosaic.version = 11 : i64} {
  func.func @kernel(%arg0: i32, %arg1: memref<128x256xf32, #tpu.memory_space<vmem>>, %arg2: memref<2x2x256xf32, #tpu.memory_space<vmem>>, %arg3: memref<2x256xf32, #tpu.memory_space<vmem>>, %arg4: memref<1x128xf32, #tpu.memory_space<vmem>>) attributes {dimension_semantics = [#tpu.dimension_semantics<parallel>], iteration_bounds = array<i64: 2>, scalar_prefetch = 0 : i64, scratch_operands = 0 : i64, tpu.core_type = #tpu.core_type<tc>, window_params = [{transform_indices = @transform_0, window_bounds = array<i64: 128, 256>}, {pipeline_mode = #tpu.pipeline_mode<synchronous>, transform_indices = @transform_1, window_bounds = array<i64: 2, 2, 256>}, {pipeline_mode = #tpu.pipeline_mode<synchronous>, transform_indices = @transform_2, window_bounds = array<i64: 2, 256>}, {transform_indices = @transform_3, window_bounds = array<i64: 1, 128>}]} {
    %c0 = arith.constant 0 : index
    %c0_0 = arith.constant 0 : index
    %c0_1 = arith.constant 0 : index
    %0 = vector.load %arg2[%c0, %c0_0, %c0_1] : memref<2x2x256xf32, #tpu.memory_space<vmem>>, vector<2x2x256xf32>
    %cst = arith.constant dense<0.000000e+00> : vector<2x256xf32>
    %1 = vector.multi_reduction <add>, %0, %cst [0] : vector<2x2x256xf32> to vector<2x256xf32>
    %2 = vector.extract_strided_slice %1 {offsets = [0, 0], sizes = [1, 256], strides = [1, 1]} : vector<2x256xf32> to vector<1x256xf32>
    %cst_2 = arith.constant 5.000000e-03 : f32
    %3 = vector.broadcast %cst_2 : f32 to vector<1x256xf32>
    %4 = arith.mulf %2, %3 : vector<1x256xf32>
    %5 = vector.extract_strided_slice %1 {offsets = [1, 0], sizes = [1, 256], strides = [1, 1]} : vector<2x256xf32> to vector<1x256xf32>
    %cst_3 = arith.constant 5.000000e-03 : f32
    %6 = vector.broadcast %cst_3 : f32 to vector<1x256xf32>
    %7 = arith.mulf %5, %6 : vector<1x256xf32>
    %8 = arith.mulf %4, %4 : vector<1x256xf32>
    %9 = arith.subf %7, %8 : vector<1x256xf32>
    %cst_4 = arith.constant 0.000000e+00 : f32
    %10 = vector.broadcast %cst_4 : f32 to vector<1x256xf32>
    %11 = arith.maximumf %9, %10 : vector<1x256xf32>
    %c0_5 = arith.constant 0 : index
    %c0_6 = arith.constant 0 : index
    %12 = vector.load %arg3[%c0_5, %c0_6] : memref<2x256xf32, #tpu.memory_space<vmem>>, vector<1x256xf32>
    %cst_7 = arith.constant 9.99999974E-6 : f32
    %13 = vector.broadcast %cst_7 : f32 to vector<1x256xf32>
    %14 = arith.addf %11, %13 : vector<1x256xf32>
    %15 = math.rsqrt %14 : vector<1x256xf32>
    %16 = arith.mulf %12, %15 : vector<1x256xf32>
    %c1 = arith.constant 1 : index
    %c0_8 = arith.constant 0 : index
    %17 = vector.load %arg3[%c1, %c0_8] : memref<2x256xf32, #tpu.memory_space<vmem>>, vector<1x256xf32>
    %18 = arith.mulf %4, %16 : vector<1x256xf32>
    %19 = arith.subf %17, %18 : vector<1x256xf32>
    %c0_9 = arith.constant 0 : index
    %c0_10 = arith.constant 0 : index
    %20 = vector.load %arg1[%c0_9, %c0_10] : memref<128x256xf32, #tpu.memory_space<vmem>>, vector<128x256xf32>
    %21 = vector.broadcast %16 : vector<1x256xf32> to vector<128x256xf32>
    %22 = arith.mulf %20, %21 : vector<128x256xf32>
    %23 = vector.broadcast %19 : vector<1x256xf32> to vector<128x256xf32>
    %24 = arith.addf %22, %23 : vector<128x256xf32>
    %cst_11 = arith.constant 0.000000e+00 : f32
    %25 = vector.broadcast %cst_11 : f32 to vector<128x256xf32>
    %26 = arith.maximumf %24, %25 : vector<128x256xf32>
    %27 = vector.extract_strided_slice %26 {offsets = [0, 0], sizes = [128, 32], strides = [1, 1]} : vector<128x256xf32> to vector<128x32xf32>
    %28 = vector.extract_strided_slice %26 {offsets = [0, 128], sizes = [128, 32], strides = [1, 1]} : vector<128x256xf32> to vector<128x32xf32>
    %29 = arith.mulf %27, %28 : vector<128x32xf32>
    %cst_12 = arith.constant dense<0.000000e+00> : vector<128xf32>
    %30 = vector.multi_reduction <add>, %29, %cst_12 [1] : vector<128x32xf32> to vector<128xf32>
    %31 = vector.shape_cast %30 : vector<128xf32> to vector<128x1xf32>
    %32 = vector.shape_cast %31 : vector<128x1xf32> to vector<1x128xf32>
    %c0_13 = arith.constant 0 : index
    %c0_14 = arith.constant 0 : index
    %33 = vector.load %arg4[%c0_13, %c0_14] : memref<1x128xf32, #tpu.memory_space<vmem>>, vector<1x128xf32>
    tpu.vector_store %arg4[%c0_13, %c0_14], %32 {strides = array<i32>} : memref<1x128xf32, #tpu.memory_space<vmem>>, vector<1x128xf32>,
    return
  }
  func.func @transform_0(%arg0: i32) -> (i32, i32) {
    %c0_i32 = arith.constant 0 : i32
    %c0_i32_0 = arith.constant 0 : i32
    return %arg0, %c0_i32 : i32, i32
  }
  func.func @transform_1(%arg0: i32) -> (i32, i32, i32) {
    %c0_i32 = arith.constant 0 : i32
    %c0_i32_0 = arith.constant 0 : i32
    %c0_i32_1 = arith.constant 0 : i32
    %c0_i32_2 = arith.constant 0 : i32
    return %c0_i32, %c0_i32_0, %c0_i32_1 : i32, i32, i32
  }
  func.func @transform_2(%arg0: i32) -> (i32, i32) {
    %c0_i32 = arith.constant 0 : i32
    %c0_i32_0 = arith.constant 0 : i32
    %c0_i32_1 = arith.constant 0 : i32
    return %c0_i32, %c0_i32_0 : i32, i32
  }
  func.func @transform_3(%arg0: i32) -> (i32, i32) {
    %c0_i32 = arith.constant 0 : i32
    %c0_i32_0 = arith.constant 0 : i32
    return %c0_i32, %arg0 : i32, i32
  }
}

module attributes {stable_mosaic.version = 11 : i64} {
  func.func @kernel(%arg0: i32, %arg1: memref<128x256xf32, #tpu.memory_space<vmem>>, %arg2: memref<2x2x256xf32, #tpu.memory_space<vmem>>, %arg3: memref<2x256xf32, #tpu.memory_space<vmem>>, %arg4: memref<32x128xf32, #tpu.memory_space<vmem>>, %arg5: memref<32x128xf32, #tpu.memory_space<vmem>>, %arg6: memref<128x256xf32, #tpu.memory_space<vmem>>, %arg7: memref<1x2x256xf32, #tpu.memory_space<vmem>>) attributes {dimension_semantics = [#tpu.dimension_semantics<parallel>], iteration_bounds = array<i64: 2>, scalar_prefetch = 0 : i64, scratch_operands = 0 : i64, tpu.core_type = #tpu.core_type<tc>, window_params = [{transform_indices = @transform_0, window_bounds = array<i64: 128, 256>}, {pipeline_mode = #tpu.pipeline_mode<synchronous>, transform_indices = @transform_1, window_bounds = array<i64: 2, 2, 256>}, {pipeline_mode = #tpu.pipeline_mode<synchronous>, transform_indices = @transform_2, window_bounds = array<i64: 2, 256>}, {pipeline_mode = #tpu.pipeline_mode<synchronous>, transform_indices = @transform_3, window_bounds = array<i64: 32, 128>}, {pipeline_mode = #tpu.pipeline_mode<synchronous>, transform_indices = @transform_4, window_bounds = array<i64: 32, 128>}, {transform_indices = @transform_5, window_bounds = array<i64: 128, 256>}, {transform_indices = @transform_6, window_bounds = array<i64: 1, 2, 256>}]} {
    %c0 = arith.constant 0 : index
    %c0_0 = arith.constant 0 : index
    %c0_1 = arith.constant 0 : index
    %0 = vector.load %arg2[%c0, %c0_0, %c0_1] : memref<2x2x256xf32, #tpu.memory_space<vmem>>, vector<2x2x256xf32>
    %cst = arith.constant dense<0.000000e+00> : vector<2x256xf32>
    %1 = vector.multi_reduction <add>, %0, %cst [0] : vector<2x2x256xf32> to vector<2x256xf32>
    %2 = vector.extract_strided_slice %1 {offsets = [0, 0], sizes = [1, 256], strides = [1, 1]} : vector<2x256xf32> to vector<1x256xf32>
    %cst_2 = arith.constant 5.000000e-03 : f32
    %3 = vector.broadcast %cst_2 : f32 to vector<1x256xf32>
    %4 = arith.mulf %2, %3 : vector<1x256xf32>
    %5 = vector.extract_strided_slice %1 {offsets = [1, 0], sizes = [1, 256], strides = [1, 1]} : vector<2x256xf32> to vector<1x256xf32>
    %cst_3 = arith.constant 5.000000e-03 : f32
    %6 = vector.broadcast %cst_3 : f32 to vector<1x256xf32>
    %7 = arith.mulf %5, %6 : vector<1x256xf32>
    %8 = arith.mulf %4, %4 : vector<1x256xf32>
    %9 = arith.subf %7, %8 : vector<1x256xf32>
    %cst_4 = arith.constant 0.000000e+00 : f32
    %10 = vector.broadcast %cst_4 : f32 to vector<1x256xf32>
    %11 = arith.maximumf %9, %10 : vector<1x256xf32>
    %c0_5 = arith.constant 0 : index
    %c0_6 = arith.constant 0 : index
    %12 = vector.load %arg3[%c0_5, %c0_6] : memref<2x256xf32, #tpu.memory_space<vmem>>, vector<1x256xf32>
    %cst_7 = arith.constant 9.99999974E-6 : f32
    %13 = vector.broadcast %cst_7 : f32 to vector<1x256xf32>
    %14 = arith.addf %11, %13 : vector<1x256xf32>
    %15 = math.rsqrt %14 : vector<1x256xf32>
    %16 = arith.mulf %12, %15 : vector<1x256xf32>
    %c1 = arith.constant 1 : index
    %c0_8 = arith.constant 0 : index
    %17 = vector.load %arg3[%c1, %c0_8] : memref<2x256xf32, #tpu.memory_space<vmem>>, vector<1x256xf32>
    %18 = arith.mulf %4, %16 : vector<1x256xf32>
    %19 = arith.subf %17, %18 : vector<1x256xf32>
    %c0_9 = arith.constant 0 : index
    %c0_10 = arith.constant 0 : index
    %20 = vector.load %arg1[%c0_9, %c0_10] : memref<128x256xf32, #tpu.memory_space<vmem>>, vector<128x256xf32>
    %21 = vector.broadcast %16 : vector<1x256xf32> to vector<128x256xf32>
    %22 = arith.mulf %20, %21 : vector<128x256xf32>
    %23 = vector.broadcast %19 : vector<1x256xf32> to vector<128x256xf32>
    %24 = arith.addf %22, %23 : vector<128x256xf32>
    %cst_11 = arith.constant 0.000000e+00 : f32
    %25 = vector.broadcast %cst_11 : f32 to vector<128x256xf32>
    %26 = arith.maximumf %24, %25 : vector<128x256xf32>
    %c128_i32 = arith.constant 128 : i32
    %27 = arith.muli %arg0, %c128_i32 : i32
    %28 = tpu.iota {dimensions = array<i32: 0>} : vector<128x1xi32>
    %29 = vector.broadcast %27 : i32 to vector<128x1xi32>
    %30 = arith.addi %29, %28 : vector<128x1xi32>
    %c200_i32 = arith.constant 200 : i32
    %31 = vector.broadcast %c200_i32 : i32 to vector<128x1xi32>
    %32 = arith.cmpi slt, %30, %31 : vector<128x1xi32>
    %cst_12 = arith.constant 0.000000e+00 : f32
    %33 = vector.shape_cast %32 : vector<128x1xi1> to vector<128x1xi1>
    %34 = vector.broadcast %33 : vector<128x1xi1> to vector<128x256xi1>
    %35 = vector.broadcast %cst_12 : f32 to vector<128x256xf32>
    %36 = arith.select %34, %26, %35 : vector<128x256xi1>, vector<128x256xf32>
    %37 = vector.extract_strided_slice %36 {offsets = [0, 0], sizes = [128, 32], strides = [1, 1]} : vector<128x256xf32> to vector<128x32xf32>
    %38 = vector.extract_strided_slice %36 {offsets = [0, 128], sizes = [128, 32], strides = [1, 1]} : vector<128x256xf32> to vector<128x32xf32>
    %c0_13 = arith.constant 0 : index
    %c0_14 = arith.constant 0 : index
    %39 = vector.load %arg4[%c0_13, %c0_14] : memref<32x128xf32, #tpu.memory_space<vmem>>, vector<32x128xf32>
    %cst_15 = arith.constant dense<0.000000e+00> : vector<128x128xf32>
    %40 = tpu.matmul %37, %39, %cst_15 {dimension_numbers = #tpu.dot_dimension_numbers<[1], [0], [0], [1], [0, 0, 1, 1], [], []>, precision = #tpu.contract_precision<fp32>} : vector<128x32xf32>, vector<32x128xf32>, vector<128x128xf32> -> vector<128x128xf32>
    %c0_16 = arith.constant 0 : index
    %c0_17 = arith.constant 0 : index
    %41 = vector.load %arg5[%c0_16, %c0_17] : memref<32x128xf32, #tpu.memory_space<vmem>>, vector<32x128xf32>
    %cst_18 = arith.constant dense<0.000000e+00> : vector<128x128xf32>
    %42 = tpu.matmul %38, %41, %cst_18 {dimension_numbers = #tpu.dot_dimension_numbers<[1], [0], [0], [1], [0, 0, 1, 1], [], []>, precision = #tpu.contract_precision<fp32>} : vector<128x32xf32>, vector<32x128xf32>, vector<128x128xf32> -> vector<128x128xf32>
    %43 = tpu.concatenate %40, %42 in 1 : vector<128x128xf32>, vector<128x128xf32> -> vector<128x256xf32>
    %c0_19 = arith.constant 0 : index
    %c0_20 = arith.constant 0 : index
    %44 = vector.load %arg6[%c0_19, %c0_20] : memref<128x256xf32, #tpu.memory_space<vmem>>, vector<128x256xf32>
    tpu.vector_store %arg6[%c0_19, %c0_20], %43 {strides = array<i32>} : memref<128x256xf32, #tpu.memory_space<vmem>>, vector<128x256xf32>,
    %cst_21 = arith.constant dense<0.000000e+00> : vector<256xf32>
    %45 = vector.multi_reduction <add>, %43, %cst_21 [0] : vector<128x256xf32> to vector<256xf32>
    %46 = vector.shape_cast %45 : vector<256xf32> to vector<1x256xf32>
    %47 = arith.mulf %43, %43 : vector<128x256xf32>
    %cst_22 = arith.constant dense<0.000000e+00> : vector<256xf32>
    %48 = vector.multi_reduction <add>, %47, %cst_22 [0] : vector<128x256xf32> to vector<256xf32>
    %49 = vector.shape_cast %48 : vector<256xf32> to vector<1x256xf32>
    %50 = tpu.concatenate %46, %49 in 0 : vector<1x256xf32>, vector<1x256xf32> -> vector<2x256xf32>
    %51 = vector.shape_cast %50 : vector<2x256xf32> to vector<1x2x256xf32>
    %c0_23 = arith.constant 0 : index
    %c0_24 = arith.constant 0 : index
    %c0_25 = arith.constant 0 : index
    %52 = vector.load %arg7[%c0_23, %c0_24, %c0_25] : memref<1x2x256xf32, #tpu.memory_space<vmem>>, vector<1x2x256xf32>
    tpu.vector_store %arg7[%c0_23, %c0_24, %c0_25], %51 {strides = array<i32>} : memref<1x2x256xf32, #tpu.memory_space<vmem>>, vector<1x2x256xf32>,
    return
  }
  func.func @transform_0(%arg0: i32) -> (i32, i32) {
    %c0_i32 = arith.constant 0 : i32
    %c0_i32_0 = arith.constant 0 : i32
    return %arg0, %c0_i32 : i32, i32
  }
  func.func @transform_1(%arg0: i32) -> (i32, i32, i32) {
    %c0_i32 = arith.constant 0 : i32
    %c0_i32_0 = arith.constant 0 : i32
    %c0_i32_1 = arith.constant 0 : i32
    %c0_i32_2 = arith.constant 0 : i32
    return %c0_i32, %c0_i32_0, %c0_i32_1 : i32, i32, i32
  }
  func.func @transform_2(%arg0: i32) -> (i32, i32) {
    %c0_i32 = arith.constant 0 : i32
    %c0_i32_0 = arith.constant 0 : i32
    %c0_i32_1 = arith.constant 0 : i32
    return %c0_i32, %c0_i32_0 : i32, i32
  }
  func.func @transform_3(%arg0: i32) -> (i32, i32) {
    %c0_i32 = arith.constant 0 : i32
    %c0_i32_0 = arith.constant 0 : i32
    %c0_i32_1 = arith.constant 0 : i32
    return %c0_i32, %c0_i32_0 : i32, i32
  }
  func.func @transform_4(%arg0: i32) -> (i32, i32) {
    %c0_i32 = arith.constant 0 : i32
    %c0_i32_0 = arith.constant 0 : i32
    %c0_i32_1 = arith.constant 0 : i32
    return %c0_i32, %c0_i32_0 : i32, i32
  }
  func.func @transform_5(%arg0: i32) -> (i32, i32) {
    %c0_i32 = arith.constant 0 : i32
    %c0_i32_0 = arith.constant 0 : i32
    return %arg0, %c0_i32 : i32, i32
  }
  func.func @transform_6(%arg0: i32) -> (i32, i32, i32) {
    %c0_i32 = arith.constant 0 : i32
    %c0_i32_0 = arith.constant 0 : i32
    %c0_i32_1 = arith.constant 0 : i32
    return %arg0, %c0_i32, %c0_i32_0 : i32, i32, i32
  }
}

</mosaic_0001>

<bundles_post_ra>
// kernel: two_tower_forward.5
= control target key start
LH: loop header
LB: loop body
LE: loop exit
PB: predicated region body
PF: predicated region fallthrough
CT: control target
= control target key end

     0   :  { %s712_s12 = smov 0   ;;  %s970_s0 = inlined_call_operand.vmem [shape: f32[256,256], index: 0, kind: input, shape index: {}]   ;;  %s971_s1 = inlined_call_operand.vmem [shape: f32[2,2,256], index: 1, kind: input, shape index: {}]   ;;  %s972_s2 = inlined_call_operand.vmem [shape: f32[2,256], index: 2, kind: input, shape index: {}]   ;;  %s973_s3 = inlined_call_operand.vmem [shape: f32[1,256], index: 3, kind: output, shape index: {}]  }
   0x1 LB: > { %s718_s13 = sadd.s32 4294967295, %s689_s12   ;;  %p660_p0 = scmp.ge.s32.totalorder %s689_s12, 1  ;;  %s689_s12 = sphi %s712_s12, %s13_s12  }
   0x2   : > { %p139_p1 = scmp.lt.s32.totalorder %s689_s12, 3 }
   0x4   : > { %p140_p2 = pnand %p660_p0, %p139_p1 }
   0x5   : > { %v664_v0 = vld.sshfl [vmem:[%s971_s1] sm:$0x33 pattern:$0x76325410] (!%p140_p2)  ;;  %vm196_vm0 = vcmask (!%p140_p2), 1041408   ;;  %v228_v24 = vlaneseq (!%p140_p2)  ;;  %s661_s18 = sshll.u32 (!%p140_p2), %s718_s13, 4 }
   0x6   : > { %143 = sbr.rel (%p140_p2) target bundleno = 241 (0xf1), region = 32  ;;  %v665_v1 = vld.sshfl [vmem:[%s971_s1 + $0x4] sm:$0x33 pattern:$0x76325410] (!%p140_p2)  ;;  %v183_v2 = vcombine.high (!%p140_p2), %v664_v0, %v664_v0  ;;  %v197_v3 = vsel (!%p140_p2), %vm196_vm0, %v664_v0, 0.0 }
   0x7   : > { %v191_v4 = vcombine.high (!%p140_p2), %v665_v1, %v665_v1  ;;  %v198_v5 = vsel (!%p140_p2), %vm196_vm0, %v665_v1, 0.0  ;;  %v691_v22 = vmov (!%p140_p2), 1966171168   ;;  %v730_v26 = vshrl.u32 (!%p140_p2), %v228_v24, 7  ;;  %p163_p3 = scmp.lt.s32.totalorder (!%p140_p2), %s661_s18, 31  ;;  %p169_p4 = scmp.lt.s32.totalorder (!%p140_p2), %s718_s13, 1 }
   0x8   : > { %v199_v6 = vadd.f32 (!%p140_p2), %v198_v5, %v197_v3  ;;  %v200_v7 = vsel (!%p140_p2), %vm196_vm0, %v183_v2, 0.0  ;;  %v226_v23 = vunpack.c.l.s4 (!%p140_p2), %v691_v22  ;;  %v217_v33 = vld [vmem:[%s972_s2] ss:$2 sm:$0x3] (!%p140_p2)  ;;  %vm431_vm1 = vcmask (!%p140_p2), 261120  }
   0x9   : > { %v201_v8 = vsel (!%p140_p2), %vm196_vm0, %v191_v4, 0.0  ;;  %v247_v35 = vsub.s32 (!%p140_p2), 0, %v730_v26  ;;  %v251_v36 = vsub.s32 (!%p140_p2), 1, %v730_v26  ;;  %v666_v55 = vld [vmem:[%s972_s2 + $0x1] ss:$2 sm:$0x3] (!%p140_p2) }
   0xa   : > { %v202_v9 = vadd.f32 (!%p140_p2), %v201_v8, %v200_v7  ;;  %v203_v10 = vmul.f32 (!%p140_p2), 0.005, %v199_v6  ;;  %v227_v25 = vunpack.c.0.s8 (!%p140_p2), %v226_v23  ;;  %vm507_vm2 = vcmask (!%p140_p2), 130112  }
   0xb   : > { %vm514_vm3 = vcmask (!%p140_p2), 195712   ;;  %vm521_vm4 = vcmask (!%p140_p2), 261312   ;;  %vm528_vm5 = vcmask (!%p140_p2), 326912   ;;  %vm535_vm6 = vcmask (!%p140_p2), 392512  }
   0xc   : > { %v204_v11 = vmul.f32 (!%p140_p2), 0.005, %v202_v9  ;;  %v205_v12 = vmul.f32 (!%p140_p2), %v203_v10, %v203_v10  ;;  %v733_v28 = vsub.s32 (!%p140_p2), %v227_v25, %v730_v26  ;;  %vm542_vm7 = vcmask (!%p140_p2), 458112  }
   0xd   : > { %s975_s18 = smov (!%p163_p3, %s661_s18), 31  ;;  %vm549_vm8 = vcmask 523712   ;;  %vm556_vm9 = vcmask 589312   ;;  %vm563_vm10 = vcmask 654912   ;;  %vm570_vm11 = vcmask 720512   ;;  %s977_s13 = smov (!%p169_p4, %s718_s13), 1 }
   0xe   : > { %v206_v13 = vmul.f32 %v204_v11, %v204_v11  ;;  %v209_v14 = vrot.slane %v205_v12, 7  ;;  %s669_s19 = sshll.u32 %s975_s18, 4  ;;  %vm577_vm12 = vcmask 786112   ;;  %vm584_vm13 = vcmask 851712   ;;  %s171_s29 = scalar_lea.vmem %s973_s3, %s977_s13 }
   0xf   : > { %s745_s24 = scalar_lea.vmem %s970_s0, %s669_s19  ;;  %vm591_vm14 = vcmask 917312   ;;  %vm598_vm15 = vcmask 982912   ;;  %vm605_vm0 = vcmask 1048512  }
  0x10   : > { %v210_v15 = vrot.slane %v206_v13, 7  ;;  %v213_v16 = vsub.f32 %v203_v10, %v209_v14  ;;  %v276_v40 = vld [vmem:[%s745_s24] sm:$0xff]  ;;  %v277_v41 = vld [vmem:[%s745_s24 + $0x8] sm:$0xff]  ;;  %v278_v46 = vld [vmem:[%s745_s24 + $0x10] sm:$0xff] }
  0x11   : > { %v280_v42 = vld [vmem:[%s745_s24 + $0x20] sm:$0xff]  ;;  %v281_v45 = vld [vmem:[%s745_s24 + $0x28] sm:$0xff]  ;;  %v279_v47 = vld [vmem:[%s745_s24 + $0x18] sm:$0xff] }
  0x12   : > { %v214_v17 = vsub.f32 %v204_v11, %v210_v15  ;;  %v215_v18 = vmax.f32 %v213_v16, 0.0  ;;  %v282_v48 = vld [vmem:[%s745_s24 + $0x30] sm:$0xff]  ;;  %v283_v49 = vld [vmem:[%s745_s24 + $0x38] sm:$0xff]  ;;  %v284_v50 = vld [vmem:[%s745_s24 + $0x40] sm:$0xff] }
  0x13   : > { %v285_v52 = vld [vmem:[%s745_s24 + $0x48] sm:$0xff]  ;;  %v286_v53 = vld [vmem:[%s745_s24 + $0x50] sm:$0xff]  ;;  %v287_v54 = vld [vmem:[%s745_s24 + $0x58] sm:$0xff] }
  0x14   : > { %v216_v19 = vmax.f32 %v214_v17, 0.0  ;;  %v218_v20 = vadd.f32 1e-05, %v215_v18  ;;  %v288_v59 = vld [vmem:[%s745_s24 + $0x60] sm:$0xff]  ;;  %v289_v60 = vld [vmem:[%s745_s24 + $0x68] sm:$0xff]  ;;  %v290_v61 = vld [vmem:[%s745_s24 + $0x70] sm:$0xff] }
  0x15   : > { %v291_v2 = vld [vmem:[%s745_s24 + $0x78] sm:$0xff]  ;;  %v292_v3 = vld [vmem:[%s745_s24 + $0x80] sm:$0xff]  ;;  %v293_v4 = vld [vmem:[%s745_s24 + $0x88] sm:$0xff] }
  0x16   : > { %v219_v21 = vadd.f32 1e-05, %v216_v19  ;;  %679 = vrsqrt.f32 %v218_v20  ;;  %v294_v9 = vld [vmem:[%s745_s24 + $0x90] sm:$0xff]  ;;  %v297_v16 = vld [vmem:[%s745_s24 + $0xa8] sm:$0xff]  ;;  %v299_v18 = vld [vmem:[%s745_s24 + $0xb8] sm:$0xff] }
  0x17   : > { %v298_v17 = vld [vmem:[%s745_s24 + $0xb0] sm:$0xff]  ;;  %v300_v23 = vld [vmem:[%s745_s24 + $0xc0] sm:$0xff]  ;;  %v301_v25 = vld [vmem:[%s745_s24 + $0xc8] sm:$0xff] }
  0x18   : > { %681 = vrsqrt.f32 %v219_v21 }
  0x20   : > { %v680_v27 = vpop.eup %679 }
  0x22   : > { %v682_v29 = vpop.eup %681 }
  0x23   : > { %v224_v30 = vcombine.low %v680_v27, %v682_v29  ;;  %v302_v27 = vld [vmem:[%s745_s24 + $0xd0] sm:$0xff] }
  0x25   : > { %v231_v31 = vrot.slane %v224_v30, %v733_v28 }
  0x27   : > { %v232_v32 = vcombine.high %v231_v31, %v231_v31 }
  0x29   : > { %v239_v34 = vrot.slane %v232_v32, %v733_v28  ;;  %v303_v32 = vld [vmem:[%s745_s24 + $0xd8] sm:$0xff] }
  0x2b   : > { %v241_v37 = vmul.f32 %v239_v34, %v217_v33  ;;  %v304_v33 = vld [vmem:[%s745_s24 + $0xe0] sm:$0xff]  ;;  %v305_v34 = vld [vmem:[%s745_s24 + $0xe8] sm:$0xff] }
  0x2d   : > { %v749_v38 = vrot.slane %v241_v37, %v247_v35  ;;  %v753_v39 = vrot.slane %v241_v37, %v251_v36 }
  0x2f   : > { %v255_v43 = vmul.f32 %v749_v38, %v203_v10  ;;  %v256_v44 = vmul.f32 %v753_v39, %v204_v11  ;;  %v308_v56 = vmul.f32 %v276_v40, %v749_v38  ;;  %v309_v57 = vmul.f32 %v277_v41, %v753_v39  ;;  %v295_v10 = vld [vmem:[%s745_s24 + $0x98] sm:$0xff]  ;;  %v296_v11 = vld [vmem:[%s745_s24 + $0xa0] sm:$0xff] }
  0x30   : > { %v312_v58 = vmul.f32 %v280_v42, %v749_v38  ;;  %v313_v63 = vmul.f32 %v281_v45, %v753_v39  ;;  %v310_v0 = vmul.f32 %v278_v46, %v749_v38  ;;  %v311_v1 = vmul.f32 %v279_v47, %v753_v39 }
  0x31   : > { %v259_v51 = vcombine.low %v255_v43, %v256_v44  ;;  %v314_v5 = vmul.f32 %v282_v48, %v749_v38  ;;  %v315_v6 = vmul.f32 %v283_v49, %v753_v39  ;;  %v316_v7 = vmul.f32 %v284_v50, %v749_v38 }
  0x32   : > { %v317_v8 = vmul.f32 %v285_v52, %v753_v39  ;;  %v318_v13 = vmul.f32 %v286_v53, %v749_v38  ;;  %v319_v14 = vmul.f32 %v287_v54, %v753_v39  ;;  %v796_v15 = vmul.f32 %v288_v59, %v749_v38 }
  0x33   : > { %v266_v62 = vrot.slane %v259_v51, %v733_v28  ;;  %v321_v19 = vmul.f32 %v289_v60, %v753_v39  ;;  %v322_v20 = vmul.f32 %v290_v61, %v749_v38  ;;  %v804_v21 = vmul.f32 %v291_v2, %v753_v39 }
  0x34   : > { %v807_v22 = vmul.f32 %v292_v3, %v749_v38  ;;  %v325_v29 = vmul.f32 %v293_v4, %v753_v39  ;;  %v814_v30 = vmul.f32 %v294_v9, %v749_v38  ;;  %v817_v31 = vmul.f32 %v295_v10, %v753_v39 }
  0x35   : > { %v273_v12 = vrot.slane %v266_v62, %v733_v28  ;;  %v823_v37 = vmul.f32 %v296_v11, %v749_v38  ;;  %v826_v40 = vmul.f32 %v297_v16, %v753_v39  ;;  %v829_v41 = vmul.f32 %v298_v17, %v749_v38 }
  0x36   : > { %v832_v42 = vmul.f32 %v299_v18, %v753_v39  ;;  %v843_v45 = vmul.f32 %v300_v23, %v749_v38  ;;  %v846_v46 = vmul.f32 %v301_v25, %v753_v39  ;;  %v849_v47 = vmul.f32 %v302_v27, %v749_v38 }
  0x37   : > { %v275_v28 = vsub.f32 %v666_v55, %v273_v12  ;;  %v852_v48 = vmul.f32 %v303_v32, %v753_v39  ;;  %v855_v49 = vmul.f32 %v304_v33, %v749_v38 }
  0x39   : > { %v836_v43 = vrot.slane %v275_v28, %v247_v35  ;;  %v840_v44 = vrot.slane %v275_v28, %v251_v36  ;;  %v858_v35 = vmul.f32 %v305_v34, %v753_v39 }
  0x3b   : > { %v351_v36 = vadd.f32 %v836_v43, %v308_v56  ;;  %v352_v50 = vadd.f32 %v840_v44, %v309_v57  ;;  %v355_v51 = vadd.f32 %v836_v43, %v312_v58  ;;  %v356_v52 = vadd.f32 %v840_v44, %v313_v63 }
  0x3c   : > { %v353_v53 = vadd.f32 %v836_v43, %v310_v0  ;;  %v354_v54 = vadd.f32 %v840_v44, %v311_v1  ;;  %v357_v55 = vadd.f32 %v836_v43, %v314_v5  ;;  %v358_v59 = vadd.f32 %v840_v44, %v315_v6 }
  0x3d   : > { %v383_v60 = vmax.f32 %v351_v36, 0.0  ;;  %v384_v61 = vmax.f32 %v352_v50, 0.0  ;;  %v387_v62 = vmax.f32 %v355_v51, 0.0  ;;  %v388_v2 = vmax.f32 %v356_v52, 0.0 }
  0x3e   : > { %v385_v3 = vmax.f32 %v353_v53, 0.0  ;;  %v386_v56 = vmax.f32 %v354_v54, 0.0  ;;  %v389_v4 = vmax.f32 %v357_v55, 0.0  ;;  %v390_v57 = vmax.f32 %v358_v59, 0.0  ;;  %v306_v53 = vld [vmem:[%s745_s24 + $0xf0] sm:$0xff] }
  0x3f   : > { %v415_v9 = vmul.f32 %v384_v61, %v383_v60  ;;  %v417_v58 = vmul.f32 %v388_v2, %v387_v62  ;;  %v359_v63 = vadd.f32 %v836_v43, %v316_v7  ;;  %v360_v0 = vadd.f32 %v840_v44, %v317_v8 }
  0x40   : > { %v416_v10 = vmul.f32 %v386_v56, %v385_v3  ;;  %v418_v1 = vmul.f32 %v390_v57, %v389_v4  ;;  %v361_v5 = vadd.f32 %v836_v43, %v318_v13  ;;  %v362_v6 = vadd.f32 %v840_v44, %v319_v14 }
  0x41   : > { %v432_v11 = vsel %vm431_vm1, %v415_v9, 0.0  ;;  %v438_v12 = vsel %vm431_vm1, %v417_v58, 0.0  ;;  %v391_v16 = vmax.f32 %v359_v63, 0.0  ;;  %v392_v17 = vmax.f32 %v360_v0, 0.0 }
  0x42   : > { %433 = vadd.xlane.f32.xlu0 %v432_v11  ;;  %439 = vadd.xlane.f32.xlu1 %v438_v12  ;;  %v435_v18 = vsel %vm431_vm1, %v416_v10, 0.0  ;;  %v441_v7 = vsel %vm431_vm1, %v418_v1, 0.0  ;;  %v393_v8 = vmax.f32 %v361_v5, 0.0  ;;  %v394_v23 = vmax.f32 %v362_v6, 0.0 }
  0x43   : > { %v419_v25 = vmul.f32 %v392_v17, %v391_v16  ;;  %v363_v13 = vadd.f32 %v836_v43, %v796_v15  ;;  %v364_v14 = vadd.f32 %v840_v44, %v321_v19  ;;  %v365_v27 = vadd.f32 %v836_v43, %v322_v20 }
  0x44   : > { %v420_v28 = vmul.f32 %v394_v23, %v393_v8  ;;  %v366_v32 = vadd.f32 %v840_v44, %v804_v21  ;;  %v367_v33 = vadd.f32 %v836_v43, %v807_v22  ;;  %v368_v34 = vadd.f32 %v840_v44, %v325_v29 }
  0x45   : > { %v444_v36 = vsel %vm431_vm1, %v419_v25, 0.0  ;;  %v395_v50 = vmax.f32 %v363_v13, 0.0  ;;  %v396_v51 = vmax.f32 %v364_v14, 0.0  ;;  %v397_v52 = vmax.f32 %v365_v27, 0.0 }
  0x46   : > { %436 = vadd.xlane.f32.xlu0 %v435_v18  ;;  %442 = vadd.xlane.f32.xlu1 %v441_v7  ;;  %v447_v15 = vsel %vm431_vm1, %v420_v28, 0.0  ;;  %v398_v19 = vmax.f32 %v366_v32, 0.0  ;;  %v399_v20 = vmax.f32 %v367_v33, 0.0  ;;  %v400_v54 = vmax.f32 %v368_v34, 0.0 }
  0x47   : > { %v421_v21 = vmul.f32 %v396_v51, %v395_v50  ;;  %v369_v22 = vadd.f32 %v836_v43, %v814_v30  ;;  %v370_v29 = vadd.f32 %v840_v44, %v817_v31  ;;  %v371_v55 = vadd.f32 %v836_v43, %v823_v37  ;;  %v307_v30 = vld [vmem:[%s745_s24 + $0xf8] sm:$0xff] }
  0x48   : > { %v422_v59 = vmul.f32 %v398_v19, %v397_v52  ;;  %v372_v60 = vadd.f32 %v840_v44, %v826_v40  ;;  %v373_v61 = vadd.f32 %v836_v43, %v829_v41  ;;  %v338_v62 = vmul.f32 %v306_v53, %v749_v38 }
  0x49   : > { %v423_v2 = vmul.f32 %v400_v54, %v399_v20  ;;  %v401_v3 = vmax.f32 %v369_v22, 0.0  ;;  %v402_v56 = vmax.f32 %v370_v29, 0.0  ;;  %v403_v4 = vmax.f32 %v371_v55, 0.0 }
  0x4a   : > { %445 = vadd.xlane.f32.xlu0 %v444_v36  ;;  %448 = vadd.xlane.f32.xlu1 %v447_v15  ;;  %v450_v31 = vsel %vm431_vm1, %v421_v21, 0.0  ;;  %v453_v37 = vsel %vm431_vm1, %v422_v59, 0.0  ;;  %v404_v57 = vmax.f32 %v372_v60, 0.0  ;;  %v374_v40 = vadd.f32 %v840_v44, %v832_v42 }
  0x4b   : > { %v424_v9 = vmul.f32 %v402_v56, %v401_v3  ;;  %v405_v58 = vmax.f32 %v373_v61, 0.0  ;;  %v375_v38 = vadd.f32 %v836_v43, %v843_v45  ;;  %v376_v41 = vadd.f32 %v840_v44, %v846_v46 }
  0x4c   : > { %v406_v63 = vmax.f32 %v374_v40, 0.0  ;;  %v377_v0 = vadd.f32 %v836_v43, %v849_v47  ;;  %v378_v10 = vadd.f32 %v840_v44, %v852_v48  ;;  %v339_v1 = vmul.f32 %v307_v30, %v753_v39 }
  0x4d   : > { %v456_v5 = vsel %vm431_vm1, %v423_v2, 0.0  ;;  %v459_v42 = vsel %vm431_vm1, %v424_v9, 0.0  ;;  %v425_v6 = vmul.f32 %v404_v57, %v403_v4  ;;  %v407_v11 = vmax.f32 %v375_v38, 0.0 }
  0x4e   : > { %451 = vadd.xlane.f32.xlu0 %v450_v31  ;;  %454 = vadd.xlane.f32.xlu1 %v453_v37  ;;  %v426_v45 = vmul.f32 %v406_v63, %v405_v58  ;;  %v408_v12 = vmax.f32 %v376_v41, 0.0  ;;  %v379_v46 = vadd.f32 %v836_v43, %v855_v49  ;;  %v409_v16 = vmax.f32 %v377_v0, 0.0 }
  0x4f   : > { %v410_v47 = vmax.f32 %v378_v10, 0.0  ;;  %v380_v48 = vadd.f32 %v840_v44, %v858_v35  ;;  %v381_v39 = vadd.f32 %v836_v43, %v338_v62  ;;  %v382_v17 = vadd.f32 %v840_v44, %v339_v1 }
  0x50   : > { %v462_v18 = vsel %vm431_vm1, %v425_v6, 0.0  ;;  %v465_v7 = vsel %vm431_vm1, %v426_v45, 0.0  ;;  %v427_v8 = vmul.f32 %v408_v12, %v407_v11  ;;  %v411_v23 = vmax.f32 %v379_v46, 0.0 }
  0x51   : > { %v428_v25 = vmul.f32 %v410_v47, %v409_v16  ;;  %v412_v13 = vmax.f32 %v380_v48, 0.0  ;;  %v413_v49 = vmax.f32 %v381_v39, 0.0  ;;  %v414_v14 = vmax.f32 %v382_v17, 0.0 }
  0x52   : > { %457 = vadd.xlane.f32.xlu0 %v456_v5  ;;  %460 = vadd.xlane.f32.xlu1 %v459_v42  ;;  %v468_v35 = vsel %vm431_vm1, %v427_v8, 0.0  ;;  %v928_v33 = vand.u32 127, %v228_v24 }
  0x53   : > { %v471_v43 = vsel %vm431_vm1, %v428_v25, 0.0  ;;  %v429_v27 = vmul.f32 %v412_v13, %v411_v23  ;;  %v430_v44 = vmul.f32 %v414_v14, %v413_v49 }
  0x54   : > { %v502_v34 = vadd.s32 4294967288, %v928_v33  ;;  %v516_v36 = vadd.s32 4294967272, %v928_v33  ;;  %v509_v50 = vadd.s32 4294967280, %v928_v33  ;;  %v523_v53 = vadd.s32 4294967264, %v928_v33 }
  0x55   : > { %v474_v28 = vsel %vm431_vm1, %v429_v27, 0.0  ;;  %v477_v32 = vsel %vm431_vm1, %v430_v44, 0.0  ;;  %v500_v15 = vsub.s32 %v928_v33, %v730_v26  ;;  %v530_v54 = vadd.s32 4294967256, %v928_v33 }
  0x56   : > { %463 = vadd.xlane.f32.xlu0 %v462_v18  ;;  %466 = vadd.xlane.f32.xlu1 %v465_v7  ;;  %v505_v19 = vsub.s32 %v502_v34, %v730_v26  ;;  %v519_v20 = vsub.s32 %v516_v36, %v730_v26  ;;  %v512_v24 = vsub.s32 %v509_v50, %v730_v26  ;;  %v537_v61 = vadd.s32 4294967248, %v928_v33 }
  0x57   : > { %v526_v29 = vsub.s32 %v523_v53, %v730_v26  ;;  %v533_v2 = vsub.s32 %v530_v54, %v730_v26  ;;  %v544_v3 = vadd.s32 4294967240, %v928_v33  ;;  %v551_v9 = vadd.s32 4294967232, %v928_v33 }
  0x58   : > { %v540_v40 = vsub.s32 %v537_v61, %v730_v26  ;;  %v558_v41 = vadd.s32 4294967224, %v928_v33  ;;  %v565_v42 = vadd.s32 4294967216, %v928_v33  ;;  %v572_v12 = vadd.s32 4294967208, %v928_v33 }
  0x59   : > { %v547_v38 = vsub.s32 %v544_v3, %v730_v26  ;;  %v554_v5 = vsub.s32 %v551_v9, %v730_v26  ;;  %v579_v17 = vadd.s32 4294967200, %v928_v33  ;;  %v586_v23 = vadd.s32 4294967192, %v928_v33 }
  0x5a   : > { %469 = vadd.xlane.f32.xlu0 %v468_v35  ;;  %472 = vadd.xlane.f32.xlu1 %v471_v43  ;;  %v561_v11 = vsub.s32 %v558_v41, %v730_v26  ;;  %v568_v39 = vsub.s32 %v565_v42, %v730_v26  ;;  %v575_v8 = vsub.s32 %v572_v12, %v730_v26  ;;  %v593_v43 = vadd.s32 4294967184, %v928_v33 }
  0x5b   : > { %v582_v35 = vsub.s32 %v579_v17, %v730_v26  ;;  %v600_v27 = vadd.s32 4294967176, %v928_v33 }
  0x5d   : > { %v603_v53 = vsub.s32 %v600_v27, %v730_v26 }
  0x5e   : > { %475 = vadd.xlane.f32.xlu0 %v474_v28  ;;  %478 = vadd.xlane.f32.xlu1 %v477_v32  ;;  %v589_v32 = vsub.s32 %v586_v23, %v730_v26 }
  0xcf   : > { %v434_v51 = vpop.xlane.xlu0 %433  ;;  %v440_v52 = vpop.xlane.xlu1 %439 }
  0xd0   : > { %v501_v55 = vrot.slane %v434_v51, %v500_v15  ;;  %v513_v62 = vrot.slane %v440_v52, %v512_v24  ;;  %v596_v52 = vsub.s32 %v593_v43, %v730_v26 }
  0xd3   : > { %v437_v21 = vpop.xlane.xlu0 %436  ;;  %v443_v22 = vpop.xlane.xlu1 %442 }
  0xd4   : > { %v506_v59 = vrot.slane %v437_v21, %v505_v19  ;;  %v520_v60 = vrot.slane %v443_v22, %v519_v20 }
  0xd6   : > { %v508_v56 = vsel %vm507_vm2, %v506_v59, %v501_v55 }
  0xd7   : > { %v515_v4 = vsel %vm514_vm3, %v513_v62, %v508_v56  ;;  %v446_v30 = vpop.xlane.xlu0 %445  ;;  %v449_v31 = vpop.xlane.xlu1 %448 }
  0xd8   : > { %v522_v37 = vsel %vm521_vm4, %v520_v60, %v515_v4  ;;  %v527_v57 = vrot.slane %v446_v30, %v526_v29  ;;  %v534_v58 = vrot.slane %v449_v31, %v533_v2 }
  0xda   : > { %v529_v63 = vsel %vm528_vm5, %v527_v57, %v522_v37 }
  0xdb   : > { %v452_v0 = vpop.xlane.xlu0 %451  ;;  %v455_v10 = vpop.xlane.xlu1 %454  ;;  %v536_v6 = vsel %vm535_vm6, %v534_v58, %v529_v63 }
  0xdc   : > { %v541_v1 = vrot.slane %v452_v0, %v540_v40  ;;  %v548_v45 = vrot.slane %v455_v10, %v547_v38 }
  0xde   : > { %v543_v46 = vsel %vm542_vm7, %v541_v1, %v536_v6 }
  0xdf   : > { %v458_v16 = vpop.xlane.xlu0 %457  ;;  %v461_v47 = vpop.xlane.xlu1 %460  ;;  %v550_v18 = vsel %vm549_vm8, %v548_v45, %v543_v46 }
  0xe0   : > { %v555_v48 = vrot.slane %v458_v16, %v554_v5  ;;  %v562_v7 = vrot.slane %v461_v47, %v561_v11 }
  0xe2   : > { %v557_v25 = vsel %vm556_vm9, %v555_v48, %v550_v18 }
  0xe3   : > { %v464_v13 = vpop.xlane.xlu0 %463  ;;  %v467_v49 = vpop.xlane.xlu1 %466  ;;  %v564_v44 = vsel %vm563_vm10, %v562_v7, %v557_v25 }
  0xe4   : > { %v569_v14 = vrot.slane %v464_v13, %v568_v39  ;;  %v576_v28 = vrot.slane %v467_v49, %v575_v8 }
  0xe6   : > { %v571_v34 = vsel %vm570_vm11, %v569_v14, %v564_v44 }
  0xe7   : > { %v470_v36 = vpop.xlane.xlu0 %469  ;;  %v473_v50 = vpop.xlane.xlu1 %472  ;;  %v578_v15 = vsel %vm577_vm12, %v576_v28, %v571_v34 }
  0xe8   : > { %v583_v51 = vrot.slane %v470_v36, %v582_v35  ;;  %v590_v19 = vrot.slane %v473_v50, %v589_v32 }
  0xea   : > { %v585_v20 = vsel %vm584_vm13, %v583_v51, %v578_v15 }
  0xeb   : > { %v476_v33 = vpop.xlane.xlu0 %475  ;;  %v479_v24 = vpop.xlane.xlu1 %478  ;;  %v592_v22 = vsel %vm591_vm14, %v590_v19, %v585_v20 }
  0xec   : > { %v597_v54 = vrot.slane %v476_v33, %v596_v52  ;;  %v604_v21 = vrot.slane %v479_v24, %v603_v53 }
  0xee   : > { %v599_v29 = vsel %vm598_vm15, %v597_v54, %v592_v22 }
  0xef   : > { %v606_v55 = vsel %vm605_vm0, %v604_v21, %v599_v29 }
  0xf0   : > { %608 = vst [vmem:[%s171_s29] sm:$0x1] %v606_v55 }
  0xf1 PF: > { %s13_s12 = sadd.s32 1, %s689_s12  }
  0xf2   : > { %p10_p5 = scmp.ge.s32.totalorder %s13_s12, 4  }
  0xf4   :  { %12 = sbr.rel (!%p10_p5) target bundleno = 1 (0x1), region = 63 }

// kernel: two_tower_forward.3
= control target key start
LH: loop header
LB: loop body
LE: loop exit
PB: predicated region body
PF: predicated region fallthrough
CT: control target
= control target key end

     0   :  { %s3989_s18 = smov 0   ;;  %s4832_s0 = inlined_call_operand.vmem [shape: f32[256,32], index: 0, kind: input, shape index: {}]   ;;  %s4833_s1 = inlined_call_operand.vmem [shape: f32[256,32], index: 1, kind: input, shape index: {}]   ;;  %s4834_s2 = inlined_call_operand.vmem [shape: f32[32,128], index: 2, kind: input, shape index: {}]   ;;  %s4835_s3 = inlined_call_operand.vmem [shape: f32[32,128], index: 3, kind: input, shape index: {}]   ;;  %s4836_s4 = inlined_call_operand.vmem [shape: f32[256,256], index: 4, kind: output, shape index: {0}]   ;;  %s4837_s5 = inlined_call_operand.vmem [shape: f32[2,2,256], index: 5, kind: output, shape index: {1}]  }
   0x1 LB: > { %s3995_s19 = sadd.s32 4294967295, %s3957_s18   ;;  %p3047_p0 = scmp.ge.s32.totalorder %s3957_s18, 1  ;;  %s3957_s18 = sphi %s3989_s18, %s16_s18  }
   0x2   : > { %p202_p1 = scmp.lt.s32.totalorder %s3957_s18, 3 }
   0x4   : > { %p203_p2 = pnand %p3047_p0, %p202_p1 }
   0x6   : > { %206 = sbr.rel (%p203_p2) target bundleno = 499 (0x1f3), region = 36 }
   0xd   : > { %v412_v0 = vld [vmem:[%s4834_s2] sm:$0xff]  ;;  %v413_v1 = vld [vmem:[%s4834_s2 + $0x8] sm:$0xff]  ;;  %s3048_s26 = sshll.u32 %s3995_s19, 4  ;;  %s3057_s27 = sshll.u32 %s3995_s19, 7  ;;  %v298_v3 = vlaneseq  ;;  %vm416_vm0 = vcmask 261120   ;;  %v4016_v8 = vld [vmem:[%s4834_s2 + $0x10] sm:$0xff] }
   0xe   : > { %v1595_v2 = vld [vmem:[%s4835_s3] sm:$0xff]  ;;  %v466_v4 = vand.u32 4294901760, %v412_v0  ;;  %v469_v5 = vand.u32 4294901760, %v413_v1  ;;  %v1596_v6 = vld [vmem:[%s4835_s3 + $0x8] sm:$0xff]  ;;  %v4021_v9 = vld [vmem:[%s4834_s2 + $0x18] sm:$0xff]  ;;  %v472_v11 = vand.u32 4294901760, %v4016_v8  ;;  %v4035_v15 = vstv %s3057_s27 }
   0xf   : > { %v1648_v7 = vand.u32 4294901760, %v1595_v2  ;;  %v1651_v10 = vand.u32 4294901760, %v1596_v6  ;;  %v475_v12 = vand.u32 4294901760, %v4021_v9  ;;  %v4028_v13 = vld [vmem:[%s4835_s3 + $0x10] sm:$0xff]  ;;  %v4033_v14 = vld [vmem:[%s4835_s3 + $0x18] sm:$0xff]  ;;  %p242_p3 = scmp.lt.s32.totalorder %s3048_s26, 31 }
  0x10   : > { %v4037_v16 = vpack.c.bf16 %v469_v5, %v466_v4  ;;  %v4857_v17 = vand.u32 4294901760, %v4028_v13  ;;  %v4856_v18 = vand.u32 4294901760, %v4033_v14  ;;  %v4041_v19 = vshrl.u32 %v298_v3, 7  ;;  %p260_p4 = scmp.lt.s32.totalorder %s3995_s19, 1 }
  0x11   : > { %v4043_v20 = vpack.c.bf16 %v1651_v10, %v1648_v7  ;;  %v4049_v21 = vpack.c.bf16 %v475_v12, %v472_v11  ;;  %s5086_s26 = smov (!%p242_p3, %s3048_s26), 31  ;;  %v4053_v22 = vsub.f32 %v412_v0, %v466_v4  ;;  %v4055_v23 = vsub.f32 %v413_v1, %v469_v5 }
  0x12   : > { %3688 = vmatprep.subr.bf16.mxu0 %v4037_v16  ;;  %v4062_v24 = vpack.c.bf16 %v4856_v18, %v4857_v17  ;;  %v316_v25 = vadd.s32 %v4035_v15, %v4041_v19  ;;  %v4066_v26 = vsub.f32 %v1595_v2, %v1648_v7  ;;  %v4068_v27 = vsub.f32 %v1596_v6, %v1651_v10  ;;  %s3049_s13 = sshll.u32 %s5086_s26, 3  ;;  %s3061_s22 = sshll.u32 %s5086_s26, 4 }
  0x13   : > { %4958 = vst [vmem:[#allocation2_spill] sm:$0xff] %v4053_v22  ;;  %4959 = vst [vmem:[#allocation3_spill] sm:$0xff] %v4055_v23  ;;  %3736 = vmatprep.subr.bf16.mxu1 %v4043_v20  ;;  %3690 = vmatpush3.bf16.msra.mxu0 %v4037_v16  ;;  %v4853_v28 = vand.u32 4294901760, %v4053_v22  ;;  %v4852_v29 = vand.u32 4294901760, %v4055_v23  ;;  %v300_v30 = vadd.s32 8, %v4041_v19  ;;  %v301_v31 = vadd.s32 16, %v4041_v19  ;;  %s4082_s16 = scalar_lea.vmem %s4832_s0, %s3049_s13  ;;  %s4098_s21 = scalar_lea.vmem %s4833_s1, %s3049_s13 }
  0x14   : > { %4960 = vst [vmem:[#allocation4_spill] sm:$0xff] %v4062_v24  ;;  %4961 = vst [vmem:[#allocation5_spill] sm:$0xff] %v4066_v26  ;;  %3738 = vmatpush3.bf16.msra.mxu1 %v4043_v20  ;;  %3692 = vmatprep.subr.bf16.mxu0 %v4049_v21  ;;  %vm332_vm1 = vcmp.lt.s32.totalorder %v316_v25, 200  ;;  %v4851_v32 = vand.u32 4294901760, %v4066_v26  ;;  %v4848_v33 = vand.u32 4294901760, %v4068_v27  ;;  %v302_v34 = vadd.s32 24, %v4041_v19  ;;  %s4790_s25 = scalar_lea.vmem %s4836_s4, %s3061_s22 }
  0x15   : > { %4962 = vst [vmem:[#allocation6_spill] sm:$0xff] %v4068_v27  ;;  %3740 = vmatprep.subr.bf16.mxu1 %v4062_v24  ;;  %v265_v35 = vld [vmem:[%s4082_s16] sm:$0xff]  ;;  %v698_v36 = vsub.f32 %v4053_v22, %v4853_v28  ;;  %v705_v37 = vsub.f32 %v4055_v23, %v4852_v29  ;;  %v317_v38 = vadd.s32 %v4035_v15, %v300_v30  ;;  %v266_v49 = vld [vmem:[%s4082_s16 + $0x8] sm:$0xff]  ;;  %v267_v55 = vld [vmem:[%s4082_s16 + $0x10] sm:$0xff]  ;;  %s5088_s19 = smov (!%p260_p4, %s3995_s19), 1 }
  0x16   : > { %v318_v39 = vadd.s32 %v4035_v15, %v301_v31  ;;  %v380_v40 = vsel %vm332_vm1, %v265_v35, 0.0  ;;  %v281_v41 = vld [vmem:[%s4098_s21] sm:$0xff]  ;;  %v1880_v42 = vsub.f32 %v4066_v26, %v4851_v32  ;;  %v1887_v43 = vsub.f32 %v4068_v27, %v4848_v33  ;;  %v282_v50 = vld [vmem:[%s4098_s21 + $0x8] sm:$0xff]  ;;  %v283_v62 = vld [vmem:[%s4098_s21 + $0x10] sm:$0xff]  ;;  %s3062_s26 = sshll.u32 %s5088_s19, 2 }
  0x17   : > { %v319_v44 = vadd.s32 %v4035_v15, %v302_v34  ;;  %3694 = vmatpush3.bf16.msra.mxu0 %v4049_v21  ;;  %v418_v45 = vsel %vm416_vm0, %v380_v40, 0  ;;  %v699_v46 = vand.u32 4294901760, %v698_v36  ;;  %v706_v47 = vand.u32 4294901760, %v705_v37  ;;  %v268_v7 = vld [vmem:[%s4082_s16 + $0x18] sm:$0xff]  ;;  %v289_v28 = vld [vmem:[%s4098_s21 + $0x40] sm:$0xff]  ;;  %s264_s29 = scalar_lea.vmem %s4837_s5, %s3062_s26 }
  0x18   : > { %v396_v48 = vsel %vm332_vm1, %v281_v41, 0.0  ;;  %3742 = vmatpush3.bf16.msra.mxu1 %v4062_v24  ;;  %v4117_v51 = vand.u32 4294901760, %v418_v45  ;;  %v1881_v53 = vand.u32 4294901760, %v1880_v42  ;;  %v1888_v54 = vand.u32 4294901760, %v1887_v43  ;;  %v284_v41 = vld [vmem:[%s4098_s21 + $0x18] sm:$0xff] }
  0x19   : > { %v1600_v52 = vsel %vm416_vm0, %v396_v48, 0  ;;  %v4121_v56 = vpack.c.bf16 %v706_v47, %v699_v46  ;;  %vm333_vm2 = vcmp.lt.s32.totalorder %v317_v38, 200  ;;  %vm334_vm3 = vcmp.lt.s32.totalorder %v318_v39, 200 }
  0x1a   : > { %v4123_v57 = vand.u32 4294901760, %v1600_v52  ;;  %v4126_v58 = vsub.f32 %v418_v45, %v4117_v51  ;;  %v3743_v59 = vpack.c.bf16 %v1888_v54, %v1881_v53  ;;  %v381_v60 = vsel %vm333_vm2, %v266_v49, 0.0 }
  0x1b   : > { %v397_v61 = vsel %vm333_vm2, %v282_v50, 0.0  ;;  %3696 = vmatprep.subr.bf16.mxu0 %v4121_v56  ;;  %v421_v0 = vsel %vm416_vm0, %v381_v60, 0  ;;  %v382_v2 = vsel %vm334_vm3, %v267_v55, 0.0  ;;  %v398_v30 = vsel %vm334_vm3, %v283_v62, 0.0 }
  0x1c   : > { %v4131_v63 = vsub.f32 %v1600_v52, %v4123_v57  ;;  %v1603_v1 = vsel %vm416_vm0, %v397_v61, 0  ;;  %v4846_v3 = vand.u32 4294901760, %v4126_v58  ;;  %3744 = vmatprep.subr.bf16.mxu1 %v3743_v59  ;;  %v4137_v4 = vand.u32 4294901760, %v421_v0 }
  0x1d   : > { %v4139_v5 = vand.u32 4294901760, %v1603_v1  ;;  %v424_v6 = vsel %vm416_vm0, %v382_v2, 0  ;;  %vm335_vm4 = vcmp.lt.s32.totalorder %v319_v44, 200  ;;  %v1606_v36 = vsel %vm416_vm0, %v398_v30, 0  ;;  %v269_v44 = vld [vmem:[%s4082_s16 + $0x20] sm:$0xff] }
  0x1e   : > { %v4844_v10 = vand.u32 4294901760, %v4131_v63  ;;  %v4144_v25 = vand.u32 4294901760, %v424_v6  ;;  %v537_v31 = vsub.f32 %v4126_v58, %v4846_v3  ;;  %v4151_v34 = vsub.f32 %v421_v0, %v4137_v4  ;;  %v285_v30 = vld [vmem:[%s4098_s21 + $0x20] sm:$0xff] }
  0x1f   : > { %v4154_v35 = vsub.f32 %v1603_v1, %v4139_v5  ;;  %v4163_v39 = vand.u32 4294901760, %v1606_v36  ;;  %v383_v40 = vsel %vm335_vm4, %v268_v7, 0.0  ;;  %v399_v54 = vsel %vm335_vm4, %v284_v41, 0.0 }
  0x20   : > { %v1719_v37 = vsub.f32 %v4131_v63, %v4844_v10  ;;  %v4161_v38 = vsub.f32 %v424_v6, %v4144_v25  ;;  %v538_v42 = vand.u32 4294901760, %v537_v31  ;;  %v4843_v43 = vand.u32 4294901760, %v4151_v34 }
  0x21   : > { %v4841_v45 = vand.u32 4294901760, %v4154_v35  ;;  %v427_v46 = vsel %vm416_vm0, %v383_v40, 0  ;;  %v4172_v49 = vsub.f32 %v1606_v36, %v4163_v39  ;;  %v303_v55 = vadd.s32 32, %v4041_v19 }
  0x22   : > { %v1720_v47 = vand.u32 4294901760, %v1719_v37  ;;  %v4842_v48 = vand.u32 4294901760, %v4161_v38  ;;  %v4174_v50 = vand.u32 4294901760, %v427_v46  ;;  %3311 = vmatprep.mubr.f32.mxu0 %v538_v42  ;;  %v547_v52 = vsub.f32 %v4151_v34, %v4843_v43 }
  0x23   : > { %4963 = vst [vmem:[#allocation7_spill] sm:$0xff] %v4172_v49  ;;  %v1729_v53 = vsub.f32 %v4154_v35, %v4841_v45  ;;  %v4839_v61 = vand.u32 4294901760, %v4172_v49  ;;  %v1609_v0 = vsel %vm416_vm0, %v399_v54, 0  ;;  %v320_v7 = vadd.s32 %v4035_v15, %v303_v55 }
  0x24   : > { %3503 = vmatprep.mubr.f32.mxu1 %v1720_v47  ;;  %v557_v60 = vsub.f32 %v4161_v38, %v4842_v48  ;;  %v4189_v62 = vsub.f32 %v427_v46, %v4174_v50  ;;  %v548_v1 = vand.u32 4294901760, %v547_v52  ;;  %v4192_v6 = vand.u32 4294901760, %v1609_v0  ;;  %v288_v48 = vld [vmem:[%s4098_s21 + $0x38] sm:$0xff] }
  0x25   : > { %v1730_v2 = vand.u32 4294901760, %v1729_v53  ;;  %v1739_v36 = vsub.f32 %v4172_v49, %v4839_v61  ;;  %v304_v40 = vadd.s32 40, %v4041_v19  ;;  %vm336_vm5 = vcmp.lt.s32.totalorder %v320_v7, 200 }
  0x26   : > { %4964 = vst [vmem:[#allocation8_spill] sm:$0xff] %v4189_v62  ;;  %v558_v31 = vand.u32 4294901760, %v557_v60  ;;  %v4838_v37 = vand.u32 4294901760, %v4189_v62  ;;  %3312 = vmatmul.mubr.f32.vlgmr.msra.gmra.mrb[0].mxu0 %v548_v1  ;;  %v4203_v41 = vsub.f32 %v1609_v0, %v4192_v6  ;;  %v305_v42 = vadd.s32 48, %v4041_v19  ;;  %v270_v1 = vld [vmem:[%s4082_s16 + $0x28] sm:$0xff] }
  0x27   : > { %3504 = vmatmul.mubr.f32.vlgmr.msra.gmra.mrb[0].mxu1 %v1730_v2  ;;  %v306_v46 = vadd.s32 56, %v4041_v19  ;;  %3698 = vmatpush3.bf16.msra.mxu0 %v4121_v56  ;;  %v1740_v47 = vand.u32 4294901760, %v1739_v36  ;;  %v384_v53 = vsel %vm336_vm5, %v269_v44, 0.0  ;;  %v400_v54 = vsel %vm336_vm5, %v285_v30, 0.0  ;;  %v286_v56 = vld [vmem:[%s4098_s21 + $0x28] sm:$0xff] }
  0x28   : > { %4965 = vst [vmem:[#allocation9_spill] sm:$0xff] %v4203_v41  ;;  %3746 = vmatpush3.bf16.msra.mxu1 %v3743_v59  ;;  %v567_v52 = vsub.f32 %v4189_v62, %v4838_v37  ;;  %3314 = vmatprep.mubr.f32.mxu0 %v558_v31  ;;  %v4840_v55 = vand.u32 4294901760, %v4203_v41  ;;  %v430_v60 = vsel %vm416_vm0, %v384_v53, 0  ;;  %v1612_v0 = vsel %vm416_vm0, %v400_v54, 0  ;;  %v271_v54 = vld [vmem:[%s4082_s16 + $0x30] sm:$0xff] }
  0x29   : > { %v321_v2 = vadd.s32 %v4035_v15, %v304_v40  ;;  %3506 = vmatprep.mubr.f32.mxu1 %v1740_v47  ;;  %v4217_v7 = vand.u32 4294901760, %v430_v60  ;;  %v4219_v36 = vand.u32 4294901760, %v1612_v0  ;;  %v322_v44 = vadd.s32 %v4035_v15, %v305_v42  ;;  %v287_v37 = vld [vmem:[%s4098_s21 + $0x30] sm:$0xff] }
  0x2a   : > { %v568_v59 = vand.u32 4294901760, %v567_v52  ;;  %v1749_v30 = vsub.f32 %v4203_v41, %v4840_v55  ;;  %v323_v31 = vadd.s32 %v4035_v15, %v306_v46  ;;  %v307_v40 = vadd.s32 64, %v4041_v19 }
  0x2b   : > { %vm337_vm6 = vcmp.lt.s32.totalorder %v321_v2, 200  ;;  %v4228_v47 = vsub.f32 %v430_v60, %v4217_v7  ;;  %v4231_v52 = vsub.f32 %v1612_v0, %v4219_v36  ;;  %vm338_vm7 = vcmp.lt.s32.totalorder %v322_v44, 200  ;;  %v272_v0 = vld [vmem:[%s4082_s16 + $0x38] sm:$0xff] }
  0x2c   : > { %3315 = vmatmul.mubr.f32.gmra.mrb[2].mxu0 %v568_v59  ;;  %v385_v53 = vsel %vm337_vm6, %v270_v1, 0.0  ;;  %v401_v42 = vsel %vm337_vm6, %v286_v56, 0.0  ;;  %v1750_v61 = vand.u32 4294901760, %v1749_v30  ;;  %v386_v1 = vsel %vm338_vm7, %v271_v54, 0.0 }
  0x2d   : > { %4966 = vst [vmem:[#allocation10_spill] sm:$0xff] %v4228_v47  ;;  %4967 = vst [vmem:[#allocation11_spill] sm:$0xff] %v4231_v52  ;;  %v433_v2 = vsel %vm416_vm0, %v385_v53, 0  ;;  %v1615_v46 = vsel %vm416_vm0, %v401_v42, 0  ;;  %v4845_v55 = vand.u32 4294901760, %v4228_v47  ;;  %v4847_v59 = vand.u32 4294901760, %v4231_v52 }
  0x2e   : > { %v4239_v45 = vand.u32 4294901760, %v433_v2  ;;  %v4241_v60 = vand.u32 4294901760, %v1615_v46  ;;  %3507 = vmatmul.mubr.f32.gmra.mrb[2].mxu1 %v1750_v61  ;;  %v402_v56 = vsel %vm338_vm7, %v287_v37, 0.0  ;;  %vm339_vm8 = vcmp.lt.s32.totalorder %v323_v31, 200 }
  0x2f   : > { %v324_v30 = vadd.s32 %v4035_v15, %v307_v40  ;;  %v577_v44 = vsub.f32 %v4228_v47, %v4845_v55  ;;  %v1759_v53 = vsub.f32 %v4231_v52, %v4847_v59  ;;  %v436_v61 = vsel %vm416_vm0, %v386_v1, 0  ;;  %v292_v47 = vld [vmem:[%s4098_s21 + $0x58] sm:$0xff] }
  0x30   : > { %v4253_v42 = vsub.f32 %v433_v2, %v4239_v45  ;;  %v4256_v43 = vsub.f32 %v1615_v46, %v4241_v60  ;;  %v1618_v37 = vsel %vm416_vm0, %v402_v56, 0  ;;  %v387_v31 = vsel %vm339_vm8, %v272_v0, 0.0 }
  0x31   : > { %v403_v40 = vsel %vm339_vm8, %v288_v48, 0.0  ;;  %v578_v54 = vand.u32 4294901760, %v577_v44  ;;  %v1760_v10 = vand.u32 4294901760, %v1759_v53  ;;  %v4262_v59 = vand.u32 4294901760, %v436_v61  ;;  %v273_v44 = vld [vmem:[%s4082_s16 + $0x40] sm:$0xff] }
  0x32   : > { %4968 = vst [vmem:[#allocation12_spill] sm:$0xff] %v4253_v42  ;;  %4969 = vst [vmem:[#allocation13_spill] sm:$0xff] %v4256_v43  ;;  %v4850_v55 = vand.u32 4294901760, %v4253_v42  ;;  %v4849_v3 = vand.u32 4294901760, %v4256_v43  ;;  %v4264_v2 = vand.u32 4294901760, %v1618_v37  ;;  %v439_v46 = vsel %vm416_vm0, %v387_v31, 0 }
  0x33   : > { %v1621_v33 = vsel %vm416_vm0, %v403_v40, 0  ;;  %3317 = vmatprep.mubr.f32.mxu0 %v578_v54  ;;  %3509 = vmatprep.mubr.f32.mxu1 %v1760_v10  ;;  %v4274_v1 = vand.u32 4294901760, %v439_v46  ;;  %v4280_v53 = vsub.f32 %v436_v61, %v4262_v59  ;;  %vm340_vm9 = vcmp.lt.s32.totalorder %v324_v30, 200 }
  0x34   : > { %v587_v48 = vsub.f32 %v4253_v42, %v4850_v55  ;;  %v1769_v0 = vsub.f32 %v4256_v43, %v4849_v3  ;;  %v4276_v56 = vand.u32 4294901760, %v1621_v33  ;;  %v4283_v31 = vsub.f32 %v1618_v37, %v4264_v2 }
  0x35   : > { %4970 = vst [vmem:[#allocation14_spill] sm:$0xff] %v4280_v53  ;;  %v4288_v10 = vsub.f32 %v4016_v8, %v472_v11  ;;  %v4291_v3 = vsub.f32 %v439_v46, %v4274_v1  ;;  %v4854_v61 = vand.u32 4294901760, %v4280_v53  ;;  %v388_v37 = vsel %vm340_vm9, %v273_v44, 0.0 }
  0x36   : > { %4971 = vst [vmem:[#allocation15_spill] sm:$0xff] %v4283_v31  ;;  %v588_v40 = vand.u32 4294901760, %v587_v48  ;;  %v1770_v54 = vand.u32 4294901760, %v1769_v0  ;;  %v4294_v55 = vsub.f32 %v1621_v33, %v4276_v56  ;;  %v4855_v32 = vand.u32 4294901760, %v4283_v31 }
  0x37   : > { %4972 = vst [vmem:[#allocation16_spill] sm:$0xff] %v4291_v3  ;;  %v4860_v29 = vand.u32 4294901760, %v4288_v10  ;;  %v4861_v8 = vand.u32 4294901760, %v4291_v3  ;;  %v442_v46 = vsel %vm416_vm0, %v388_v37, 0  ;;  %v4307_v33 = vsub.f32 %v4021_v9, %v475_v12 }
  0x38   : > { %4973 = vst [vmem:[#allocation17_spill] sm:$0xff] %v4294_v55  ;;  %3318 = vmatmul.mubr.f32.gmra.mrb[4].mxu0 %v588_v40  ;;  %3510 = vmatmul.mubr.f32.gmra.mrb[4].mxu1 %v1770_v54  ;;  %v4864_v11 = vand.u32 4294901760, %v4294_v55  ;;  %v597_v48 = vsub.f32 %v4280_v53, %v4854_v61  ;;  %v1779_v0 = vsub.f32 %v4283_v31, %v4855_v32  ;;  %v4315_v44 = vand.u32 4294901760, %v442_v46 }
  0x39   : > { %v712_v40 = vsub.f32 %v4288_v10, %v4860_v29  ;;  %v607_v54 = vsub.f32 %v4291_v3, %v4861_v8  ;;  %v4865_v12 = vand.u32 4294901760, %v4307_v33  ;;  %v404_v37 = vsel %vm340_vm9, %v289_v28, 0.0 }
  0x3a   : > { %v1789_v9 = vsub.f32 %v4294_v55, %v4864_v11  ;;  %v598_v61 = vand.u32 4294901760, %v597_v48  ;;  %v1780_v32 = vand.u32 4294901760, %v1779_v0  ;;  %v4329_v18 = vsub.f32 %v442_v46, %v4315_v44 }
  0x3b   : > { %v713_v17 = vand.u32 4294901760, %v712_v40  ;;  %v608_v31 = vand.u32 4294901760, %v607_v54  ;;  %v719_v8 = vsub.f32 %v4307_v33, %v4865_v12  ;;  %v1624_v3 = vsel %vm416_vm0, %v404_v37, 0 }
  0x3c   : > { %4974 = vst [vmem:[#allocation18_spill] sm:$0xff] %v4329_v18  ;;  %v1790_v29 = vand.u32 4294901760, %v1789_v9  ;;  %3320 = vmatprep.mubr.f32.mxu0 %v598_v61  ;;  %3512 = vmatprep.mubr.f32.mxu1 %v1780_v32  ;;  %v4868_v30 = vand.u32 4294901760, %v4329_v18  ;;  %v4336_v28 = vand.u32 4294901760, %v1624_v3  ;;  %v4975_v48 = vand.u32 4294901760, %v4028_v13 }
  0x3d   : > { %v4976_v0 = vand.u32 4294901760, %v4033_v14  ;;  %3321 = vmatmul.mubr.f32.gmra.mrb[6].mxu0 %v608_v31  ;;  %v720_v54 = vand.u32 4294901760, %v719_v8  ;;  %v308_v32 = vadd.s32 72, %v4041_v19  ;;  %v309_v61 = vadd.s32 80, %v4041_v19  ;;  %v274_v8 = vld [vmem:[%s4082_s16 + $0x48] sm:$0xff] }
  0x3e   : > { %v4341_v46 = vsub.f32 %v4028_v13, %v4975_v48  ;;  %3513 = vmatmul.mubr.f32.gmra.mrb[6].mxu1 %v1790_v29  ;;  %v310_v9 = vadd.s32 88, %v4041_v19  ;;  %v617_v13 = vsub.f32 %v4329_v18, %v4868_v30  ;;  %v4355_v37 = vsub.f32 %v1624_v3, %v4336_v28  ;;  %v291_v18 = vld [vmem:[%s4098_s21 + $0x50] sm:$0xff] }
  0x3f   : > { %v4346_v40 = vsub.f32 %v4033_v14, %v4976_v0  ;;  %v3699_v31 = vpack.c.bf16 %v720_v54, %v713_v17  ;;  %v325_v48 = vadd.s32 %v4035_v15, %v308_v32  ;;  %v326_v0 = vadd.s32 %v4035_v15, %v309_v61  ;;  %v290_v17 = vld [vmem:[%s4098_s21 + $0x48] sm:$0xff]  ;;  %v275_v54 = vld [vmem:[%s4082_s16 + $0x50] sm:$0xff] }
  0x40   : > { %4977 = vst [vmem:[#allocation19_spill] sm:$0xff] %v4355_v37  ;;  %v4871_v14 = vand.u32 4294901760, %v4341_v46  ;;  %v327_v11 = vadd.s32 %v4035_v15, %v310_v9  ;;  %v618_v12 = vand.u32 4294901760, %v617_v13  ;;  %v4887_v55 = vand.u32 4294901760, %v4355_v37 }
  0x41   : > { %v4872_v29 = vand.u32 4294901760, %v4346_v40  ;;  %3700 = vmatprep.subr.bf16.mxu0 %v3699_v31  ;;  %vm341_vm10 = vcmp.lt.s32.totalorder %v325_v48, 200  ;;  %vm342_vm11 = vcmp.lt.s32.totalorder %v326_v0, 200  ;;  %v311_v32 = vadd.s32 96, %v4041_v19 }
  0x42   : > { %v1894_v3 = vsub.f32 %v4341_v46, %v4871_v14  ;;  %vm343_vm12 = vcmp.lt.s32.totalorder %v327_v11, 200  ;;  %3323 = vmatprep.mubr.f32.mxu0 %v618_v12  ;;  %v1799_v61 = vsub.f32 %v4355_v37, %v4887_v55  ;;  %v389_v14 = vsel %vm341_vm10, %v274_v8, 0.0  ;;  %3702 = vmatpush3.bf16.msra.mxu0 %v3699_v31 }
  0x43   : > { %v1901_v30 = vsub.f32 %v4346_v40, %v4872_v29  ;;  %v276_v29 = vld [vmem:[%s4082_s16 + $0x58] sm:$0xff]  ;;  %v445_v43 = vsel %vm416_vm0, %v389_v14, 0  ;;  %v405_v53 = vsel %vm341_vm10, %v290_v17, 0.0  ;;  %v390_v42 = vsel %vm342_vm11, %v275_v54, 0.0  ;;  %v277_v54 = vld [vmem:[%s4082_s16 + $0x60] sm:$0xff] }
  0x44   : > { %v1895_v9 = vand.u32 4294901760, %v1894_v3  ;;  %v406_v48 = vsel %vm342_vm11, %v291_v18, 0.0  ;;  %v1800_v0 = vand.u32 4294901760, %v1799_v61  ;;  %v4379_v41 = vand.u32 4294901760, %v445_v43 }
  0x45   : > { %v1902_v13 = vand.u32 4294901760, %v1901_v30  ;;  %v1627_v12 = vsel %vm416_vm0, %v405_v53, 0  ;;  %v448_v30 = vsel %vm416_vm0, %v390_v42, 0  ;;  %v1630_v31 = vsel %vm416_vm0, %v406_v48, 0 }
  0x46   : > { %v4383_v24 = vand.u32 4294901760, %v1627_v12  ;;  %v391_v8 = vsel %vm343_vm12, %v276_v29, 0.0  ;;  %3515 = vmatprep.mubr.f32.mxu1 %v1800_v0  ;;  %v4389_v18 = vsub.f32 %v445_v43, %v4379_v41  ;;  %v4391_v14 = vand.u32 4294901760, %v448_v30 }
  0x47   : > { %v3747_v52 = vpack.c.bf16 %v1902_v13, %v1895_v9  ;;  %v4393_v3 = vand.u32 4294901760, %v1630_v31  ;;  %v451_v53 = vsel %vm416_vm0, %v391_v8, 0  ;;  %v407_v29 = vsel %vm343_vm12, %v292_v47, 0.0 }
  0x48   : > { %4978 = vst [vmem:[#allocation20_spill] sm:$0xff] %v4383_v24  ;;  %4979 = vst [vmem:[#allocation21_spill] sm:$0xff] %v4389_v18  ;;  %v4397_v17 = vsub.f32 %v1627_v12, %v4383_v24  ;;  %v4399_v42 = vand.u32 4294901760, %v451_v53  ;;  %v328_v61 = vadd.s32 %v4035_v15, %v311_v32  ;;  %v4890_v43 = vand.u32 4294901760, %v4389_v18 }
  0x49   : > { %3748 = vmatprep.subr.bf16.mxu1 %v3747_v52  ;;  %4980 = vst [vmem:[#allocation22_spill] sm:$0xff] %v4391_v14  ;;  %4981 = vst [vmem:[#allocation23_spill] sm:$0xff] %v4393_v3  ;;  %v4406_v9 = vsub.f32 %v448_v30, %v4391_v14  ;;  %v4409_v13 = vsub.f32 %v1630_v31, %v4393_v3  ;;  %v1633_v48 = vsel %vm416_vm0, %v407_v29, 0  ;;  %v293_v31 = vld [vmem:[%s4098_s21 + $0x60] sm:$0xff] }
  0x4a   : > { %4982 = vst [vmem:[#allocation24_spill] sm:$0xff] %v4397_v17  ;;  %3750 = vmatpush3.bf16.msra.mxu1 %v3747_v52  ;;  %4983 = vst [vmem:[#allocation25_spill] sm:$0xff] %v4399_v42  ;;  %v4895_v52 = vand.u32 4294901760, %v4397_v17  ;;  %v4414_v0 = vsub.f32 %v451_v53, %v4399_v42  ;;  %v4416_v11 = vand.u32 4294901760, %v1633_v48  ;;  %vm344_vm13 = vcmp.lt.s32.totalorder %v328_v61, 200 }
  0x4b   : > { %4984 = vst [vmem:[#allocation26_spill] sm:$0xff] %v4406_v9  ;;  %4985 = vst [vmem:[#allocation27_spill] sm:$0xff] %v4409_v13  ;;  %v627_v47 = vsub.f32 %v4389_v18, %v4890_v43  ;;  %v4898_v32 = vand.u32 4294901760, %v4406_v9  ;;  %v4899_v12 = vand.u32 4294901760, %v4409_v13  ;;  %v392_v30 = vsel %vm344_vm13, %v277_v54, 0.0 }
  0x4c   : > { %4986 = vst [vmem:[#allocation28_spill] sm:$0xff] %v4414_v0  ;;  %4987 = vst [vmem:[#allocation29_spill] sm:$0xff] %v4416_v11  ;;  %v1809_v8 = vsub.f32 %v4397_v17, %v4895_v52  ;;  %v4900_v53 = vand.u32 4294901760, %v4414_v0  ;;  %v4430_v29 = vsub.f32 %v1633_v48, %v4416_v11  ;;  %v454_v55 = vsel %vm416_vm0, %v392_v30, 0 }
  0x4d   : > { %v628_v37 = vand.u32 4294901760, %v627_v47  ;;  %v637_v43 = vsub.f32 %v4406_v9, %v4898_v32  ;;  %v1819_v54 = vsub.f32 %v4409_v13, %v4899_v12  ;;  %v4439_v18 = vand.u32 4294901760, %v454_v55 }
  0x4e   : > { %4988 = vst [vmem:[#allocation30_spill] sm:$0xff] %v4430_v29  ;;  %v1810_v62 = vand.u32 4294901760, %v1809_v8  ;;  %v647_v52 = vsub.f32 %v4414_v0, %v4900_v53  ;;  %v4903_v48 = vand.u32 4294901760, %v4430_v29  ;;  %v408_v30 = vsel %vm344_vm13, %v293_v31, 0.0 }
  0x4f   : > { %4989 = vst [vmem:[#allocation31_spill] sm:$0xff] %v4439_v18  ;;  %3324 = vmatmul.mubr.f32.gmra.mrb[8].mxu0 %v628_v37  ;;  %v638_v47 = vand.u32 4294901760, %v637_v43  ;;  %v1820_v17 = vand.u32 4294901760, %v1819_v54  ;;  %v4447_v32 = vsub.f32 %v454_v55, %v4439_v18  ;;  %v1636_v12 = vsel %vm416_vm0, %v408_v30, 0  ;;  %v278_v54 = vld [vmem:[%s4082_s16 + $0x68] sm:$0xff] }
  0x50   : > { %3516 = vmatmul.mubr.f32.gmra.mrb[8].mxu1 %v1810_v62  ;;  %v648_v8 = vand.u32 4294901760, %v647_v52  ;;  %v1829_v53 = vsub.f32 %v4430_v29, %v4903_v48  ;;  %v4453_v0 = vand.u32 4294901760, %v1636_v12  ;;  %v312_v37 = vadd.s32 104, %v4041_v19  ;;  %v279_v48 = vld [vmem:[%s4082_s16 + $0x70] sm:$0xff] }
  0x51   : > { %4990 = vst [vmem:[#allocation32_spill] sm:$0xff] %v4447_v32  ;;  %3326 = vmatprep.mubr.f32.mxu0 %v638_v47  ;;  %3518 = vmatprep.mubr.f32.mxu1 %v1820_v17  ;;  %v4910_v61 = vand.u32 4294901760, %v4447_v32  ;;  %v313_v55 = vadd.s32 112, %v4041_v19  ;;  %v314_v43 = vadd.s32 120, %v4041_v19  ;;  %v4461_v62 = vpack.c.bf16 %v4055_v23, %v4053_v22  ;;  %v294_v47 = vld [vmem:[%s4098_s21 + $0x68] sm:$0xff] }
  0x52   : > { %4991 = vst [vmem:[#allocation33_spill] sm:$0xff] %v4453_v0  ;;  %v1830_v52 = vand.u32 4294901760, %v1829_v53  ;;  %v4464_v31 = vsub.f32 %v1636_v12, %v4453_v0  ;;  %v329_v30 = vadd.s32 %v4035_v15, %v312_v37  ;;  %v4471_v17 = vpack.c.bf16 %v4068_v27, %v4066_v26  ;;  %v295_v37 = vld [vmem:[%s4098_s21 + $0x70] sm:$0xff] }
  0x53   : > { %3327 = vmatmul.mubr.f32.gmra.mrb[10].mxu0 %v648_v8  ;;  %v657_v19 = vsub.f32 %v4447_v32, %v4910_v61  ;;  %v330_v29 = vadd.s32 %v4035_v15, %v313_v55  ;;  %v331_v12 = vadd.s32 %v4035_v15, %v314_v43  ;;  %3704 = vmatprep.subr.bf16.mxu0 %v4461_v62  ;;  %v280_v61 = vld [vmem:[%s4082_s16 + $0x78] sm:$0xff] }
  0x54   : > { %4992 = vst [vmem:[#allocation34_spill] sm:$0xff] %v4464_v31  ;;  %3519 = vmatmul.mubr.f32.gmra.mrb[10].mxu1 %v1830_v52  ;;  %v4914_v53 = vand.u32 4294901760, %v4464_v31  ;;  %vm345_vm14 = vcmp.lt.s32.totalorder %v329_v30, 200  ;;  %3752 = vmatprep.subr.bf16.mxu1 %v4471_v17 }
  0x55   : > { %v658_v8 = vand.u32 4294901760, %v657_v19  ;;  %v393_v13 = vsel %vm345_vm14, %v278_v54, 0.0  ;;  %v409_v9 = vsel %vm345_vm14, %v294_v47, 0.0  ;;  %vm346_vm15 = vcmp.lt.s32.totalorder %v330_v29, 200  ;;  %v296_v47 = vld [vmem:[%s4098_s21 + $0x78] sm:$0xff] }
  0x56   : > { %v1839_v55 = vsub.f32 %v4464_v31, %v4914_v53  ;;  %v457_v15 = vsel %vm416_vm0, %v393_v13, 0  ;;  %v1639_v43 = vsel %vm416_vm0, %v409_v9, 0  ;;  %v394_v52 = vsel %vm346_vm15, %v279_v48, 0.0 }
  0x57   : > { %3329 = vmatprep.mubr.f32.mxu0 %v658_v8  ;;  %v4489_v30 = vand.u32 4294901760, %v457_v15  ;;  %v4491_v32 = vand.u32 4294901760, %v1639_v43  ;;  %v460_v19 = vsel %vm416_vm0, %v394_v52, 0  ;;  %v410_v54 = vsel %vm346_vm15, %v295_v37, 0.0 }
  0x58   : > { %v1840_v29 = vand.u32 4294901760, %v1839_v55  ;;  %v4495_v27 = vand.u32 4294901760, %v460_v19  ;;  %v1642_v53 = vsel %vm416_vm0, %v410_v54, 0  ;;  %vm347_vm1 = vcmp.lt.s32.totalorder %v331_v12, 200 }
  0x59   : > { %4993 = vst [vmem:[#allocation35_spill] sm:$0xff] %v4489_v30  ;;  %4994 = vst [vmem:[#allocation36_spill] sm:$0xff] %v4491_v32  ;;  %v4499_v13 = vsub.f32 %v457_v15, %v4489_v30  ;;  %v4502_v9 = vsub.f32 %v1639_v43, %v4491_v32  ;;  %v4504_v48 = vand.u32 4294901760, %v1642_v53  ;;  %v395_v8 = vsel %vm347_vm1, %v280_v61, 0.0 }
  0x5a   : > { %4995 = vst [vmem:[#allocation37_spill] sm:$0xff] %v4495_v27  ;;  %3521 = vmatprep.mubr.f32.mxu1 %v1840_v29  ;;  %v4507_v52 = vsub.f32 %v460_v19, %v4495_v27  ;;  %v463_v37 = vsel %vm416_vm0, %v395_v8, 0  ;;  %v411_v55 = vsel %vm347_vm1, %v296_v47, 0.0  ;;  %v5000_v29 = vand.u32 4294901760, %v4288_v10 }
  0x5b   : > { %4996 = vst [vmem:[#allocation38_spill] sm:$0xff] %v4499_v13  ;;  %4997 = vst [vmem:[#allocation39_spill] sm:$0xff] %v4502_v9  ;;  %v4921_v31 = vand.u32 4294901760, %v4499_v13  ;;  %v4925_v12 = vand.u32 4294901760, %v4502_v9  ;;  %v4513_v15 = vsub.f32 %v1642_v53, %v4504_v48  ;;  %v4515_v54 = vand.u32 4294901760, %v463_v37 }
  0x5c   : > { %4998 = vst [vmem:[#allocation40_spill] sm:$0xff] %v4504_v48  ;;  %v1645_v61 = vsel %vm416_vm0, %v411_v55, 0  ;;  %v5001_v19 = vand.u32 4294901760, %v4307_v33  ;;  %v5003_v55 = vand.u32 4294901760, %v4507_v52  ;;  %vm2925_vm0 = vcmask 1040384  }
  0x5d   : > { %4999 = vst [vmem:[#allocation41_spill] sm:$0xff] %v4515_v54  ;;  %v667_v47 = vsub.f32 %v4499_v13, %v4921_v31  ;;  %v1849_v53 = vsub.f32 %v4502_v9, %v4925_v12  ;;  %v4931_v8 = vand.u32 4294901760, %v4513_v15  ;;  %v4533_v43 = vsub.f32 %v463_v37, %v4515_v54 }
  0x5e   : > { %v4523_v26 = vpack.c.bf16 %v5001_v19, %v5000_v29  ;;  %v677_v49 = vsub.f32 %v4507_v52, %v5003_v55  ;;  %v4538_v23 = vand.u32 4294901760, %v1645_v61  ;;  %v5005_v29 = vand.u32 4294901760, %v4341_v46 }
  0x5f   : > { %v5006_v19 = vand.u32 4294901760, %v4346_v40  ;;  %v1850_v13 = vand.u32 4294901760, %v1849_v53  ;;  %v1859_v12 = vsub.f32 %v4513_v15, %v4931_v8  ;;  %v4930_v37 = vand.u32 4294901760, %v4533_v43  ;;  %v5031_v8 = vld [vmem:[#allocation24_spill] sm:$0xff] }
  0x60   : > { %5002 = vst [vmem:[#allocation42_spill] sm:$0xff] %v4523_v26  ;;  %5004 = vst [vmem:[#allocation43_spill] sm:$0xff] %v4538_v23  ;;  %v668_v26 = vand.u32 4294901760, %v667_v47  ;;  %v678_v9 = vand.u32 4294901760, %v677_v49  ;;  %v4551_v22 = vsub.f32 %v1645_v61, %v4538_v23  ;;  %v5014_v61 = vld [vmem:[#allocation5_spill] sm:$0xff] }
  0x61   : > { %v4544_v31 = vpack.c.bf16 %v5006_v19, %v5005_v29  ;;  %3522 = vmatmul.mubr.f32.gmra.mrb[12].mxu1 %v1850_v13  ;;  %v1860_v55 = vand.u32 4294901760, %v1859_v12  ;;  %v687_v29 = vsub.f32 %v4533_v43, %v4930_v37  ;;  %v3755_v13 = vpack.c.bf16 %v4346_v40, %v4341_v46  ;;  %v5009_v46 = vld [vmem:[#allocation3_spill] sm:$0xff]  ;;  %v5013_v12 = vld [vmem:[#allocation4_spill] sm:$0xff]  ;;  %v5030_v37 = vld [vmem:[#allocation26_spill] sm:$0xff] }
  0x62   : > { %3330 = vmatmul.mubr.f32.gmra.mrb[12].mxu0 %v668_v26  ;;  %v4929_v47 = vand.u32 4294901760, %v4551_v22  ;;  %v3707_v26 = vpack.c.bf16 %v4307_v33, %v4288_v10  ;;  %v5007_v10 = vld [vmem:[#allocation2_spill] sm:$0xff]  ;;  %v5010_v40 = vand.u32 4294901760, %v5009_v46  ;;  %v5023_v46 = vld [vmem:[#allocation13_spill] sm:$0xff] }
  0x63   : > { %3332 = vmatprep.mubr.f32.mxu0 %v678_v9  ;;  %3524 = vmatprep.mubr.f32.mxu1 %v1860_v55  ;;  %v688_v53 = vand.u32 4294901760, %v687_v29  ;;  %v5008_v33 = vand.u32 4294901760, %v5007_v10  ;;  %v5012_v9 = vld [vmem:[#allocation8_spill] sm:$0xff]  ;;  %v5015_v55 = vand.u32 4294901760, %v5014_v61  ;;  %v5016_v29 = vld [vmem:[#allocation6_spill] sm:$0xff] }
  0x64   : > { %v1869_v19 = vsub.f32 %v4551_v22, %v4929_v47  ;;  %v5021_v10 = vld [vmem:[#allocation12_spill] sm:$0xff]  ;;  %v5029_v47 = vld [vmem:[#allocation21_spill] sm:$0xff] }
  0x65   : > { %v5025_v61 = vld [vmem:[#allocation16_spill] sm:$0xff] }
  0x66   : > { %3333 = vmatmul.mubr.f32.gmra.mrb[14].mxu0 %v688_v53  ;;  %v1870_v49 = vand.u32 4294901760, %v1869_v19  ;;  %v5017_v53 = vand.u32 4294901760, %v5016_v29  ;;  %v5027_v29 = vld [vmem:[#allocation17_spill] sm:$0xff] }
  0x67   : > { %3343 = vmatprep.mubr.f32.mxu0 %v4117_v51 }
  0x68   : > { %3525 = vmatmul.mubr.f32.gmra.mrb[14].mxu1 %v1870_v49  ;;  %v3767_v19 = vpack.c.bf16 %v5017_v53, %v5015_v55  ;;  %v5018_v49 = vld [vmem:[#allocation10_spill] sm:$0xff]  ;;  %v5028_v53 = vld [vmem:[#allocation19_spill] sm:$0xff] }
  0x69   : > { %3535 = vmatprep.mubr.f32.mxu1 %v4123_v57  ;;  %v5026_v55 = vld [vmem:[#allocation18_spill] sm:$0xff] }
  0x6a   : > { %3344 = vmatmul.mubr.f32.vlgmr.msra.gmra.mrb[0].mxu0 %v4137_v4 }
  0x6b   : > { %3706 = vmatpush3.bf16.msra.mxu0 %v4461_v62  ;;  %3346 = vmatprep.mubr.f32.mxu0 %v4144_v25  ;;  %v3719_v62 = vpack.c.bf16 %v5010_v40, %v5008_v33  ;;  %v5022_v33 = vld [vmem:[#allocation14_spill] sm:$0xff]  ;;  %v5024_v40 = vld [vmem:[#allocation15_spill] sm:$0xff] }
  0x6c   : > { %3708 = vmatprep.subr.bf16.mxu0 %v3707_v26  ;;  %3536 = vmatmul.mubr.f32.vlgmr.msra.gmra.mrb[0].mxu1 %v4139_v5 }
  0x6d   : > { %3754 = vmatpush3.bf16.msra.mxu1 %v4471_v17  ;;  %3538 = vmatprep.mubr.f32.mxu1 %v4163_v39  ;;  %v5011_v17 = vld [vmem:[#allocation7_spill] sm:$0xff] }
  0x6e   : > { %3347 = vmatmul.mubr.f32.gmra.mrb[2].mxu0 %v4174_v50  ;;  %3756 = vmatprep.subr.bf16.mxu1 %v3755_v13 }
  0x6f   : > { %3349 = vmatprep.mubr.f32.mxu0 %v4217_v7  ;;  %3710 = vmatpush3.bf16.msra.mxu0 %v3707_v26  ;;  %v5019_v26 = vld [vmem:[#allocation9_spill] sm:$0xff] }
  0x70   : > { %3539 = vmatmul.mubr.f32.gmra.mrb[2].mxu1 %v4192_v6  ;;  %3712 = vmatprep.subr.bf16.mxu0 %v4037_v16 }
  0x71   : > { %3541 = vmatprep.mubr.f32.mxu1 %v4219_v36  ;;  %3758 = vmatpush3.bf16.msra.mxu1 %v3755_v13  ;;  %v5020_v13 = vld [vmem:[#allocation11_spill] sm:$0xff] }
  0x72   : > { %3350 = vmatmul.mubr.f32.gmra.mrb[4].mxu0 %v4239_v45  ;;  %3760 = vmatprep.subr.bf16.mxu1 %v4043_v20 }
  0x73   : > { %3352 = vmatprep.mubr.f32.mxu0 %v4262_v59 }
  0x74   : > { %3542 = vmatmul.mubr.f32.gmra.mrb[4].mxu1 %v4241_v60 }
  0x75   : > { %3544 = vmatprep.mubr.f32.mxu1 %v4264_v2 }
  0x76   : > { %3353 = vmatmul.mubr.f32.gmra.mrb[6].mxu0 %v4274_v1 }
  0x77   : > { %3355 = vmatprep.mubr.f32.mxu0 %v4315_v44 }
  0x78   : > { %3545 = vmatmul.mubr.f32.gmra.mrb[6].mxu1 %v4276_v56 }
  0x79   : > { %3547 = vmatprep.mubr.f32.mxu1 %v4336_v28 }
  0x7a   : > { %3356 = vmatmul.mubr.f32.gmra.mrb[8].mxu0 %v4379_v41 }
  0x7b   : > { %3358 = vmatprep.mubr.f32.mxu0 %v4391_v14  ;;  %v5044_v14 = vld [vmem:[#allocation42_spill] sm:$0xff] }
  0x7c   : > { %3548 = vmatmul.mubr.f32.gmra.mrb[8].mxu1 %v4383_v24  ;;  %v5043_v24 = vand.u32 4294901760, %v4154_v35 }
  0x7d   : > { %3550 = vmatprep.mubr.f32.mxu1 %v4393_v3  ;;  %v5042_v3 = vand.u32 4294901760, %v4161_v38 }
  0x7e   : > { %3359 = vmatmul.mubr.f32.gmra.mrb[10].mxu0 %v4399_v42  ;;  %v5041_v42 = vand.u32 4294901760, %v4151_v34 }
  0x7f   : > { %3361 = vmatprep.mubr.f32.mxu0 %v4439_v18  ;;  %v5040_v18 = vand.u32 4294901760, %v4131_v63 }
  0x80   : > { %3551 = vmatmul.mubr.f32.gmra.mrb[10].mxu1 %v4416_v11  ;;  %v5039_v11 = vand.u32 4294901760, %v4126_v58 }
  0x81   : > { %3553 = vmatprep.mubr.f32.mxu1 %v4453_v0  ;;  %v5038_v0 = vld [vmem:[#allocation39_spill] sm:$0xff] }
  0x82   : > { %3362 = vmatmul.mubr.f32.gmra.mrb[12].mxu0 %v4489_v30  ;;  %v5037_v30 = vld [vmem:[#allocation38_spill] sm:$0xff] }
  0x83   : > { %3364 = vmatprep.mubr.f32.mxu0 %v4495_v27  ;;  %v5036_v27 = vld [vmem:[#allocation34_spill] sm:$0xff] }
  0x84   : > { %3554 = vmatmul.mubr.f32.gmra.mrb[12].mxu1 %v4491_v32  ;;  %v5035_v32 = vld [vmem:[#allocation30_spill] sm:$0xff] }
  0x85   : > { %3556 = vmatprep.mubr.f32.mxu1 %v4504_v48  ;;  %v5034_v48 = vld [vmem:[#allocation32_spill] sm:$0xff] }
  0x86   : > { %3365 = vmatmul.mubr.f32.gmra.mrb[14].mxu0 %v4515_v54  ;;  %v5033_v54 = vld [vmem:[#allocation28_spill] sm:$0xff] }
  0x87   : > { %3375 = vmatprep.mubr.f32.mxu0 %v4126_v58  ;;  %v5045_v58 = vand.u32 4294901760, %v5011_v17 }
  0x88   : > { %3557 = vmatmul.mubr.f32.gmra.mrb[14].mxu1 %v4538_v23  ;;  %v5032_v23 = vld [vmem:[#allocation27_spill] sm:$0xff] }
  0x89   : > { %3567 = vmatprep.mubr.f32.mxu1 %v4131_v63  ;;  %v5047_v63 = vand.u32 4294901760, %v5018_v49 }
  0x8a   : > { %3376 = vmatmul.mubr.f32.vlgmr.msra.gmra.mrb[0].mxu0 %v4151_v34  ;;  %v5048_v34 = vand.u32 4294901760, %v5019_v26 }
  0x8b   : > { %3714 = vmatpush3.bf16.msra.mxu0 %v4037_v16  ;;  %3378 = vmatprep.mubr.f32.mxu0 %v4161_v38  ;;  %v5051_v38 = vand.u32 4294901760, %v5022_v33 }
  0x8c   : > { %3568 = vmatmul.mubr.f32.vlgmr.msra.gmra.mrb[0].mxu1 %v4154_v35  ;;  %3716 = vmatprep.subr.bf16.mxu0 %v4049_v21  ;;  %v5050_v35 = vand.u32 4294901760, %v5021_v10 }
  0x8d   : > { %3762 = vmatpush3.bf16.msra.mxu1 %v4043_v20  ;;  %3570 = vmatprep.mubr.f32.mxu1 %v5011_v17  ;;  %v5058_v17 = vand.u32 4294901760, %v5029_v47 }
  0x8e   : > { %3379 = vmatmul.mubr.f32.gmra.mrb[2].mxu0 %v5012_v9  ;;  %3764 = vmatprep.subr.bf16.mxu1 %v5013_v12 }
  0x8f   : > { %3381 = vmatprep.mubr.f32.mxu0 %v5018_v49  ;;  %3718 = vmatpush3.bf16.msra.mxu0 %v4049_v21  ;;  %v5061_v49 = vand.u32 4294901760, %v5032_v23 }
  0x90   : > { %3571 = vmatmul.mubr.f32.gmra.mrb[2].mxu1 %v5019_v26  ;;  %3720 = vmatprep.subr.bf16.mxu0 %v3719_v62  ;;  %v5062_v26 = vand.u32 4294901760, %v5033_v54 }
  0x91   : > { %3573 = vmatprep.mubr.f32.mxu1 %v5020_v13  ;;  %3766 = vmatpush3.bf16.msra.mxu1 %v5013_v12 }
  0x92   : > { %3382 = vmatmul.mubr.f32.gmra.mrb[4].mxu0 %v5021_v10  ;;  %3768 = vmatprep.subr.bf16.mxu1 %v3767_v19  ;;  %v5064_v10 = vand.u32 4294901760, %v5035_v32 }
  0x93   : > { %3384 = vmatprep.mubr.f32.mxu0 %v5022_v33  ;;  %v5083_v33 = vld [vmem:[#allocation41_spill] sm:$0xff] }
  0x94   : > { %3574 = vmatmul.mubr.f32.gmra.mrb[4].mxu1 %v5023_v46 }
  0x95   : > { %3576 = vmatprep.mubr.f32.mxu1 %v5024_v40 }
  0x96   : > { %3385 = vmatmul.mubr.f32.gmra.mrb[6].mxu0 %v5025_v61 }
  0x97   : > { %3387 = vmatprep.mubr.f32.mxu0 %v5026_v55 }
  0x98   : > { %3577 = vmatmul.mubr.f32.gmra.mrb[6].mxu1 %v5027_v29 }
  0x99   : > { %3579 = vmatprep.mubr.f32.mxu1 %v5028_v53 }
  0x9a   : > { %3388 = vmatmul.mubr.f32.gmra.mrb[8].mxu0 %v5029_v47  ;;  %v5065_v47 = vand.u32 4294901760, %v5036_v27 }
  0x9b   : > { %3390 = vmatprep.mubr.f32.mxu0 %v5030_v37 }
  0x9c   : > { %3580 = vmatmul.mubr.f32.gmra.mrb[8].mxu1 %v5031_v8 }
  0x9d   : > { %3582 = vmatprep.mubr.f32.mxu1 %v5032_v23  ;;  %v5068_v23 = vand.u32 4294901760, %v5038_v0 }
  0x9e   : > { %3391 = vmatmul.mubr.f32.gmra.mrb[10].mxu0 %v5033_v54  ;;  %v5069_v54 = vand.u32 4294901760, %v4513_v15 }
  0x9f   : > { %3393 = vmatprep.mubr.f32.mxu0 %v5034_v48 }
  0xa0   : > { %3583 = vmatmul.mubr.f32.gmra.mrb[10].mxu1 %v5035_v32  ;;  %v5077_v32 = vld [vmem:[#allocation29_spill] sm:$0xff] }
  0xa1   : > { %3585 = vmatprep.mubr.f32.mxu1 %v5036_v27  ;;  %v5071_v27 = vand.u32 4294901760, %v4551_v22 }
  0xa2   : > { %3394 = vmatmul.mubr.f32.gmra.mrb[12].mxu0 %v5037_v30 }
  0xa3   : > { %3396 = vmatprep.mubr.f32.mxu0 %v4507_v52 }
  0xa4   : > { %3586 = vmatmul.mubr.f32.gmra.mrb[12].mxu1 %v5038_v0  ;;  %v5076_v0 = vld [vmem:[#allocation31_spill] sm:$0xff] }
  0xa5   : > { %3588 = vmatprep.mubr.f32.mxu1 %v4513_v15  ;;  %v5080_v15 = vld [vmem:[#allocation37_spill] sm:$0xff] }
  0xa6   : > { %3397 = vmatmul.mubr.f32.gmra.mrb[14].mxu0 %v4533_v43 }
  0xa7   : > { %3407 = vmatprep.mubr.f32.mxu0 %v5039_v11  ;;  %v5046_v11 = vand.u32 4294901760, %v5012_v9  ;;  %v5059_v9 = vand.u32 4294901760, %v5030_v37  ;;  %v5066_v37 = vand.u32 4294901760, %v5037_v30  ;;  %v5078_v30 = vld [vmem:[#allocation33_spill] sm:$0xff] }
  0xa8   : > { %3589 = vmatmul.mubr.f32.gmra.mrb[14].mxu1 %v4551_v22  ;;  %v5075_v22 = vld [vmem:[#allocation25_spill] sm:$0xff] }
  0xa9   : > { %3599 = vmatprep.mubr.f32.mxu1 %v5040_v18  ;;  %v5052_v18 = vand.u32 4294901760, %v5023_v46  ;;  %v5084_v46 = vld [vmem:[#allocation43_spill] sm:$0xff] }
  0xaa   : > { %3408 = vmatmul.mubr.f32.vlgmr.msra.gmra.mrb[0].mxu0 %v5041_v42  ;;  %v5055_v42 = vand.u32 4294901760, %v5026_v55 }
  0xab   : > { %3722 = vmatpush3.bf16.msra.mxu0 %v3719_v62  ;;  %3410 = vmatprep.mubr.f32.mxu0 %v5042_v3  ;;  %v5054_v3 = vand.u32 4294901760, %v5025_v61  ;;  %v5057_v62 = vand.u32 4294901760, %v5028_v53 }
  0xac   : > { %3600 = vmatmul.mubr.f32.vlgmr.msra.gmra.mrb[0].mxu1 %v5043_v24  ;;  %3724 = vmatprep.subr.bf16.mxu0 %v5044_v14  ;;  %v5049_v24 = vand.u32 4294901760, %v5020_v13  ;;  %v5063_v13 = vand.u32 4294901760, %v5034_v48  ;;  %v5070_v48 = vand.u32 4294901760, %v4533_v43  ;;  %v5081_v43 = vld [vmem:[#allocation36_spill] sm:$0xff] }
  0xad   : > { %3770 = vmatpush3.bf16.msra.mxu1 %v3767_v19  ;;  %3602 = vmatprep.mubr.f32.mxu1 %v5045_v58  ;;  %v5060_v19 = vand.u32 4294901760, %v5031_v8  ;;  %v5067_v8 = vand.u32 4294901760, %v4507_v52  ;;  %v5079_v52 = vld [vmem:[#allocation35_spill] sm:$0xff] }
  0xae   : > { %3411 = vmatmul.mubr.f32.gmra.mrb[2].mxu0 %v5046_v11  ;;  %3772 = vmatprep.subr.bf16.mxu1 %v4544_v31 }
  0xaf   : > { %3413 = vmatprep.mubr.f32.mxu0 %v5047_v63  ;;  %3726 = vmatpush3.bf16.msra.mxu0 %v5044_v14  ;;  %v5053_v14 = vand.u32 4294901760, %v5024_v40 }
  0xb0   : > { %3603 = vmatmul.mubr.f32.gmra.mrb[2].mxu1 %v5048_v34  ;;  %3728 = vmatprep.subr.bf16.mxu0 %v4037_v16 }
  0xb1   : > { %3605 = vmatprep.mubr.f32.mxu1 %v5049_v24  ;;  %3774 = vmatpush3.bf16.msra.mxu1 %v4544_v31  ;;  %v5056_v31 = vand.u32 4294901760, %v5027_v29 }
  0xb2   : > { %3414 = vmatmul.mubr.f32.gmra.mrb[4].mxu0 %v5050_v35  ;;  %3776 = vmatprep.subr.bf16.mxu1 %v4043_v20 }
  0xb3   : > { %3416 = vmatprep.mubr.f32.mxu0 %v5051_v38 }
  0xb4   : > { %3606 = vmatmul.mubr.f32.gmra.mrb[4].mxu1 %v5052_v18 }
  0xb5   : > { %3608 = vmatprep.mubr.f32.mxu1 %v5053_v14 }
  0xb6   : > { %3417 = vmatmul.mubr.f32.gmra.mrb[6].mxu0 %v5054_v3 }
  0xb7   : > { %3419 = vmatprep.mubr.f32.mxu0 %v5055_v42 }
  0xb8   : > { %3609 = vmatmul.mubr.f32.gmra.mrb[6].mxu1 %v5056_v31 }
  0xb9   : > { %3611 = vmatprep.mubr.f32.mxu1 %v5057_v62 }
  0xba   : > { %3420 = vmatmul.mubr.f32.gmra.mrb[8].mxu0 %v5058_v17 }
  0xbb   : > { %3422 = vmatprep.mubr.f32.mxu0 %v5059_v9 }
  0xbc   : > { %3612 = vmatmul.mubr.f32.gmra.mrb[8].mxu1 %v5060_v19 }
  0xbd   : > { %3614 = vmatprep.mubr.f32.mxu1 %v5061_v49 }
  0xbe   : > { %3423 = vmatmul.mubr.f32.gmra.mrb[10].mxu0 %v5062_v26 }
  0xbf   : > { %3425 = vmatprep.mubr.f32.mxu0 %v5063_v13 }
  0xc0   : > { %3615 = vmatmul.mubr.f32.gmra.mrb[10].mxu1 %v5064_v10 }
  0xc1   : > { %3617 = vmatprep.mubr.f32.mxu1 %v5065_v47 }
  0xc2   : > { %3426 = vmatmul.mubr.f32.gmra.mrb[12].mxu0 %v5066_v37 }
  0xc3   : > { %3428 = vmatprep.mubr.f32.mxu0 %v5067_v8 }
  0xc4   : > { %3618 = vmatmul.mubr.f32.gmra.mrb[12].mxu1 %v5068_v23 }
  0xc5   : > { %3620 = vmatprep.mubr.f32.mxu1 %v5069_v54 }
  0xc6   : > { %3429 = vmatmul.mubr.f32.gmra.mrb[14].mxu0 %v5070_v48 }
  0xc7   : > { %3439 = vmatprep.mubr.f32.mxu0 %v4117_v51 }
  0xc8   : > { %3621 = vmatmul.mubr.f32.gmra.mrb[14].mxu1 %v5071_v27 }
  0xc9   : > { %3631 = vmatprep.mubr.f32.mxu1 %v4123_v57 }
  0xca   : > { %3440 = vmatmul.mubr.f32.vlgmr.msra.gmra.mrb[0].mxu0 %v4137_v4 }
  0xcb   : > { %3730 = vmatpush3.bf16.msra.mxu0 %v4037_v16  ;;  %3442 = vmatprep.mubr.f32.mxu0 %v4144_v25  ;;  %v5072_v16 = vld [vmem:[#allocation22_spill] sm:$0xff] }
  0xcc   : > { %3632 = vmatmul.mubr.f32.vlgmr.msra.gmra.mrb[0].mxu1 %v4139_v5  ;;  %3732 = vmatprep.subr.bf16.mxu0 %v4049_v21 }
  0xcd   : > { %3778 = vmatpush3.bf16.msra.mxu1 %v4043_v20  ;;  %3634 = vmatprep.mubr.f32.mxu1 %v4163_v39  ;;  %v5073_v20 = vld [vmem:[#allocation20_spill] sm:$0xff] }
  0xce   : > { %3443 = vmatmul.mubr.f32.gmra.mrb[2].mxu0 %v4174_v50  ;;  %3780 = vmatprep.subr.bf16.mxu1 %v5013_v12 }
  0xcf   : > { %3445 = vmatprep.mubr.f32.mxu0 %v4217_v7  ;;  %3734 = vmatpush3.bf16.msra.mxu0 %v4049_v21  ;;  %v5074_v21 = vld [vmem:[#allocation23_spill] sm:$0xff] }
  0xd0   : > { %3635 = vmatmul.mubr.f32.gmra.mrb[2].mxu1 %v4192_v6 }
  0xd1   : > { %3637 = vmatprep.mubr.f32.mxu1 %v4219_v36  ;;  %3782 = vmatpush3.bf16.msra.mxu1 %v5013_v12  ;;  %v5082_v12 = vld [vmem:[#allocation40_spill] sm:$0xff] }
  0xd2   : > { %3446 = vmatmul.mubr.f32.gmra.mrb[4].mxu0 %v4239_v45 }
  0xd3   : > { %3448 = vmatprep.mubr.f32.mxu0 %v4262_v59 }
  0xd4   : > { %3638 = vmatmul.mubr.f32.gmra.mrb[4].mxu1 %v4241_v60 }
  0xd5   : > { %3640 = vmatprep.mubr.f32.mxu1 %v4264_v2 }
  0xd6   : > { %3449 = vmatmul.mubr.f32.gmra.mrb[6].mxu0 %v4274_v1 }
  0xd7   : > { %3451 = vmatprep.mubr.f32.mxu0 %v4315_v44 }
  0xd8   : > { %3641 = vmatmul.mubr.f32.gmra.mrb[6].mxu1 %v4276_v56 }
  0xd9   : > { %3643 = vmatprep.mubr.f32.mxu1 %v4336_v28 }
  0xda   : > { %3452 = vmatmul.mubr.f32.gmra.mrb[8].mxu0 %v4379_v41 }
  0xdb   : > { %3454 = vmatprep.mubr.f32.mxu0 %v5072_v16 }
  0xdc   : > { %3644 = vmatmul.mubr.f32.gmra.mrb[8].mxu1 %v5073_v20 }
  0xdd   : > { %3646 = vmatprep.mubr.f32.mxu1 %v5074_v21 }
  0xde   : > { %3455 = vmatmul.mubr.f32.gmra.mrb[10].mxu0 %v5075_v22 }
  0xdf   : > { %3457 = vmatprep.mubr.f32.mxu0 %v5076_v0 }
  0xe0   : > { %3647 = vmatmul.mubr.f32.gmra.mrb[10].mxu1 %v5077_v32 }
  0xe1   : > { %3649 = vmatprep.mubr.f32.mxu1 %v5078_v30 }
  0xe2   : > { %3458 = vmatmul.mubr.f32.gmra.mrb[12].mxu0 %v5079_v52 }
  0xe3   : > { %3460 = vmatprep.mubr.f32.mxu0 %v5080_v15 }
  0xe4   : > { %3650 = vmatmul.mubr.f32.gmra.mrb[12].mxu1 %v5081_v43 }
  0xe5   : > { %3652 = vmatprep.mubr.f32.mxu1 %v5082_v12 }
  0xe6   : > { %3461 = vmatmul.mubr.f32.gmra.mrb[14].mxu0 %v5083_v33 }
  0xe7   : > { %3471 = vmatprep.mubr.f32.mxu0 %v4117_v51 }
  0xe8   : > { %3653 = vmatmul.mubr.f32.gmra.mrb[14].mxu1 %v5084_v46 }
  0xe9   : > { %3663 = vmatprep.mubr.f32.mxu1 %v4123_v57 }
  0xea   : > { %3472 = vmatmul.mubr.f32.vlgmr.msra.gmra.mrb[0].mxu0 %v4137_v4 }
  0xeb   : > { %3474 = vmatprep.mubr.f32.mxu0 %v4144_v25 }
  0xec   : > { %3664 = vmatmul.mubr.f32.vlgmr.msra.gmra.mrb[0].mxu1 %v4139_v5 }
  0xed   : > { %3666 = vmatprep.mubr.f32.mxu1 %v4163_v39 }
  0xee   : > { %3475 = vmatmul.mubr.f32.gmra.mrb[2].mxu0 %v4174_v50 }
  0xef   : > { %3477 = vmatprep.mubr.f32.mxu0 %v4217_v7 }
  0xf0   : > { %3667 = vmatmul.mubr.f32.gmra.mrb[2].mxu1 %v4192_v6 }
  0xf1   : > { %3669 = vmatprep.mubr.f32.mxu1 %v4219_v36 }
  0xf2   : > { %3478 = vmatmul.mubr.f32.gmra.mrb[4].mxu0 %v4239_v45 }
  0xf3   : > { %3480 = vmatprep.mubr.f32.mxu0 %v4262_v59 }
  0xf4   : > { %3670 = vmatmul.mubr.f32.gmra.mrb[4].mxu1 %v4241_v60 }
  0xf5   : > { %3672 = vmatprep.mubr.f32.mxu1 %v4264_v2 }
  0xf6   : > { %3481 = vmatmul.mubr.f32.gmra.mrb[6].mxu0 %v4274_v1 }
  0xf7   : > { %3483 = vmatprep.mubr.f32.mxu0 %v4315_v44 }
  0xf8   : > { %3673 = vmatmul.mubr.f32.gmra.mrb[6].mxu1 %v4276_v56 }
  0xf9   : > { %3675 = vmatprep.mubr.f32.mxu1 %v4336_v28 }
  0xfa   : > { %3484 = vmatmul.mubr.f32.gmra.mrb[8].mxu0 %v4379_v41 }
  0xfb   : > { %3486 = vmatprep.mubr.f32.mxu0 %v5072_v16 }
  0xfc   : > { %3676 = vmatmul.mubr.f32.gmra.mrb[8].mxu1 %v5073_v20 }
  0xfd   : > { %3678 = vmatprep.mubr.f32.mxu1 %v5074_v21 }
  0xfe   : > { %3487 = vmatmul.mubr.f32.gmra.mrb[10].mxu0 %v5075_v22 }
  0xff   : > { %3489 = vmatprep.mubr.f32.mxu0 %v5076_v0 }
 0x100   : > { %3679 = vmatmul.mubr.f32.gmra.mrb[10].mxu1 %v5077_v32 }
 0x101   : > { %3681 = vmatprep.mubr.f32.mxu1 %v5078_v30 }
 0x102   : > { %3490 = vmatmul.mubr.f32.gmra.mrb[12].mxu0 %v5079_v52 }
 0x103   : > { %3492 = vmatprep.mubr.f32.mxu0 %v5080_v15 }
 0x104   : > { %3682 = vmatmul.mubr.f32.gmra.mrb[12].mxu1 %v5081_v43 }
 0x105   : > { %3684 = vmatprep.mubr.f32.mxu1 %v5082_v12 }
 0x106   : > { %3493 = vmatmul.mubr.f32.gmra.mrb[14].mxu0 %v5083_v33 }
 0x108   : > { %3685 = vmatmul.mubr.f32.gmra.mrb[14].mxu1 %v5084_v46 }
 0x1bd   : > { %v3473_v51 = vpop.f32.mrb[0].mxu0 }
 0x1be   : > { %2779 = vst [vmem:[%s4790_s25 + $0x10] sm:$0xff] %v3473_v51  ;;  %v2853_v57 = vmul.f32 %v3473_v51, %v3473_v51  ;;  %v1501_v4 = vpop.f32.mrb[1].mxu0 }
 0x1bf   : > { %v3665_v5 = vpop.f32.mrb[0].mxu1  ;;  %2777 = vst [vmem:[%s4790_s25] sm:$0xff] %v1501_v4  ;;  %v2809_v25 = vadd.f32 %v3473_v51, %v1501_v4  ;;  %v2851_v39 = vmul.f32 %v1501_v4, %v1501_v4 }
 0x1c0   : > { %2780 = vst [vmem:[%s4790_s25 + $0x18] sm:$0xff] %v3665_v5  ;;  %v2854_v45 = vmul.f32 %v3665_v5, %v3665_v5  ;;  %v2683_v50 = vpop.f32.mrb[1].mxu1 }
 0x1c1   : > { %v2883_v6 = vadd.f32 %v2853_v57, %v2851_v39  ;;  %2778 = vst [vmem:[%s4790_s25 + $0x8] sm:$0xff] %v2683_v50  ;;  %v2830_v41 = vadd.f32 %v3665_v5, %v2683_v50  ;;  %v2852_v7 = vmul.f32 %v2683_v50, %v2683_v50  ;;  %v3476_v36 = vpop.f32.mrb[2].mxu0 }
 0x1c2   : > { %2783 = vst [vmem:[%s4790_s25 + $0x30] sm:$0xff] %v3476_v36  ;;  %v1513_v59 = vpop.f32.mrb[3].mxu0  ;;  %v2857_v44 = vmul.f32 %v3476_v36, %v3476_v36 }
 0x1c3   : > { %v2904_v60 = vadd.f32 %v2854_v45, %v2852_v7  ;;  %v3668_v2 = vpop.f32.mrb[2].mxu1  ;;  %2781 = vst [vmem:[%s4790_s25 + $0x20] sm:$0xff] %v1513_v59  ;;  %v2810_v1 = vadd.f32 %v2809_v25, %v1513_v59  ;;  %v2855_v56 = vmul.f32 %v1513_v59, %v1513_v59 }
 0x1c4   : > { %2784 = vst [vmem:[%s4790_s25 + $0x38] sm:$0xff] %v3668_v2  ;;  %v2695_v28 = vpop.f32.mrb[3].mxu1  ;;  %v2858_v58 = vmul.f32 %v3668_v2, %v3668_v2 }
 0x1c5   : > { %v2884_v40 = vadd.f32 %v2883_v6, %v2855_v56  ;;  %2782 = vst [vmem:[%s4790_s25 + $0x28] sm:$0xff] %v2695_v28  ;;  %v2831_v61 = vadd.f32 %v2830_v41, %v2695_v28  ;;  %v2856_v55 = vmul.f32 %v2695_v28, %v2695_v28  ;;  %v3479_v29 = vpop.f32.mrb[4].mxu0  ;;  %v2811_v53 = vadd.f32 %v3476_v36, %v2810_v1 }
 0x1c6   : > { %2787 = vst [vmem:[%s4790_s25 + $0x50] sm:$0xff] %v3479_v29  ;;  %v1525_v11 = vpop.f32.mrb[5].mxu0  ;;  %v2861_v18 = vmul.f32 %v3479_v29, %v3479_v29 }
 0x1c7   : > { %v2905_v63 = vadd.f32 %v2904_v60, %v2856_v55  ;;  %v3671_v34 = vpop.f32.mrb[4].mxu1  ;;  %2785 = vst [vmem:[%s4790_s25 + $0x40] sm:$0xff] %v1525_v11  ;;  %v2812_v24 = vadd.f32 %v2811_v53, %v1525_v11  ;;  %v2859_v35 = vmul.f32 %v1525_v11, %v1525_v11  ;;  %v2885_v38 = vadd.f32 %v2884_v40, %v2857_v44 }
 0x1c8   : > { %2788 = vst [vmem:[%s4790_s25 + $0x58] sm:$0xff] %v3671_v34  ;;  %v2707_v14 = vpop.f32.mrb[5].mxu1  ;;  %v2832_v3 = vadd.f32 %v3668_v2, %v2831_v61  ;;  %v2862_v19 = vmul.f32 %v3671_v34, %v3671_v34 }
 0x1c9   : > { %v2886_v42 = vadd.f32 %v2885_v38, %v2859_v35  ;;  %2786 = vst [vmem:[%s4790_s25 + $0x48] sm:$0xff] %v2707_v14  ;;  %v2860_v31 = vmul.f32 %v2707_v14, %v2707_v14  ;;  %v2906_v62 = vadd.f32 %v2905_v63, %v2858_v58  ;;  %v3482_v17 = vpop.f32.mrb[6].mxu0  ;;  %v2813_v9 = vadd.f32 %v3479_v29, %v2812_v24 }
 0x1ca   : > { %v2833_v49 = vadd.f32 %v2832_v3, %v2707_v14  ;;  %2791 = vst [vmem:[%s4790_s25 + $0x70] sm:$0xff] %v3482_v17  ;;  %v1537_v26 = vpop.f32.mrb[7].mxu0  ;;  %v2865_v23 = vmul.f32 %v3482_v17, %v3482_v17 }
 0x1cb   : > { %v2907_v13 = vadd.f32 %v2906_v62, %v2860_v31  ;;  %v3674_v10 = vpop.f32.mrb[6].mxu1  ;;  %2789 = vst [vmem:[%s4790_s25 + $0x60] sm:$0xff] %v1537_v26  ;;  %v2814_v47 = vadd.f32 %v2813_v9, %v1537_v26  ;;  %v2863_v37 = vmul.f32 %v1537_v26, %v1537_v26  ;;  %v2887_v8 = vadd.f32 %v2886_v42, %v2861_v18 }
 0x1cc   : > { %2792 = vst [vmem:[%s4790_s25 + $0x78] sm:$0xff] %v3674_v10  ;;  %v2719_v54 = vpop.f32.mrb[7].mxu1  ;;  %v2834_v48 = vadd.f32 %v3671_v34, %v2833_v49  ;;  %v2866_v0 = vmul.f32 %v3674_v10, %v3674_v10 }
 0x1cd   : > { %v2888_v27 = vadd.f32 %v2887_v8, %v2863_v37  ;;  %2790 = vst [vmem:[%s4790_s25 + $0x68] sm:$0xff] %v2719_v54  ;;  %v2864_v16 = vmul.f32 %v2719_v54, %v2719_v54  ;;  %v2908_v20 = vadd.f32 %v2907_v13, %v2862_v19  ;;  %v3485_v21 = vpop.f32.mrb[8].mxu0  ;;  %v2815_v22 = vadd.f32 %v3482_v17, %v2814_v47 }
 0x1ce   : > { %v2835_v32 = vadd.f32 %v2834_v48, %v2719_v54  ;;  %2795 = vst [vmem:[%s4790_s25 + $0x90] sm:$0xff] %v3485_v21  ;;  %v1549_v30 = vpop.f32.mrb[9].mxu0  ;;  %v2869_v46 = vmul.f32 %v3485_v21, %v3485_v21 }
 0x1cf   : > { %v2909_v52 = vadd.f32 %v2908_v20, %v2864_v16  ;;  %v3677_v15 = vpop.f32.mrb[8].mxu1  ;;  %2793 = vst [vmem:[%s4790_s25 + $0x80] sm:$0xff] %v1549_v30  ;;  %v2816_v43 = vadd.f32 %v2815_v22, %v1549_v30  ;;  %v2867_v12 = vmul.f32 %v1549_v30, %v1549_v30  ;;  %v2889_v33 = vadd.f32 %v2888_v27, %v2865_v23 }
 0x1d0   : > { %2796 = vst [vmem:[%s4790_s25 + $0x98] sm:$0xff] %v3677_v15  ;;  %v2731_v51 = vpop.f32.mrb[9].mxu1  ;;  %v2836_v57 = vadd.f32 %v3674_v10, %v2835_v32  ;;  %v2870_v50 = vmul.f32 %v3677_v15, %v3677_v15 }
 0x1d1   : > { %v2890_v4 = vadd.f32 %v2889_v33, %v2867_v12  ;;  %2794 = vst [vmem:[%s4790_s25 + $0x88] sm:$0xff] %v2731_v51  ;;  %v2868_v5 = vmul.f32 %v2731_v51, %v2731_v51  ;;  %v2910_v25 = vadd.f32 %v2909_v52, %v2866_v0  ;;  %v3488_v39 = vpop.f32.mrb[10].mxu0  ;;  %v2817_v45 = vadd.f32 %v3485_v21, %v2816_v43 }
 0x1d2   : > { %v2837_v6 = vadd.f32 %v2836_v57, %v2731_v51  ;;  %2799 = vst [vmem:[%s4790_s25 + $0xb0] sm:$0xff] %v3488_v39  ;;  %v1561_v41 = vpop.f32.mrb[11].mxu0  ;;  %v2873_v1 = vmul.f32 %v3488_v39, %v3488_v39 }
 0x1d3   : > { %v2911_v7 = vadd.f32 %v2910_v25, %v2868_v5  ;;  %v3680_v36 = vpop.f32.mrb[10].mxu1  ;;  %2797 = vst [vmem:[%s4790_s25 + $0xa0] sm:$0xff] %v1561_v41  ;;  %v2818_v59 = vadd.f32 %v2817_v45, %v1561_v41  ;;  %v2871_v60 = vmul.f32 %v1561_v41, %v1561_v41  ;;  %v2891_v2 = vadd.f32 %v2890_v4, %v2869_v46 }
 0x1d4   : > { %2800 = vst [vmem:[%s4790_s25 + $0xb8] sm:$0xff] %v3680_v36  ;;  %v2743_v56 = vpop.f32.mrb[11].mxu1  ;;  %v2838_v44 = vadd.f32 %v3677_v15, %v2837_v6  ;;  %v2874_v53 = vmul.f32 %v3680_v36, %v3680_v36 }
 0x1d5   : > { %v2892_v28 = vadd.f32 %v2891_v2, %v2871_v60  ;;  %2798 = vst [vmem:[%s4790_s25 + $0xa8] sm:$0xff] %v2743_v56  ;;  %v2872_v40 = vmul.f32 %v2743_v56, %v2743_v56  ;;  %v2912_v61 = vadd.f32 %v2911_v7, %v2870_v50  ;;  %v3491_v55 = vpop.f32.mrb[12].mxu0  ;;  %v2819_v29 = vadd.f32 %v3488_v39, %v2818_v59 }
 0x1d6   : > { %v2839_v58 = vadd.f32 %v2838_v44, %v2743_v56  ;;  %2803 = vst [vmem:[%s4790_s25 + $0xd0] sm:$0xff] %v3491_v55  ;;  %v1573_v11 = vpop.f32.mrb[13].mxu0  ;;  %v2877_v18 = vmul.f32 %v3491_v55, %v3491_v55 }
 0x1d7   : > { %v2913_v63 = vadd.f32 %v2912_v61, %v2872_v40  ;;  %v3683_v34 = vpop.f32.mrb[12].mxu1  ;;  %2801 = vst [vmem:[%s4790_s25 + $0xc0] sm:$0xff] %v1573_v11  ;;  %v2820_v24 = vadd.f32 %v2819_v29, %v1573_v11  ;;  %v2875_v35 = vmul.f32 %v1573_v11, %v1573_v11  ;;  %v2893_v38 = vadd.f32 %v2892_v28, %v2873_v1 }
 0x1d8   : > { %2804 = vst [vmem:[%s4790_s25 + $0xd8] sm:$0xff] %v3683_v34  ;;  %v2755_v14 = vpop.f32.mrb[13].mxu1  ;;  %v2840_v3 = vadd.f32 %v3680_v36, %v2839_v58  ;;  %v2878_v19 = vmul.f32 %v3683_v34, %v3683_v34 }
 0x1d9   : > { %v2894_v42 = vadd.f32 %v2893_v38, %v2875_v35  ;;  %2802 = vst [vmem:[%s4790_s25 + $0xc8] sm:$0xff] %v2755_v14  ;;  %v2876_v31 = vmul.f32 %v2755_v14, %v2755_v14  ;;  %v2914_v62 = vadd.f32 %v2913_v63, %v2874_v53  ;;  %v3494_v17 = vpop.f32.mrb[14].mxu0  ;;  %v2821_v9 = vadd.f32 %v3491_v55, %v2820_v24 }
 0x1da   : > { %v2841_v49 = vadd.f32 %v2840_v3, %v2755_v14  ;;  %2807 = vst [vmem:[%s4790_s25 + $0xf0] sm:$0xff] %v3494_v17  ;;  %v1585_v26 = vpop.f32.mrb[15].mxu0  ;;  %v2881_v23 = vmul.f32 %v3494_v17, %v3494_v17 }
 0x1db   : > { %v2915_v13 = vadd.f32 %v2914_v62, %v2876_v31  ;;  %v3686_v10 = vpop.f32.mrb[14].mxu1  ;;  %2805 = vst [vmem:[%s4790_s25 + $0xe0] sm:$0xff] %v1585_v26  ;;  %v2822_v47 = vadd.f32 %v2821_v9, %v1585_v26  ;;  %v2879_v37 = vmul.f32 %v1585_v26, %v1585_v26  ;;  %v2895_v8 = vadd.f32 %v2894_v42, %v2877_v18 }
 0x1dc   : > { %2808 = vst [vmem:[%s4790_s25 + $0xf8] sm:$0xff] %v3686_v10  ;;  %v2767_v54 = vpop.f32.mrb[15].mxu1  ;;  %v2842_v48 = vadd.f32 %v3683_v34, %v2841_v49  ;;  %v2882_v0 = vmul.f32 %v3686_v10, %v3686_v10 }
 0x1dd   : > { %v2823_v27 = vadd.f32 %v3494_v17, %v2822_v47  ;;  %v2896_v16 = vadd.f32 %v2895_v8, %v2879_v37  ;;  %2806 = vst [vmem:[%s4790_s25 + $0xe8] sm:$0xff] %v2767_v54  ;;  %v2880_v20 = vmul.f32 %v2767_v54, %v2767_v54  ;;  %v2916_v21 = vadd.f32 %v2915_v13, %v2878_v19 }
 0x1de   : > { %v2843_v22 = vadd.f32 %v2842_v48, %v2767_v54 }
 0x1df   : > { %v2824_v32 = vrot.slane %v2823_v27, 4  ;;  %v2897_v30 = vadd.f32 %v2896_v16, %v2881_v23  ;;  %v2917_v52 = vadd.f32 %v2916_v21, %v2880_v20 }
 0x1e0   : > { %v2844_v15 = vadd.f32 %v3686_v10, %v2843_v22 }
 0x1e1   : > { %v2825_v43 = vadd.f32 %v2824_v32, %v2823_v27  ;;  %v2898_v12 = vrot.slane %v2897_v30, 4  ;;  %v2918_v33 = vadd.f32 %v2917_v52, %v2882_v0 }
 0x1e2   : > { %v2845_v46 = vrot.slane %v2844_v15, 4 }
 0x1e3   : > { %v2826_v51 = vrot.slane %v2825_v43, 2  ;;  %v2899_v57 = vadd.f32 %v2898_v12, %v2897_v30  ;;  %v2919_v4 = vrot.slane %v2918_v33, 4 }
 0x1e4   : > { %v2846_v5 = vadd.f32 %v2845_v46, %v2844_v15 }
 0x1e5   : > { %v2827_v25 = vadd.f32 %v2826_v51, %v2825_v43  ;;  %v2900_v39 = vrot.slane %v2899_v57, 2  ;;  %v2920_v45 = vadd.f32 %v2919_v4, %v2918_v33 }
 0x1e6   : > { %v2847_v50 = vrot.slane %v2846_v5, 2 }
 0x1e7   : > { %v2828_v6 = vrot.slane %v2827_v25, 1  ;;  %v2901_v41 = vadd.f32 %v2900_v39, %v2899_v57  ;;  %v2921_v7 = vrot.slane %v2920_v45, 2 }
 0x1e8   : > { %v2848_v36 = vadd.f32 %v2847_v50, %v2846_v5 }
 0x1e9   : > { %v2902_v59 = vrot.slane %v2901_v41, 1  ;;  %v2922_v60 = vadd.f32 %v2921_v7, %v2920_v45  ;;  %v2829_v1 = vadd.f32 %v2828_v6, %v2827_v25 }
 0x1ea   : > { %v2849_v2 = vrot.slane %v2848_v36, 1 }
 0x1eb   : > { %v2903_v56 = vadd.f32 %v2902_v59, %v2901_v41  ;;  %v2923_v44 = vrot.slane %v2922_v60, 1 }
 0x1ec   : > { %v2850_v40 = vadd.f32 %v2849_v2, %v2848_v36 }
 0x1ed   : > { %v2926_v28 = vsel %vm2925_vm0, %v2829_v1, %v2903_v56  ;;  %v2924_v61 = vadd.f32 %v2923_v44, %v2922_v60 }
 0x1ef   : > { %v2927_v55 = vsel %vm2925_vm0, %v2850_v40, %v2924_v61 }
 0x1f0   : > { %v2930_v29 = vcombine.low %v2926_v28, %v2927_v55 }
 0x1f2   : > { %3058 = vst.sshfl [vmem:[%s264_s29] sm:$0x33 pattern:$0x76325410] %v2930_v29 }
 0x1f3 PF: > { %s16_s18 = sadd.s32 1, %s3957_s18  }
 0x1f4   : > { %p13_p5 = scmp.ge.s32.totalorder %s16_s18, 4  }
 0x1f6   :  { %15 = sbr.rel (!%p13_p5) target bundleno = 1 (0x1), region = 81 }

// kernel: two_tower_forward.4
= control target key start
LH: loop header
LB: loop body
LE: loop exit
PB: predicated region body
PF: predicated region fallthrough
CT: control target
= control target key end

     0   :  { %s4210_s21 = smov 0   ;;  %s5359_s0 = inlined_call_operand.vmem [shape: f32[256,256], index: 0, kind: input, shape index: {}]   ;;  %s5360_s1 = inlined_call_operand.vmem [shape: f32[2,2,256], index: 1, kind: input, shape index: {}]   ;;  %s5361_s2 = inlined_call_operand.vmem [shape: f32[2,256], index: 2, kind: input, shape index: {}]   ;;  %s5362_s3 = inlined_call_operand.vmem [shape: f32[32,128], index: 3, kind: input, shape index: {}]   ;;  %s5363_s4 = inlined_call_operand.vmem [shape: f32[32,128], index: 4, kind: input, shape index: {}]   ;;  %s5364_s5 = inlined_call_operand.vmem [shape: f32[256,256], index: 5, kind: output, shape index: {0}]   ;;  %s5365_s6 = inlined_call_operand.vmem [shape: f32[2,2,256], index: 6, kind: output, shape index: {1}]  }
   0x1 LB: > { %s4216_s22 = sadd.s32 4294967295, %s4172_s21   ;;  %p3254_p0 = scmp.ge.s32.totalorder %s4172_s21, 1  ;;  %s4172_s21 = sphi %s4210_s21, %s17_s21  }
   0x2   : > { %p217_p1 = scmp.lt.s32.totalorder %s4172_s21, 3 }
   0x4   : > { %p218_p2 = pnand %p3254_p0, %p217_p1 }
   0x6   : > { %221 = sbr.rel (%p218_p2) target bundleno = 546 (0x222), region = 40 }
   0xd   : > { %v631_v0 = vld [vmem:[%s5362_s3] sm:$0xff]  ;;  %v632_v1 = vld [vmem:[%s5362_s3 + $0x8] sm:$0xff]  ;;  %vm297_vm0 = vcmask 1041408   ;;  %v4235_v7 = vld [vmem:[%s5362_s3 + $0x10] sm:$0xff]  ;;  %v4174_v60 = vmov 1966171168   ;;  %v329_v62 = vlaneseq }
   0xe   : > { %v1814_v2 = vld [vmem:[%s5363_s4] sm:$0xff]  ;;  %v685_v3 = vand.u32 4294901760, %v631_v0  ;;  %v688_v4 = vand.u32 4294901760, %v632_v1  ;;  %v1815_v5 = vld [vmem:[%s5363_s4 + $0x8] sm:$0xff]  ;;  %v4240_v8 = vld [vmem:[%s5362_s3 + $0x18] sm:$0xff]  ;;  %v691_v10 = vand.u32 4294901760, %v4235_v7  ;;  %v327_v61 = vunpack.c.l.s4 %v4174_v60 }
   0xf   : > { %v1867_v6 = vand.u32 4294901760, %v1814_v2  ;;  %v1870_v9 = vand.u32 4294901760, %v1815_v5  ;;  %v694_v11 = vand.u32 4294901760, %v4240_v8  ;;  %v4247_v12 = vld [vmem:[%s5363_s4 + $0x10] sm:$0xff]  ;;  %v4252_v13 = vld [vmem:[%s5363_s4 + $0x18] sm:$0xff]  ;;  %s3255_s19 = sshll.u32 %s4216_s22, 4 }
  0x10   : > { %v4254_v14 = vpack.c.bf16 %v688_v4, %v685_v3  ;;  %v1873_v15 = vand.u32 4294901760, %v4247_v12  ;;  %v1876_v16 = vand.u32 4294901760, %v4252_v13  ;;  %v3263_v17 = vld.sshfl [vmem:[%s5360_s1] sm:$0x33 pattern:$0x76325410]  ;;  %v4261_v18 = vsub.f32 %v631_v0, %v685_v3 }
  0x11   : > { %v4263_v19 = vpack.c.bf16 %v1870_v9, %v1867_v6  ;;  %v4269_v20 = vpack.c.bf16 %v694_v11, %v691_v10  ;;  %v3264_v21 = vld.sshfl [vmem:[%s5360_s1 + $0x4] sm:$0x33 pattern:$0x76325410]  ;;  %v284_v22 = vcombine.high %v3263_v17, %v3263_v17  ;;  %v298_v23 = vsel %vm297_vm0, %v3263_v17, 0.0  ;;  %s3266_s20 = sshll.u32 %s4216_s22, 7 }
  0x12   : > { %5493 = vst [vmem:[#allocation2_spill] sm:$0xff] %v4254_v14  ;;  %5494 = vst [vmem:[#allocation3_spill] sm:$0xff] %v4261_v18  ;;  %3898 = vmatprep.subr.bf16.mxu0 %v4254_v14  ;;  %v4280_v24 = vpack.c.bf16 %v1876_v16, %v1873_v15  ;;  %v292_v25 = vcombine.high %v3264_v21, %v3264_v21  ;;  %v299_v26 = vsel %vm297_vm0, %v3264_v21, 0.0  ;;  %v5373_v30 = vand.u32 4294901760, %v4261_v18  ;;  %p4334_p3 = scmp.lt.s32.totalorder %s3255_s19, 31  ;;  %p268_p4 = scmp.lt.s32.totalorder %s4216_s22, 1 }
  0x13   : > { %5495 = vst [vmem:[#allocation4_spill] sm:$0xff] %v4263_v19  ;;  %5496 = vst [vmem:[#allocation5_spill] sm:$0xff] %v4269_v20  ;;  %3946 = vmatprep.subr.bf16.mxu1 %v4263_v19  ;;  %3900 = vmatpush3.bf16.msra.mxu0 %v4254_v14  ;;  %v300_v27 = vadd.f32 %v299_v26, %v298_v23  ;;  %v301_v28 = vsel %vm297_vm0, %v284_v22, 0.0  ;;  %v4290_v31 = vsub.f32 %v632_v1, %v688_v4  ;;  %vm635_vm3 = vcmask 261120  }
  0x14   : > { %5497 = vst [vmem:[#allocation6_spill] sm:$0xff] %v4280_v24  ;;  %3948 = vmatpush3.bf16.msra.mxu1 %v4263_v19  ;;  %3902 = vmatprep.subr.bf16.mxu0 %v4269_v20  ;;  %v302_v29 = vsel %vm297_vm0, %v292_v25, 0.0  ;;  %v917_v34 = vsub.f32 %v4261_v18, %v5373_v30  ;;  %v4304_v38 = vsub.f32 %v1814_v2, %v1867_v6  ;;  %v328_v63 = vunpack.c.0.s8 %v327_v61  ;;  %s5643_s19 = smov (!%p4334_p3, %s3255_s19), 31  ;;  %s5645_s22 = smov (!%p268_p4, %s4216_s22), 1 }
  0x15   : > { %5498 = vst [vmem:[#allocation7_spill] sm:$0xff] %v4290_v31  ;;  %3950 = vmatprep.subr.bf16.mxu1 %v4280_v24  ;;  %v303_v32 = vadd.f32 %v302_v29, %v301_v28  ;;  %v4293_v33 = vmul.f32 0.005, %v300_v27  ;;  %v5372_v35 = vand.u32 4294901760, %v4290_v31  ;;  %v4310_v41 = vsub.f32 %v1815_v5, %v1870_v9  ;;  %s3270_s24 = sshll.u32 %s5643_s19, 4  ;;  %s3272_s11 = sshll.u32 %s5645_s22, 2 }
  0x16   : > { %5499 = vst [vmem:[#allocation8_spill] sm:$0xff] %v4304_v38  ;;  %v918_v39 = vand.u32 4294901760, %v917_v34  ;;  %v5371_v44 = vand.u32 4294901760, %v4304_v38  ;;  %v4331_v0 = vshrl.u32 %v329_v62, 7  ;;  %v4341_v1 = vsub.f32 %v4235_v7, %v691_v10  ;;  %s4435_s29 = scalar_lea.vmem %s5359_s0, %s3270_s24  ;;  %s5317_s10 = scalar_lea.vmem %s5364_s5, %s3270_s24 }
  0x17   : > { %3904 = vmatpush3.bf16.msra.mxu0 %v4269_v20  ;;  %v4300_v36 = vmul.f32 0.005, %v303_v32  ;;  %v306_v37 = vmul.f32 %v4293_v33, %v4293_v33  ;;  %v924_v40 = vsub.f32 %v4290_v31, %v5372_v35  ;;  %5500 = vst [vmem:[#allocation9_spill] sm:$0xff] %v4310_v41  ;;  %v5370_v46 = vand.u32 4294901760, %v4310_v41  ;;  %v403_v20 = vld [vmem:[%s4435_s29 + $0xd0] sm:$0xff]  ;;  %v404_v14 = vld [vmem:[%s4435_s29 + $0xd8] sm:$0xff]  ;;  %s272_s14 = scalar_lea.vmem %s5365_s6, %s3272_s11 }
  0x18   : > { %3952 = vmatpush3.bf16.msra.mxu1 %v4280_v24  ;;  %v2099_v49 = vsub.f32 %v4304_v38, %v5371_v44  ;;  %5502 = vst [vmem:[#allocation10_spill] sm:$0xff] %v4341_v1  ;;  %v4346_v2 = vsub.f32 %v4240_v8, %v694_v11  ;;  %v4348_v4 = vstv %s3266_s20  ;;  %v4353_v5 = vsub.f32 %v4247_v12, %v1873_v15  ;;  %v387_v44 = vld [vmem:[%s4435_s29 + $0x50] sm:$0xff] }
  0x19   : > { %v307_v42 = vmul.f32 %v4300_v36, %v4300_v36  ;;  %v310_v43 = vrot.slane %v306_v37, 7  ;;  %v925_v45 = vand.u32 4294901760, %v924_v40  ;;  %v2106_v51 = vsub.f32 %v4310_v41, %v5370_v46  ;;  %v386_v46 = vld [vmem:[%s4435_s29 + $0x48] sm:$0xff]  ;;  %v407_v24 = vld [vmem:[%s4435_s29 + $0xf0] sm:$0xff] }
  0x1a   : > { %v2100_v54 = vand.u32 4294901760, %v2099_v49  ;;  %5503 = vst [vmem:[#allocation11_spill] sm:$0xff] %v4346_v2  ;;  %5504 = vst [vmem:[#allocation12_spill] sm:$0xff] %v4353_v5  ;;  %v4358_v6 = vsub.f32 %v4252_v13, %v1876_v16  ;;  %v533_v7 = vadd.s32 120, %v4331_v0  ;;  %v4362_v9 = vsub.s32 %v328_v63, %v4331_v0 }
  0x1b   : > { %v311_v47 = vrot.slane %v307_v42, 7  ;;  %v314_v48 = vsub.f32 %v4293_v33, %v310_v43  ;;  %v4320_v50 = vpack.c.bf16 %v925_v45, %v918_v39  ;;  %v2107_v55 = vand.u32 4294901760, %v2106_v51  ;;  %v318_v43 = vld [vmem:[%s5361_s2] ss:$2 sm:$0x3] }
  0x1c   : > { %5505 = vst [vmem:[#allocation13_spill] sm:$0xff] %v4358_v6  ;;  %v4366_v8 = vpack.c.bf16 %v4290_v31, %v4261_v18  ;;  %v4370_v10 = vpack.c.bf16 %v4310_v41, %v4304_v38  ;;  %v4374_v11 = vpack.c.bf16 %v4346_v2, %v4341_v1  ;;  %v4377_v13 = vadd.s32 %v4348_v4, %v533_v7  ;;  %v399_v41 = vld [vmem:[%s4435_s29 + $0xb0] sm:$0xff]  ;;  %v408_v31 = vld [vmem:[%s4435_s29 + $0xf8] sm:$0xff] }
  0x1d   : > { %v315_v52 = vsub.f32 %v4300_v36, %v311_v47  ;;  %v316_v53 = vmax.f32 %v314_v48, 0.0  ;;  %3906 = vmatprep.subr.bf16.mxu0 %v4320_v50  ;;  %v4327_v58 = vpack.c.bf16 %v2107_v55, %v2100_v54  ;;  %v4381_v15 = vpack.c.bf16 %v4358_v6, %v4353_v5 }
  0x1e   : > { %5506 = vst [vmem:[#allocation14_spill] sm:$0xff] %v4374_v11  ;;  %5507 = vst [vmem:[#allocation15_spill] sm:$0xff] %v4377_v13  ;;  %v519_v17 = vadd.s32 8, %v4331_v0  ;;  %v520_v21 = vadd.s32 16, %v4331_v0  ;;  %v521_v22 = vadd.s32 24, %v4331_v0  ;;  %v5369_v23 = vand.u32 4294901760, %v4341_v1 }
  0x1f   : > { %v317_v56 = vmax.f32 %v315_v52, 0.0  ;;  %v319_v57 = vadd.f32 1e-05, %v316_v53  ;;  %3954 = vmatprep.subr.bf16.mxu1 %v4327_v58  ;;  %5508 = vst [vmem:[#allocation16_spill] sm:$0xff] %v4381_v15  ;;  %v5368_v25 = vand.u32 4294901760, %v4346_v2  ;;  %v5367_v26 = vand.u32 4294901760, %v4353_v5 }
  0x20   : > { %v5366_v28 = vand.u32 4294901760, %v4358_v6  ;;  %v5375_v29 = vsub.s32 0, %v4331_v0  ;;  %v5374_v32 = vsub.s32 1, %v4331_v0  ;;  %v522_v34 = vadd.s32 32, %v4331_v0  ;;  %v406_v15 = vld [vmem:[%s4435_s29 + $0xe8] sm:$0xff] }
  0x21   : > { %v320_v59 = vadd.f32 1e-05, %v317_v56  ;;  %4162 = vrsqrt.f32 %v319_v57  ;;  %v4401_v39 = vadd.s32 %v4348_v4, %v4331_v0  ;;  %v4404_v40 = vadd.s32 %v4348_v4, %v519_v17 }
  0x22   : > { %v4407_v42 = vadd.s32 %v4348_v4, %v520_v21  ;;  %v4413_v45 = vadd.s32 %v4348_v4, %v521_v22  ;;  %v931_v47 = vsub.f32 %v4341_v1, %v5369_v23  ;;  %v938_v48 = vsub.f32 %v4346_v2, %v5368_v25  ;;  %v377_v22 = vld [vmem:[%s4435_s29] sm:$0xff]  ;;  %v382_v25 = vld [vmem:[%s4435_s29 + $0x28] sm:$0xff]  ;;  %v384_v23 = vld [vmem:[%s4435_s29 + $0x38] sm:$0xff] }
  0x23   : > { %4164 = vrsqrt.f32 %v320_v59  ;;  %v2113_v49 = vsub.f32 %v4353_v5, %v5367_v26  ;;  %v523_v52 = vadd.s32 40, %v4331_v0  ;;  %v524_v53 = vadd.s32 48, %v4331_v0  ;;  %v394_v2 = vld [vmem:[%s4435_s29 + $0x88] sm:$0xff] }
  0x24   : > { %v2120_v54 = vsub.f32 %v4358_v6, %v5366_v28  ;;  %v4438_v55 = vadd.s32 %v4348_v4, %v522_v34  ;;  %v525_v56 = vadd.s32 56, %v4331_v0  ;;  %v526_v57 = vadd.s32 64, %v4331_v0  ;;  %v391_v6 = vld [vmem:[%s4435_s29 + $0x70] sm:$0xff]  ;;  %v398_v1 = vld [vmem:[%s4435_s29 + $0xa8] sm:$0xff] }
  0x25   : > { %v527_v59 = vadd.s32 72, %v4331_v0  ;;  %v528_v61 = vadd.s32 80, %v4331_v0  ;;  %v529_v62 = vadd.s32 88, %v4331_v0  ;;  %v530_v63 = vadd.s32 96, %v4331_v0 }
  0x26   : > { %v939_v7 = vand.u32 4294901760, %v938_v48  ;;  %v2121_v34 = vand.u32 4294901760, %v2120_v54  ;;  %v381_v48 = vld [vmem:[%s4435_s29 + $0x20] sm:$0xff]  ;;  %v4471_v28 = vadd.s32 %v4348_v4, %v526_v57  ;;  %vm551_vm1 = vcmp.lt.s32.totalorder %v4401_v39, 200 }
  0x27   : > { %v385_v57 = vld [vmem:[%s4435_s29 + $0x40] sm:$0xff]  ;;  %vm552_vm2 = vcmp.lt.s32.totalorder %v4404_v40, 200  ;;  %vm553_vm4 = vcmp.lt.s32.totalorder %v4407_v42, 200  ;;  %vm554_vm5 = vcmp.lt.s32.totalorder %v4413_v45, 200  ;;  %vm555_vm6 = vcmp.lt.s32.totalorder %v4438_v55, 200 }
  0x28   : > { %vm559_vm10 = vcmp.lt.s32.totalorder %v4471_v28, 200 }
  0x2b   : > { %v4163_v3 = vpop.eup %4162 }
  0x2d   : > { %v4165_v12 = vpop.eup %4164 }
  0x2e   : > { %v325_v16 = vcombine.low %v4163_v3, %v4165_v12  ;;  %v932_v3 = vand.u32 4294901760, %v931_v47  ;;  %v2114_v12 = vand.u32 4294901760, %v2113_v49  ;;  %v380_v47 = vld [vmem:[%s4435_s29 + $0x18] sm:$0xff]  ;;  %v4462_v49 = vadd.s32 %v4348_v4, %v523_v52  ;;  %v383_v52 = vld [vmem:[%s4435_s29 + $0x30] sm:$0xff] }
  0x30   : > { %v332_v27 = vrot.slane %v325_v16, %v4362_v9  ;;  %v531_v16 = vadd.s32 104, %v4331_v0  ;;  %v4489_v35 = vpack.c.bf16 %v939_v7, %v932_v3  ;;  %v390_v3 = vld [vmem:[%s4435_s29 + $0x68] sm:$0xff]  ;;  %v4506_v7 = vpack.c.bf16 %v2121_v34, %v2114_v12  ;;  %v392_v12 = vld [vmem:[%s4435_s29 + $0x78] sm:$0xff]  ;;  %v393_v34 = vld [vmem:[%s4435_s29 + $0x80] sm:$0xff] }
  0x31   : > { %vm556_vm7 = vcmp.lt.s32.totalorder %v4462_v49, 200 }
  0x32   : > { %v333_v37 = vcombine.high %v332_v27, %v332_v27  ;;  %v378_v27 = vld [vmem:[%s4435_s29 + $0x8] sm:$0xff] }
  0x34   : > { %v340_v51 = vrot.slane %v333_v37, %v4362_v9  ;;  %v532_v37 = vadd.s32 112, %v4331_v0 }
  0x36   : > { %v342_v60 = vmul.f32 %v340_v51, %v318_v43  ;;  %v379_v43 = vld [vmem:[%s4435_s29 + $0x10] sm:$0xff]  ;;  %v4465_v51 = vadd.s32 %v4348_v4, %v524_v53  ;;  %v4481_v53 = vadd.s32 %v4348_v4, %v527_v59  ;;  %v4498_v59 = vadd.s32 %v4348_v4, %v531_v16 }
  0x38   : > { %v4449_v17 = vrot.slane %v342_v60, %v5375_v29  ;;  %v4453_v21 = vrot.slane %v342_v60, %v5374_v32  ;;  %v4468_v60 = vadd.s32 %v4348_v4, %v525_v56  ;;  %v4484_v56 = vadd.s32 %v4348_v4, %v528_v61  ;;  %v388_v32 = vld [vmem:[%s4435_s29 + $0x58] sm:$0xff]  ;;  %v389_v29 = vld [vmem:[%s4435_s29 + $0x60] sm:$0xff] }
  0x39   : > { %vm557_vm8 = vcmp.lt.s32.totalorder %v4465_v51, 200  ;;  %vm560_vm11 = vcmp.lt.s32.totalorder %v4481_v53, 200  ;;  %vm564_vm15 = vcmp.lt.s32.totalorder %v4498_v59, 200 }
  0x3a   : > { %v356_v54 = vmul.f32 %v4449_v17, %v4293_v33  ;;  %v357_v26 = vmul.f32 %v4453_v21, %v4300_v36  ;;  %v4492_v33 = vadd.s32 %v4348_v4, %v529_v62  ;;  %v4495_v36 = vadd.s32 %v4348_v4, %v530_v63  ;;  %v3265_v63 = vld [vmem:[%s5361_s2 + $0x1] ss:$2 sm:$0x3] }
  0x3b   : > { %v4501_v61 = vmul.f32 %v377_v22, %v4449_v17  ;;  %v4509_v62 = vadd.s32 %v4348_v4, %v532_v37  ;;  %v411_v16 = vmul.f32 %v379_v43, %v4449_v17  ;;  %v412_v22 = vmul.f32 %v380_v47, %v4453_v21  ;;  %v395_v43 = vld [vmem:[%s4435_s29 + $0x90] sm:$0xff]  ;;  %v396_v47 = vld [vmem:[%s4435_s29 + $0x98] sm:$0xff] }
  0x3c   : > { %v360_v30 = vcombine.low %v356_v54, %v357_v26  ;;  %v410_v26 = vmul.f32 %v378_v27, %v4453_v21  ;;  %v413_v54 = vmul.f32 %v381_v48, %v4449_v17  ;;  %v414_v37 = vmul.f32 %v382_v25, %v4453_v21 }
  0x3d   : > { %5509 = vst [vmem:[#allocation17_spill] sm:$0xff] %v4509_v62  ;;  %v415_v5 = vmul.f32 %v383_v52, %v4449_v17  ;;  %v416_v27 = vmul.f32 %v384_v23, %v4453_v21  ;;  %v4531_v48 = vmul.f32 %v385_v57, %v4449_v17  ;;  %v4537_v25 = vmul.f32 %v387_v44, %v4449_v17  ;;  %v397_v52 = vld [vmem:[%s4435_s29 + $0xa0] sm:$0xff] }
  0x3e   : > { %v367_v4 = vrot.slane %v360_v30, %v4362_v9  ;;  %v4534_v30 = vmul.f32 %v386_v46, %v4453_v21  ;;  %v4540_v23 = vmul.f32 %v388_v32, %v4453_v21  ;;  %v4547_v57 = vmul.f32 %v389_v29, %v4449_v17  ;;  %v400_v32 = vld [vmem:[%s4435_s29 + $0xb8] sm:$0xff] }
  0x3f   : > { %v4550_v46 = vmul.f32 %v390_v3, %v4453_v21  ;;  %v4553_v44 = vmul.f32 %v391_v6, %v4449_v17  ;;  %v4559_v18 = vmul.f32 %v392_v12, %v4453_v21  ;;  %v4565_v29 = vmul.f32 %v394_v2, %v4453_v21  ;;  %v401_v6 = vld [vmem:[%s4435_s29 + $0xc0] sm:$0xff] }
  0x40   : > { %v374_v38 = vrot.slane %v367_v4, %v4362_v9  ;;  %v4562_v9 = vmul.f32 %v393_v34, %v4449_v17  ;;  %v4568_v3 = vmul.f32 %v395_v43, %v4449_v17  ;;  %v402_v4 = vld [vmem:[%s4435_s29 + $0xc8] sm:$0xff]  ;;  %v4576_v12 = vmul.f32 %v396_v47, %v4453_v21  ;;  %v405_v43 = vld [vmem:[%s4435_s29 + $0xe0] sm:$0xff] }
  0x41   : > { %v4579_v34 = vmul.f32 %v397_v52, %v4449_v17  ;;  %v4582_v2 = vmul.f32 %v398_v1, %v4453_v21  ;;  %v4588_v11 = vmul.f32 %v399_v41, %v4449_v17  ;;  %v4597_v47 = vmul.f32 %v408_v31, %v4453_v21 }
  0x42   : > { %v376_v19 = vsub.f32 %v3265_v63, %v374_v38  ;;  %v4591_v38 = vmul.f32 %v400_v32, %v4453_v21  ;;  %v4594_v63 = vmul.f32 %v407_v24, %v4449_v17  ;;  %v5512_v52 = vsub.s32 0, %v4331_v0 }
  0x43   : > { %5511 = vst [vmem:[#allocation19_spill] sm:$0xff] %v4597_v47  ;;  %v5513_v1 = vsub.s32 1, %v4331_v0  ;;  %v4608_v41 = vmul.f32 %v401_v6, %v4449_v17  ;;  %v4611_v32 = vmul.f32 %v402_v4, %v4453_v21  ;;  %v4614_v24 = vmul.f32 %v403_v20, %v4449_v17 }
  0x44   : > { %5510 = vst [vmem:[#allocation18_spill] sm:$0xff] %v4594_v63  ;;  %v4601_v13 = vrot.slane %v376_v19, %v5512_v52  ;;  %v4617_v31 = vmul.f32 %v404_v14, %v4453_v21  ;;  %v4620_v47 = vmul.f32 %v405_v43, %v4449_v17  ;;  %v4623_v52 = vmul.f32 %v406_v15, %v4453_v21 }
  0x45   : > { %v4605_v62 = vrot.slane %v376_v19, %v5513_v1  ;;  %vm558_vm9 = vcmp.lt.s32.totalorder %v4468_v60, 200  ;;  %vm561_vm12 = vcmp.lt.s32.totalorder %v4484_v56, 200  ;;  %vm562_vm13 = vcmp.lt.s32.totalorder %v4492_v33, 200 }
  0x46   : > { %5514 = vst [vmem:[#allocation20_spill] sm:$0xff] %v4620_v47  ;;  %5515 = vst [vmem:[#allocation21_spill] sm:$0xff] %v4623_v52  ;;  %v452_v19 = vadd.f32 %v4601_v13, %v4501_v61  ;;  %v454_v6 = vadd.f32 %v4601_v13, %v411_v16  ;;  %v456_v20 = vadd.f32 %v4601_v13, %v413_v54  ;;  %vm563_vm14 = vcmp.lt.s32.totalorder %v4495_v36, 200 }
  0x47   : > { %v453_v0 = vadd.f32 %v4605_v62, %v410_v26  ;;  %v455_v4 = vadd.f32 %v4605_v62, %v412_v22  ;;  %v457_v14 = vadd.f32 %v4605_v62, %v414_v37  ;;  %v458_v1 = vadd.f32 %v4601_v13, %v415_v5 }
  0x48   : > { %v459_v17 = vadd.f32 %v4605_v62, %v416_v27  ;;  %v484_v43 = vmax.f32 %v452_v19, 0.0  ;;  %v486_v21 = vmax.f32 %v454_v6, 0.0  ;;  %v488_v52 = vmax.f32 %v456_v20, 0.0 }
  0x49   : > { %v485_v15 = vmax.f32 %v453_v0, 0.0  ;;  %v487_v63 = vmax.f32 %v455_v4, 0.0  ;;  %v489_v61 = vmax.f32 %v457_v14, 0.0  ;;  %v490_v47 = vmax.f32 %v458_v1, 0.0 }
  0x4a   : > { %v491_v26 = vmax.f32 %v459_v17, 0.0  ;;  %v599_v16 = vsel %vm551_vm1, %v484_v43, 0.0  ;;  %v601_v54 = vsel %vm552_vm2, %v486_v21, 0.0  ;;  %v603_v40 = vsel %vm553_vm4, %v488_v52, 0.0 }
  0x4b   : > { %v600_v22 = vsel %vm551_vm1, %v485_v15, 0.0  ;;  %v602_v5 = vsel %vm552_vm2, %v487_v63, 0.0  ;;  %v637_v37 = vsel %vm635_vm3, %v599_v16, 0  ;;  %v640_v19 = vsel %vm635_vm3, %v601_v54, 0 }
  0x4c   : > { %v1819_v27 = vsel %vm635_vm3, %v600_v22, 0  ;;  %v1822_v0 = vsel %vm635_vm3, %v602_v5, 0  ;;  %v4646_v6 = vand.u32 4294901760, %v637_v37  ;;  %v4650_v39 = vand.u32 4294901760, %v640_v19 }
  0x4d   : > { %v4648_v4 = vand.u32 4294901760, %v1819_v27  ;;  %v4652_v20 = vand.u32 4294901760, %v1822_v0  ;;  %v604_v63 = vsel %vm553_vm4, %v489_v61, 0.0  ;;  %v605_v14 = vsel %vm554_vm5, %v490_v47, 0.0 }
  0x4e   : > { %v606_v1 = vsel %vm554_vm5, %v491_v26, 0.0  ;;  %v4663_v17 = vsub.f32 %v637_v37, %v4646_v6  ;;  %v4669_v15 = vsub.f32 %v640_v19, %v4650_v39  ;;  %v643_v42 = vsel %vm635_vm3, %v603_v40, 0 }
  0x4f   : > { %5516 = vst [vmem:[#allocation22_spill] sm:$0xff] %v4652_v20  ;;  %v4666_v43 = vsub.f32 %v1819_v27, %v4648_v4  ;;  %v4672_v52 = vsub.f32 %v1822_v0, %v4652_v20  ;;  %v1825_v21 = vsel %vm635_vm3, %v604_v63, 0  ;;  %v646_v47 = vsel %vm635_vm3, %v605_v14, 0 }
  0x50   : > { %5517 = vst [vmem:[#allocation23_spill] sm:$0xff] %v4663_v17  ;;  %5519 = vst [vmem:[#allocation25_spill] sm:$0xff] %v4669_v15  ;;  %v1828_v45 = vsel %vm635_vm3, %v606_v1, 0  ;;  %v5395_v61 = vand.u32 4294901760, %v4663_v17  ;;  %v5403_v16 = vand.u32 4294901760, %v4669_v15  ;;  %v4684_v54 = vand.u32 4294901760, %v643_v42 }
  0x51   : > { %5518 = vst [vmem:[#allocation24_spill] sm:$0xff] %v4666_v43  ;;  %5520 = vst [vmem:[#allocation26_spill] sm:$0xff] %v4672_v52  ;;  %v5398_v26 = vand.u32 4294901760, %v4666_v43  ;;  %v5406_v22 = vand.u32 4294901760, %v4672_v52  ;;  %v4686_v5 = vand.u32 4294901760, %v1825_v21  ;;  %v4688_v37 = vand.u32 4294901760, %v646_v47 }
  0x52   : > { %v4690_v27 = vand.u32 4294901760, %v1828_v45  ;;  %v756_v19 = vsub.f32 %v4663_v17, %v5395_v61  ;;  %v766_v40 = vsub.f32 %v4669_v15, %v5403_v16  ;;  %v4705_v14 = vsub.f32 %v643_v42, %v4684_v54 }
  0x53   : > { %v1938_v0 = vsub.f32 %v4666_v43, %v5398_v26  ;;  %v1948_v63 = vsub.f32 %v4672_v52, %v5406_v22  ;;  %v4708_v1 = vsub.f32 %v1825_v21, %v4686_v5  ;;  %v4711_v61 = vsub.f32 %v646_v47, %v4688_v37 }
  0x54   : > { %v4714_v17 = vsub.f32 %v1828_v45, %v4690_v27  ;;  %v757_v26 = vand.u32 4294901760, %v756_v19  ;;  %v767_v20 = vand.u32 4294901760, %v766_v40  ;;  %v5423_v15 = vand.u32 4294901760, %v4705_v14 }
  0x55   : > { %v1939_v43 = vand.u32 4294901760, %v1938_v0  ;;  %v1949_v16 = vand.u32 4294901760, %v1948_v63  ;;  %v5420_v22 = vand.u32 4294901760, %v4708_v1  ;;  %v5415_v42 = vand.u32 4294901760, %v4711_v61 }
  0x56   : > { %v5409_v52 = vand.u32 4294901760, %v4714_v17  ;;  %3521 = vmatprep.mubr.f32.mxu0 %v757_v26  ;;  %v460_v21 = vadd.f32 %v4601_v13, %v4531_v48  ;;  %v461_v47 = vadd.f32 %v4605_v62, %v4534_v30  ;;  %v462_v45 = vadd.f32 %v4601_v13, %v4537_v25 }
  0x57   : > { %3713 = vmatprep.mubr.f32.mxu1 %v1939_v43  ;;  %3522 = vmatmul.mubr.f32.vlgmr.msra.gmra.mrb[0].mxu0 %v767_v20  ;;  %v776_v19 = vsub.f32 %v4705_v14, %v5423_v15  ;;  %v1958_v43 = vsub.f32 %v4708_v1, %v5420_v22  ;;  %v786_v48 = vsub.f32 %v4711_v61, %v5415_v42  ;;  %vm3144_vm2 = vcmask 1040384  }
  0x58   : > { %3714 = vmatmul.mubr.f32.vlgmr.msra.gmra.mrb[0].mxu1 %v1949_v16  ;;  %3908 = vmatpush3.bf16.msra.mxu0 %v4320_v50  ;;  %v1968_v30 = vsub.f32 %v4714_v17, %v5409_v52  ;;  %v492_v25 = vmax.f32 %v460_v21, 0.0  ;;  %v493_v20 = vmax.f32 %v461_v47, 0.0  ;;  %v494_v26 = vmax.f32 %v462_v45, 0.0 }
  0x59   : > { %3956 = vmatpush3.bf16.msra.mxu1 %v4327_v58  ;;  %v777_v16 = vand.u32 4294901760, %v776_v19  ;;  %v1959_v0 = vand.u32 4294901760, %v1958_v43  ;;  %v787_v40 = vand.u32 4294901760, %v786_v48  ;;  %v463_v63 = vadd.f32 %v4605_v62, %v4540_v23  ;;  %3910 = vmatprep.subr.bf16.mxu0 %v4489_v35 }
  0x5a   : > { %3958 = vmatprep.subr.bf16.mxu1 %v4506_v7  ;;  %v1969_v50 = vand.u32 4294901760, %v1968_v30  ;;  %v607_v58 = vsel %vm555_vm6, %v492_v25, 0.0  ;;  %v608_v52 = vsel %vm555_vm6, %v493_v20, 0.0  ;;  %v609_v21 = vsel %vm556_vm7, %v494_v26, 0.0 }
  0x5b   : > { %3524 = vmatprep.mubr.f32.mxu0 %v777_v16  ;;  %3716 = vmatprep.mubr.f32.mxu1 %v1959_v0  ;;  %v649_v47 = vsel %vm635_vm3, %v607_v58, 0  ;;  %v1831_v23 = vsel %vm635_vm3, %v608_v52, 0  ;;  %v652_v45 = vsel %vm635_vm3, %v609_v21, 0  ;;  %v495_v19 = vmax.f32 %v463_v63, 0.0 }
  0x5c   : > { %3525 = vmatmul.mubr.f32.gmra.mrb[2].mxu0 %v787_v40  ;;  %3717 = vmatmul.mubr.f32.gmra.mrb[2].mxu1 %v1969_v50  ;;  %v4755_v43 = vand.u32 4294901760, %v649_v47  ;;  %v4757_v48 = vand.u32 4294901760, %v1831_v23  ;;  %v4759_v55 = vand.u32 4294901760, %v652_v45  ;;  %v464_v30 = vadd.f32 %v4601_v13, %v4547_v57 }
  0x5d   : > { %v610_v25 = vsel %vm556_vm7, %v495_v19, 0.0  ;;  %v465_v52 = vadd.f32 %v4605_v62, %v4550_v46  ;;  %v466_v20 = vadd.f32 %v4601_v13, %v4553_v44  ;;  %v467_v26 = vadd.f32 %v4605_v62, %v4559_v18  ;;  %3912 = vmatpush3.bf16.msra.mxu0 %v4489_v35  ;;  %3960 = vmatpush3.bf16.msra.mxu1 %v4506_v7 }
  0x5e   : > { %v4774_v16 = vsub.f32 %v649_v47, %v4755_v43  ;;  %v4777_v57 = vsub.f32 %v1831_v23, %v4757_v48  ;;  %v4780_v49 = vsub.f32 %v652_v45, %v4759_v55  ;;  %v1834_v46 = vsel %vm635_vm3, %v610_v25, 0  ;;  %3914 = vmatprep.subr.bf16.mxu0 %v4366_v8  ;;  %3962 = vmatprep.subr.bf16.mxu1 %v4370_v10 }
  0x5f   : > { %v4785_v18 = vand.u32 4294901760, %v1834_v46  ;;  %v496_v35 = vmax.f32 %v464_v30, 0.0  ;;  %v497_v44 = vmax.f32 %v465_v52, 0.0  ;;  %v498_v7 = vmax.f32 %v466_v20, 0.0 }
  0x60   : > { %v5412_v0 = vand.u32 4294901760, %v4774_v16  ;;  %v5410_v40 = vand.u32 4294901760, %v4777_v57  ;;  %v5411_v63 = vand.u32 4294901760, %v4780_v49  ;;  %v499_v50 = vmax.f32 %v467_v26, 0.0 }
  0x61   : > { %v4792_v58 = vsub.f32 %v1834_v46, %v4785_v18  ;;  %v611_v21 = vsel %vm557_vm8, %v496_v35, 0.0  ;;  %v612_v47 = vsel %vm557_vm8, %v497_v44, 0.0  ;;  %v613_v23 = vsel %vm558_vm9, %v498_v7, 0.0 }
  0x62   : > { %v796_v45 = vsub.f32 %v4774_v16, %v5412_v0  ;;  %v1978_v19 = vsub.f32 %v4777_v57, %v5410_v40  ;;  %v806_v30 = vsub.f32 %v4780_v49, %v5411_v63  ;;  %v655_v51 = vsel %vm635_vm3, %v611_v21, 0 }
  0x63   : > { %v5414_v25 = vand.u32 4294901760, %v4792_v58  ;;  %v4812_v52 = vand.u32 4294901760, %v655_v51  ;;  %v1837_v20 = vsel %vm635_vm3, %v612_v47, 0  ;;  %v658_v26 = vsel %vm635_vm3, %v613_v23, 0 }
  0x64   : > { %v797_v46 = vand.u32 4294901760, %v796_v45  ;;  %v1979_v35 = vand.u32 4294901760, %v1978_v19  ;;  %v807_v44 = vand.u32 4294901760, %v806_v30  ;;  %v4816_v7 = vand.u32 4294901760, %v1837_v20 }
  0x65   : > { %v1988_v40 = vsub.f32 %v4792_v58, %v5414_v25  ;;  %v4822_v63 = vsub.f32 %v655_v51, %v4812_v52  ;;  %v4824_v21 = vand.u32 4294901760, %v658_v26  ;;  %v614_v0 = vsel %vm558_vm9, %v499_v50, 0.0 }
  0x66   : > { %5521 = vst [vmem:[#allocation27_spill] sm:$0xff] %v4816_v7  ;;  %3527 = vmatprep.mubr.f32.mxu0 %v797_v46  ;;  %3719 = vmatprep.mubr.f32.mxu1 %v1979_v35  ;;  %v4829_v47 = vsub.f32 %v1837_v20, %v4816_v7  ;;  %v1840_v23 = vsel %vm635_vm3, %v614_v0, 0  ;;  %v468_v45 = vadd.f32 %v4601_v13, %v4562_v9 }
  0x67   : > { %5522 = vst [vmem:[#allocation28_spill] sm:$0xff] %v4824_v21  ;;  %v469_v19 = vadd.f32 %v4605_v62, %v4565_v29  ;;  %3528 = vmatmul.mubr.f32.gmra.mrb[4].mxu0 %v807_v44  ;;  %v1989_v30 = vand.u32 4294901760, %v1988_v40  ;;  %v5413_v51 = vand.u32 4294901760, %v4822_v63  ;;  %v4838_v60 = vsub.f32 %v658_v26, %v4824_v21 }
  0x68   : > { %v4840_v50 = vand.u32 4294901760, %v1840_v23  ;;  %v5416_v20 = vand.u32 4294901760, %v4829_v47  ;;  %v500_v0 = vmax.f32 %v468_v45, 0.0  ;;  %v470_v9 = vadd.f32 %v4601_v13, %v4568_v3 }
  0x69   : > { %v501_v46 = vmax.f32 %v469_v19, 0.0  ;;  %3720 = vmatmul.mubr.f32.gmra.mrb[4].mxu1 %v1989_v30  ;;  %v816_v29 = vsub.f32 %v4822_v63, %v5413_v51  ;;  %v5418_v40 = vand.u32 4294901760, %v4838_v60  ;;  %v471_v35 = vadd.f32 %v4605_v62, %v4576_v12 }
  0x6a   : > { %5523 = vst [vmem:[#allocation29_spill] sm:$0xff] %v4840_v50  ;;  %v4852_v26 = vsub.f32 %v1840_v23, %v4840_v50  ;;  %v1998_v44 = vsub.f32 %v4829_v47, %v5416_v20  ;;  %v615_v3 = vsel %vm559_vm10, %v500_v0, 0.0  ;;  %v502_v19 = vmax.f32 %v470_v9, 0.0 }
  0x6b   : > { %v616_v45 = vsel %vm559_vm10, %v501_v46, 0.0  ;;  %v817_v30 = vand.u32 4294901760, %v816_v29  ;;  %v826_v23 = vsub.f32 %v4838_v60, %v5418_v40  ;;  %v661_v12 = vsel %vm635_vm3, %v615_v3, 0 }
  0x6c   : > { %v5417_v51 = vand.u32 4294901760, %v4852_v26  ;;  %v1999_v25 = vand.u32 4294901760, %v1998_v44  ;;  %v4868_v42 = vand.u32 4294901760, %v661_v12  ;;  %v1843_v20 = vsel %vm635_vm3, %v616_v45, 0 }
  0x6d   : > { %v617_v0 = vsel %vm560_vm11, %v502_v19, 0.0  ;;  %3530 = vmatprep.mubr.f32.mxu0 %v817_v30  ;;  %v827_v28 = vand.u32 4294901760, %v826_v23  ;;  %v4876_v9 = vand.u32 4294901760, %v1843_v20  ;;  %v503_v45 = vmax.f32 %v471_v35, 0.0 }
  0x6e   : > { %5524 = vst [vmem:[#allocation30_spill] sm:$0xff] %v4868_v42  ;;  %v2008_v46 = vsub.f32 %v4852_v26, %v5417_v51  ;;  %v664_v29 = vsel %vm635_vm3, %v617_v0, 0  ;;  %3722 = vmatprep.mubr.f32.mxu1 %v1999_v25  ;;  %v4880_v44 = vsub.f32 %v661_v12, %v4868_v42  ;;  %v472_v19 = vadd.f32 %v4601_v13, %v4579_v34 }
  0x6f   : > { %5525 = vst [vmem:[#allocation31_spill] sm:$0xff] %v4876_v9  ;;  %v4882_v3 = vand.u32 4294901760, %v664_v29  ;;  %3531 = vmatmul.mubr.f32.gmra.mrb[6].mxu0 %v827_v28  ;;  %v4887_v23 = vsub.f32 %v1843_v20, %v4876_v9  ;;  %v473_v51 = vadd.f32 %v4605_v62, %v4582_v2  ;;  %v474_v25 = vadd.f32 %v4601_v13, %v4588_v11 }
  0x70   : > { %v2009_v30 = vand.u32 4294901760, %v2008_v46  ;;  %v5419_v12 = vand.u32 4294901760, %v4880_v44  ;;  %v618_v35 = vsel %vm560_vm11, %v503_v45, 0.0  ;;  %v504_v34 = vmax.f32 %v472_v19, 0.0 }
  0x71   : > { %5526 = vst [vmem:[#allocation32_spill] sm:$0xff] %v4882_v3  ;;  %v4895_v0 = vsub.f32 %v664_v29, %v4882_v3  ;;  %v5421_v20 = vand.u32 4294901760, %v4887_v23  ;;  %v1846_v28 = vsel %vm635_vm3, %v618_v35, 0  ;;  %v505_v2 = vmax.f32 %v473_v51, 0.0 }
  0x72   : > { %3723 = vmatmul.mubr.f32.gmra.mrb[6].mxu1 %v2009_v30  ;;  %v506_v46 = vmax.f32 %v474_v25, 0.0  ;;  %v836_v11 = vsub.f32 %v4880_v44, %v5419_v12  ;;  %v4906_v40 = vand.u32 4294901760, %v1846_v28  ;;  %v619_v53 = vsel %vm561_vm12, %v504_v34, 0.0 }
  0x73   : > { %5527 = vst [vmem:[#allocation33_spill] sm:$0xff] %v4895_v0  ;;  %v5422_v29 = vand.u32 4294901760, %v4895_v0  ;;  %v2018_v45 = vsub.f32 %v4887_v23, %v5421_v20  ;;  %v667_v19 = vsel %vm635_vm3, %v619_v53, 0  ;;  %v620_v51 = vsel %vm561_vm12, %v505_v2, 0.0 }
  0x74   : > { %5528 = vst [vmem:[#allocation34_spill] sm:$0xff] %v4906_v40  ;;  %v621_v30 = vsel %vm562_vm13, %v506_v46, 0.0  ;;  %v837_v25 = vand.u32 4294901760, %v836_v11  ;;  %v4922_v12 = vsub.f32 %v1846_v28, %v4906_v40  ;;  %v4924_v34 = vand.u32 4294901760, %v667_v19 }
  0x75   : > { %v846_v35 = vsub.f32 %v4895_v0, %v5422_v29  ;;  %v2019_v22 = vand.u32 4294901760, %v2018_v45  ;;  %v1849_v20 = vsel %vm635_vm3, %v620_v51, 0  ;;  %v670_v53 = vsel %vm635_vm3, %v621_v30, 0  ;;  %v5533_v29 = vld [vmem:[#allocation17_spill] sm:$0xff] }
  0x76   : > { %5529 = vst [vmem:[#allocation35_spill] sm:$0xff] %v4922_v12  ;;  %5530 = vst [vmem:[#allocation36_spill] sm:$0xff] %v4924_v34  ;;  %v475_v56 = vadd.f32 %v4605_v62, %v4591_v38  ;;  %3533 = vmatprep.mubr.f32.mxu0 %v837_v25  ;;  %v5424_v46 = vand.u32 4294901760, %v4922_v12  ;;  %v4933_v11 = vsub.f32 %v667_v19, %v4924_v34  ;;  %v4935_v28 = vand.u32 4294901760, %v1849_v20 }
  0x77   : > { %v847_v2 = vand.u32 4294901760, %v846_v35  ;;  %3725 = vmatprep.mubr.f32.mxu1 %v2019_v22  ;;  %v4937_v45 = vand.u32 4294901760, %v670_v53  ;;  %v476_v30 = vadd.f32 %v4601_v13, %v4608_v41  ;;  %v477_v38 = vadd.f32 %v4605_v62, %v4611_v32 }
  0x78   : > { %5531 = vst [vmem:[#allocation37_spill] sm:$0xff] %v4935_v28  ;;  %v507_v51 = vmax.f32 %v475_v56, 0.0  ;;  %vm565_vm0 = vcmp.lt.s32.totalorder %v5533_v29, 200  ;;  %v2028_v19 = vsub.f32 %v4922_v12, %v5424_v46  ;;  %v5429_v25 = vand.u32 4294901760, %v4933_v11 }
  0x79   : > { %5532 = vst [vmem:[#allocation38_spill] sm:$0xff] %v4937_v45  ;;  %3534 = vmatmul.mubr.f32.gmra.mrb[8].mxu0 %v847_v2  ;;  %v4949_v22 = vsub.f32 %v1849_v20, %v4935_v28  ;;  %v478_v35 = vadd.f32 %v4601_v13, %v4614_v24  ;;  %v4954_v41 = vsub.f32 %v670_v53, %v4937_v45  ;;  %v508_v56 = vmax.f32 %v476_v30, 0.0 }
  0x7a   : > { %v622_v32 = vsel %vm562_vm13, %v507_v51, 0.0  ;;  %v509_v2 = vmax.f32 %v477_v38, 0.0  ;;  %v2029_v15 = vand.u32 4294901760, %v2028_v19  ;;  %v856_v46 = vsub.f32 %v4933_v11, %v5429_v25 }
  0x7b   : > { %5534 = vst [vmem:[#allocation17_spill] sm:$0xff] %v4949_v22  ;;  %5535 = vst [vmem:[#allocation39_spill] sm:$0xff] %v4954_v41  ;;  %v5430_v12 = vand.u32 4294901760, %v4949_v22  ;;  %v1852_v20 = vsel %vm635_vm3, %v622_v32, 0  ;;  %v5433_v0 = vand.u32 4294901760, %v4954_v41  ;;  %v623_v53 = vsel %vm563_vm14, %v508_v56, 0.0 }
  0x7c   : > { %v4964_v24 = vand.u32 4294901760, %v1852_v20  ;;  %v624_v33 = vsel %vm563_vm14, %v509_v2, 0.0  ;;  %3726 = vmatmul.mubr.f32.gmra.mrb[8].mxu1 %v2029_v15  ;;  %v857_v51 = vand.u32 4294901760, %v856_v46  ;;  %v673_v38 = vsel %vm635_vm3, %v623_v53, 0  ;;  %v5540_v53 = vld [vmem:[#allocation20_spill] sm:$0xff] }
  0x7d   : > { %v2038_v30 = vsub.f32 %v4949_v22, %v5430_v12  ;;  %v1855_v19 = vsel %vm635_vm3, %v624_v33, 0  ;;  %v866_v32 = vsub.f32 %v4954_v41, %v5433_v0  ;;  %v4981_v56 = vand.u32 4294901760, %v673_v38  ;;  %v5543_v41 = vld [vmem:[#allocation21_spill] sm:$0xff] }
  0x7e   : > { %5536 = vst [vmem:[#allocation40_spill] sm:$0xff] %v4964_v24  ;;  %v4979_v25 = vsub.f32 %v1852_v20, %v4964_v24  ;;  %v4983_v36 = vand.u32 4294901760, %v1855_v19  ;;  %3536 = vmatprep.mubr.f32.mxu0 %v857_v51  ;;  %v510_v46 = vmax.f32 %v478_v35, 0.0  ;;  %v479_v2 = vadd.f32 %v4605_v62, %v4617_v31 }
  0x7f   : > { %5538 = vst [vmem:[#allocation42_spill] sm:$0xff] %v4981_v56  ;;  %v2039_v15 = vand.u32 4294901760, %v2038_v30  ;;  %v480_v33 = vadd.f32 %v4601_v13, %v5540_v53  ;;  %v867_v12 = vand.u32 4294901760, %v866_v32  ;;  %v4991_v0 = vsub.f32 %v673_v38, %v4981_v56 }
  0x80   : > { %5537 = vst [vmem:[#allocation41_spill] sm:$0xff] %v4979_v25  ;;  %5539 = vst [vmem:[#allocation43_spill] sm:$0xff] %v4983_v36  ;;  %v5436_v22 = vand.u32 4294901760, %v4979_v25  ;;  %v4994_v20 = vsub.f32 %v1855_v19, %v4983_v36  ;;  %v625_v51 = vsel %vm564_vm15, %v510_v46, 0.0  ;;  %v511_v35 = vmax.f32 %v479_v2, 0.0 }
  0x81   : > { %5541 = vst [vmem:[#allocation20_spill] sm:$0xff] %v4991_v0  ;;  %3728 = vmatprep.mubr.f32.mxu1 %v2039_v15  ;;  %v512_v30 = vmax.f32 %v480_v33, 0.0  ;;  %v481_v31 = vadd.f32 %v4605_v62, %v5543_v41  ;;  %3537 = vmatmul.mubr.f32.gmra.mrb[10].mxu0 %v867_v12  ;;  %v5439_v38 = vand.u32 4294901760, %v4991_v0  ;;  %v676_v19 = vsel %vm635_vm3, %v625_v51, 0 }
  0x82   : > { %5542 = vst [vmem:[#allocation44_spill] sm:$0xff] %v4994_v20  ;;  %v2048_v32 = vsub.f32 %v4979_v25, %v5436_v22  ;;  %v5442_v53 = vand.u32 4294901760, %v4994_v20  ;;  %v5006_v15 = vand.u32 4294901760, %v676_v19  ;;  %v626_v46 = vsel %vm564_vm15, %v511_v35, 0.0 }
  0x83   : > { %v627_v2 = vsel %vm565_vm0, %v512_v30, 0.0  ;;  %v513_v41 = vmax.f32 %v481_v31, 0.0  ;;  %v876_v33 = vsub.f32 %v4991_v0, %v5439_v38  ;;  %v1858_v51 = vsel %vm635_vm3, %v626_v46, 0 }
  0x84   : > { %5544 = vst [vmem:[#allocation21_spill] sm:$0xff] %v5006_v15  ;;  %v2049_v12 = vand.u32 4294901760, %v2048_v32  ;;  %v2058_v22 = vsub.f32 %v4994_v20, %v5442_v53  ;;  %v5020_v25 = vsub.f32 %v676_v19, %v5006_v15  ;;  %v5022_v59 = vand.u32 4294901760, %v1858_v51  ;;  %v5550_v20 = vld [vmem:[#allocation18_spill] sm:$0xff] }
  0x85   : > { %v679_v35 = vsel %vm635_vm3, %v627_v2, 0  ;;  %v628_v30 = vsel %vm565_vm0, %v513_v41, 0.0  ;;  %v877_v31 = vand.u32 4294901760, %v876_v33  ;;  %v482_v2 = vadd.f32 %v4601_v13, %v5550_v20  ;;  %v5552_v41 = vld [vmem:[#allocation19_spill] sm:$0xff] }
  0x86   : > { %5545 = vst [vmem:[#allocation45_spill] sm:$0xff] %v5020_v25  ;;  %5546 = vst [vmem:[#allocation46_spill] sm:$0xff] %v5022_v59  ;;  %3729 = vmatmul.mubr.f32.gmra.mrb[10].mxu1 %v2049_v12  ;;  %v2059_v32 = vand.u32 4294901760, %v2058_v22  ;;  %v5027_v38 = vand.u32 4294901760, %v679_v35  ;;  %v1861_v0 = vsel %vm635_vm3, %v628_v30, 0  ;;  %v5445_v53 = vand.u32 4294901760, %v5020_v25 }
  0x87   : > { %v5032_v46 = vsub.f32 %v1858_v51, %v5022_v59  ;;  %v5034_v19 = vand.u32 4294901760, %v1861_v0  ;;  %3539 = vmatprep.mubr.f32.mxu0 %v877_v31  ;;  %v5551_v22 = vld [vmem:[#allocation15_spill] sm:$0xff]  ;;  %v483_v12 = vadd.f32 %v4605_v62, %v5552_v41  ;;  %v514_v13 = vmax.f32 %v482_v2, 0.0 }
  0x88   : > { %5547 = vst [vmem:[#allocation47_spill] sm:$0xff] %v5027_v38  ;;  %3731 = vmatprep.mubr.f32.mxu1 %v2059_v32  ;;  %v5039_v29 = vsub.f32 %v679_v35, %v5027_v38  ;;  %vm566_vm1 = vcmp.lt.s32.totalorder %v5551_v22, 200  ;;  %v886_v33 = vsub.f32 %v5020_v25, %v5445_v53 }
  0x89   : > { %5548 = vst [vmem:[#allocation48_spill] sm:$0xff] %v5032_v46  ;;  %5549 = vst [vmem:[#allocation49_spill] sm:$0xff] %v5034_v19  ;;  %v5446_v51 = vand.u32 4294901760, %v5032_v46  ;;  %v5049_v30 = vsub.f32 %v1861_v0, %v5034_v19  ;;  %v515_v31 = vmax.f32 %v483_v12, 0.0  ;;  %v629_v22 = vsel %vm566_vm1, %v514_v13, 0.0 }
  0x8a   : > { %v5451_v20 = vand.u32 4294901760, %v5039_v29  ;;  %v887_v35 = vand.u32 4294901760, %v886_v33  ;;  %v682_v53 = vsel %vm635_vm3, %v629_v22, 0 }
  0x8b   : > { %v2068_v32 = vsub.f32 %v5032_v46, %v5446_v51  ;;  %v5454_v62 = vand.u32 4294901760, %v5049_v30  ;;  %v630_v0 = vsel %vm566_vm1, %v515_v31, 0.0  ;;  %v5063_v33 = vand.u32 4294901760, %v682_v53 }
  0x8c   : > { %v896_v41 = vsub.f32 %v5039_v29, %v5451_v20  ;;  %3540 = vmatmul.mubr.f32.gmra.mrb[12].mxu0 %v887_v35  ;;  %v1864_v51 = vsel %vm635_vm3, %v630_v0, 0 }
  0x8d   : > { %v2069_v2 = vand.u32 4294901760, %v2068_v32  ;;  %v2078_v12 = vsub.f32 %v5049_v30, %v5454_v62  ;;  %5553 = vst [vmem:[#allocation18_spill] sm:$0xff] %v5063_v33  ;;  %v5066_v25 = vand.u32 4294901760, %v1864_v51  ;;  %v5069_v20 = vsub.f32 %v682_v53, %v5063_v33  ;;  %v5569_v62 = vld [vmem:[#allocation6_spill] sm:$0xff] }
  0x8e   : > { %v897_v46 = vand.u32 4294901760, %v896_v41 }
  0x8f   : > { %5554 = vst [vmem:[#allocation15_spill] sm:$0xff] %v5066_v25  ;;  %3732 = vmatmul.mubr.f32.gmra.mrb[12].mxu1 %v2069_v2  ;;  %v2079_v13 = vand.u32 4294901760, %v2078_v12  ;;  %v5072_v31 = vsub.f32 %v1864_v51, %v5066_v25  ;;  %v5453_v35 = vand.u32 4294901760, %v5069_v20  ;;  %v5556_v51 = vld [vmem:[#allocation14_spill] sm:$0xff]  ;;  %v5557_v2 = vld [vmem:[#allocation16_spill] sm:$0xff]  ;;  %v5560_v12 = vld [vmem:[#allocation23_spill] sm:$0xff] }
  0x90   : > { %3542 = vmatprep.mubr.f32.mxu0 %v897_v46  ;;  %v5555_v46 = vld [vmem:[#allocation22_spill] sm:$0xff] }
  0x91   : > { %3734 = vmatprep.mubr.f32.mxu1 %v2079_v13  ;;  %v5452_v32 = vand.u32 4294901760, %v5072_v31  ;;  %v906_v22 = vsub.f32 %v5069_v20, %v5453_v35  ;;  %v5561_v13 = vld [vmem:[#allocation24_spill] sm:$0xff] }
  0x93   : > { %v2088_v41 = vsub.f32 %v5072_v31, %v5452_v32  ;;  %v907_v0 = vand.u32 4294901760, %v906_v22  ;;  %v5562_v22 = vld [vmem:[#allocation25_spill] sm:$0xff] }
  0x95   : > { %v2089_v53 = vand.u32 4294901760, %v2088_v41  ;;  %3543 = vmatmul.mubr.f32.gmra.mrb[14].mxu0 %v907_v0  ;;  %v5563_v41 = vld [vmem:[#allocation26_spill] sm:$0xff]  ;;  %v5564_v0 = vld [vmem:[#allocation5_spill] sm:$0xff] }
  0x96   : > { %3553 = vmatprep.mubr.f32.mxu0 %v4646_v6 }
  0x97   : > { %3735 = vmatmul.mubr.f32.gmra.mrb[14].mxu1 %v2089_v53  ;;  %v5565_v53 = vld [vmem:[#allocation3_spill] sm:$0xff] }
  0x98   : > { %3745 = vmatprep.mubr.f32.mxu1 %v4648_v4 }
  0x99   : > { %3554 = vmatmul.mubr.f32.vlgmr.msra.gmra.mrb[0].mxu0 %v4650_v39 }
  0x9a   : > { %3916 = vmatpush3.bf16.msra.mxu0 %v4366_v8  ;;  %3556 = vmatprep.mubr.f32.mxu0 %v4684_v54  ;;  %v5558_v8 = vld [vmem:[#allocation2_spill] sm:$0xff] }
  0x9b   : > { %3746 = vmatmul.mubr.f32.vlgmr.msra.gmra.mrb[0].mxu1 %v5555_v46  ;;  %3918 = vmatprep.subr.bf16.mxu0 %v5556_v51 }
  0x9c   : > { %3964 = vmatpush3.bf16.msra.mxu1 %v4370_v10  ;;  %3748 = vmatprep.mubr.f32.mxu1 %v4686_v5  ;;  %v5559_v10 = vld [vmem:[#allocation4_spill] sm:$0xff] }
  0x9d   : > { %3557 = vmatmul.mubr.f32.gmra.mrb[2].mxu0 %v4688_v37  ;;  %3966 = vmatprep.subr.bf16.mxu1 %v5557_v2 }
  0x9e   : > { %3559 = vmatprep.mubr.f32.mxu0 %v4755_v43  ;;  %3920 = vmatpush3.bf16.msra.mxu0 %v5556_v51  ;;  %v5566_v51 = vand.u32 4294901760, %v5565_v53  ;;  %v5579_v53 = vld [vmem:[#allocation20_spill] sm:$0xff] }
  0x9f   : > { %3749 = vmatmul.mubr.f32.gmra.mrb[2].mxu1 %v4690_v27  ;;  %3922 = vmatprep.subr.bf16.mxu0 %v5558_v8 }
  0xa0   : > { %3751 = vmatprep.mubr.f32.mxu1 %v4757_v48  ;;  %3968 = vmatpush3.bf16.msra.mxu1 %v5557_v2  ;;  %v5567_v2 = vld [vmem:[#allocation7_spill] sm:$0xff] }
  0xa1   : > { %3560 = vmatmul.mubr.f32.gmra.mrb[4].mxu0 %v4759_v55  ;;  %3970 = vmatprep.subr.bf16.mxu1 %v5559_v10  ;;  %v5568_v32 = vand.u32 4294901760, %v5567_v2  ;;  %v5581_v2 = vld [vmem:[#allocation45_spill] sm:$0xff] }
  0xa2   : > { %3562 = vmatprep.mubr.f32.mxu0 %v4812_v52 }
  0xa3   : > { %3752 = vmatmul.mubr.f32.gmra.mrb[4].mxu1 %v4785_v18  ;;  %v3929_v35 = vpack.c.bf16 %v5568_v32, %v5566_v51  ;;  %v5578_v32 = vld [vmem:[#allocation41_spill] sm:$0xff]  ;;  %v5580_v51 = vld [vmem:[#allocation44_spill] sm:$0xff] }
  0xa4   : > { %3754 = vmatprep.mubr.f32.mxu1 %v4816_v7 }
  0xa5   : > { %3563 = vmatmul.mubr.f32.gmra.mrb[6].mxu0 %v4824_v21 }
  0xa6   : > { %3565 = vmatprep.mubr.f32.mxu0 %v4868_v42 }
  0xa7   : > { %3755 = vmatmul.mubr.f32.gmra.mrb[6].mxu1 %v4840_v50  ;;  %v5592_v50 = vld [vmem:[#allocation13_spill] sm:$0xff] }
  0xa8   : > { %3757 = vmatprep.mubr.f32.mxu1 %v4876_v9  ;;  %v5590_v9 = vld [vmem:[#allocation12_spill] sm:$0xff]  ;;  %v5593_v21 = vand.u32 4294901760, %v5592_v50 }
  0xa9   : > { %3566 = vmatmul.mubr.f32.gmra.mrb[8].mxu0 %v4882_v3  ;;  %v5589_v3 = vand.u32 4294901760, %v5562_v22  ;;  %v5591_v42 = vand.u32 4294901760, %v5590_v9  ;;  %v5598_v9 = vand.u32 4294901760, %v4714_v17 }
  0xaa   : > { %3568 = vmatprep.mubr.f32.mxu0 %v4924_v34 }
  0xab   : > { %3758 = vmatmul.mubr.f32.gmra.mrb[8].mxu1 %v4906_v40  ;;  %v3981_v7 = vpack.c.bf16 %v5593_v21, %v5591_v42  ;;  %v5599_v42 = vand.u32 4294901760, %v4774_v16  ;;  %v5600_v21 = vand.u32 4294901760, %v4777_v57 }
  0xac   : > { %3760 = vmatprep.mubr.f32.mxu1 %v4935_v28  ;;  %v5587_v28 = vld [vmem:[#allocation11_spill] sm:$0xff] }
  0xad   : > { %3569 = vmatmul.mubr.f32.gmra.mrb[10].mxu0 %v4937_v45  ;;  %v5588_v34 = vand.u32 4294901760, %v5587_v28  ;;  %v5620_v28 = vand.u32 4294901760, %v5049_v30 }
  0xae   : > { %3571 = vmatprep.mubr.f32.mxu0 %v4981_v56  ;;  %v5584_v56 = vand.u32 4294901760, %v5561_v13 }
  0xaf   : > { %3761 = vmatmul.mubr.f32.gmra.mrb[10].mxu1 %v4964_v24  ;;  %v5585_v24 = vld [vmem:[#allocation10_spill] sm:$0xff] }
  0xb0   : > { %3763 = vmatprep.mubr.f32.mxu1 %v4983_v36  ;;  %v5583_v36 = vand.u32 4294901760, %v5560_v12  ;;  %v5586_v45 = vand.u32 4294901760, %v5585_v24  ;;  %v5596_v24 = vand.u32 4294901760, %v4708_v1 }
  0xb1   : > { %3572 = vmatmul.mubr.f32.gmra.mrb[12].mxu0 %v5006_v15  ;;  %v5582_v15 = vld [vmem:[#allocation48_spill] sm:$0xff] }
  0xb2   : > { %3574 = vmatprep.mubr.f32.mxu0 %v5027_v38  ;;  %v3933_v40 = vpack.c.bf16 %v5588_v34, %v5586_v45  ;;  %v5597_v34 = vand.u32 4294901760, %v4711_v61  ;;  %v5621_v45 = vand.u32 4294901760, %v5069_v20 }
  0xb3   : > { %3764 = vmatmul.mubr.f32.gmra.mrb[12].mxu1 %v5022_v59 }
  0xb4   : > { %3766 = vmatprep.mubr.f32.mxu1 %v5034_v19  ;;  %v5572_v19 = vld [vmem:[#allocation9_spill] sm:$0xff] }
  0xb5   : > { %3575 = vmatmul.mubr.f32.gmra.mrb[14].mxu0 %v5063_v33  ;;  %v5573_v38 = vand.u32 4294901760, %v5572_v19  ;;  %v5576_v19 = vld [vmem:[#allocation17_spill] sm:$0xff] }
  0xb6   : > { %3585 = vmatprep.mubr.f32.mxu0 %v5560_v12  ;;  %v5594_v12 = vand.u32 4294901760, %v5563_v41 }
  0xb7   : > { %3767 = vmatmul.mubr.f32.gmra.mrb[14].mxu1 %v5066_v25  ;;  %v5570_v25 = vld [vmem:[#allocation8_spill] sm:$0xff] }
  0xb8   : > { %3777 = vmatprep.mubr.f32.mxu1 %v5561_v13  ;;  %v5571_v33 = vand.u32 4294901760, %v5570_v25  ;;  %v5574_v25 = vld [vmem:[#allocation33_spill] sm:$0xff]  ;;  %v5633_v13 = vld [vmem:[#allocation40_spill] sm:$0xff] }
  0xb9   : > { %3586 = vmatmul.mubr.f32.vlgmr.msra.gmra.mrb[0].mxu0 %v5562_v22  ;;  %v5634_v22 = vld [vmem:[#allocation42_spill] sm:$0xff] }
  0xba   : > { %3924 = vmatpush3.bf16.msra.mxu0 %v5558_v8  ;;  %3588 = vmatprep.mubr.f32.mxu0 %v4705_v14  ;;  %v3977_v59 = vpack.c.bf16 %v5573_v38, %v5571_v33  ;;  %v5575_v38 = vld [vmem:[#allocation35_spill] sm:$0xff] }
  0xbb   : > { %3778 = vmatmul.mubr.f32.vlgmr.msra.gmra.mrb[0].mxu1 %v5563_v41  ;;  %3926 = vmatprep.subr.bf16.mxu0 %v5564_v0  ;;  %v5577_v33 = vld [vmem:[#allocation39_spill] sm:$0xff] }
  0xbc   : > { %3972 = vmatpush3.bf16.msra.mxu1 %v5559_v10  ;;  %3780 = vmatprep.mubr.f32.mxu1 %v4708_v1  ;;  %v5604_v1 = vand.u32 4294901760, %v4829_v47  ;;  %v5613_v50 = vand.u32 4294901760, %v5577_v33  ;;  %v5635_v41 = vld [vmem:[#allocation43_spill] sm:$0xff] }
  0xbd   : > { %3589 = vmatmul.mubr.f32.gmra.mrb[2].mxu0 %v4711_v61  ;;  %3974 = vmatprep.subr.bf16.mxu1 %v5569_v62  ;;  %v5602_v61 = vand.u32 4294901760, %v4792_v58 }
  0xbe   : > { %3591 = vmatprep.mubr.f32.mxu0 %v4774_v16  ;;  %3928 = vmatpush3.bf16.msra.mxu0 %v5564_v0  ;;  %v5605_v16 = vand.u32 4294901760, %v4838_v60 }
  0xbf   : > { %3781 = vmatmul.mubr.f32.gmra.mrb[2].mxu1 %v4714_v17  ;;  %3930 = vmatprep.subr.bf16.mxu0 %v3929_v35  ;;  %v5603_v17 = vand.u32 4294901760, %v4822_v63 }
  0xc0   : > { %3783 = vmatprep.mubr.f32.mxu1 %v4777_v57  ;;  %3976 = vmatpush3.bf16.msra.mxu1 %v5569_v62  ;;  %v5606_v57 = vand.u32 4294901760, %v4852_v26 }
  0xc1   : > { %3592 = vmatmul.mubr.f32.gmra.mrb[4].mxu0 %v4780_v49  ;;  %3978 = vmatprep.subr.bf16.mxu1 %v3977_v59 }
  0xc2   : > { %3594 = vmatprep.mubr.f32.mxu0 %v4822_v63  ;;  %v5610_v63 = vand.u32 4294901760, %v5575_v38 }
  0xc3   : > { %3784 = vmatmul.mubr.f32.gmra.mrb[4].mxu1 %v4792_v58  ;;  %v5609_v58 = vand.u32 4294901760, %v5574_v25 }
  0xc4   : > { %3786 = vmatprep.mubr.f32.mxu1 %v4829_v47  ;;  %v5611_v47 = vand.u32 4294901760, %v4933_v11 }
  0xc5   : > { %3595 = vmatmul.mubr.f32.gmra.mrb[6].mxu0 %v4838_v60  ;;  %v5612_v60 = vand.u32 4294901760, %v5576_v19 }
  0xc6   : > { %3597 = vmatprep.mubr.f32.mxu0 %v4880_v44 }
  0xc7   : > { %3787 = vmatmul.mubr.f32.gmra.mrb[6].mxu1 %v4852_v26  ;;  %v5615_v26 = vand.u32 4294901760, %v5579_v53 }
  0xc8   : > { %3789 = vmatprep.mubr.f32.mxu1 %v4887_v23 }
  0xc9   : > { %3598 = vmatmul.mubr.f32.gmra.mrb[8].mxu0 %v5574_v25  ;;  %v5637_v25 = vld [vmem:[#allocation46_spill] sm:$0xff] }
  0xca   : > { %3600 = vmatprep.mubr.f32.mxu0 %v4933_v11  ;;  %v5619_v11 = vand.u32 4294901760, %v5039_v29 }
  0xcb   : > { %3790 = vmatmul.mubr.f32.gmra.mrb[8].mxu1 %v5575_v38  ;;  %v5638_v38 = vld [vmem:[#allocation47_spill] sm:$0xff] }
  0xcc   : > { %3792 = vmatprep.mubr.f32.mxu1 %v5576_v19  ;;  %v5639_v19 = vld [vmem:[#allocation49_spill] sm:$0xff] }
  0xcd   : > { %3601 = vmatmul.mubr.f32.gmra.mrb[10].mxu0 %v5577_v33  ;;  %v5640_v33 = vld [vmem:[#allocation18_spill] sm:$0xff] }
  0xce   : > { %3603 = vmatprep.mubr.f32.mxu0 %v5579_v53 }
  0xcf   : > { %3793 = vmatmul.mubr.f32.gmra.mrb[10].mxu1 %v5578_v32 }
  0xd0   : > { %3795 = vmatprep.mubr.f32.mxu1 %v5580_v51 }
  0xd1   : > { %3604 = vmatmul.mubr.f32.gmra.mrb[12].mxu0 %v5581_v2 }
  0xd2   : > { %3606 = vmatprep.mubr.f32.mxu0 %v5039_v29  ;;  %v5625_v29 = vld [vmem:[#allocation29_spill] sm:$0xff] }
  0xd3   : > { %3796 = vmatmul.mubr.f32.gmra.mrb[12].mxu1 %v5582_v15 }
  0xd4   : > { %3798 = vmatprep.mubr.f32.mxu1 %v5049_v30  ;;  %v5626_v30 = vld [vmem:[#allocation30_spill] sm:$0xff] }
  0xd5   : > { %3607 = vmatmul.mubr.f32.gmra.mrb[14].mxu0 %v5069_v20  ;;  %v5627_v20 = vld [vmem:[#allocation31_spill] sm:$0xff] }
  0xd6   : > { %3617 = vmatprep.mubr.f32.mxu0 %v5583_v36  ;;  %v5622_v36 = vand.u32 4294901760, %v5072_v31 }
  0xd7   : > { %3799 = vmatmul.mubr.f32.gmra.mrb[14].mxu1 %v5072_v31  ;;  %v5628_v31 = vld [vmem:[#allocation32_spill] sm:$0xff] }
  0xd8   : > { %3809 = vmatprep.mubr.f32.mxu1 %v5584_v56  ;;  %v5595_v56 = vand.u32 4294901760, %v4705_v14  ;;  %v5601_v14 = vand.u32 4294901760, %v4780_v49  ;;  %v5607_v49 = vand.u32 4294901760, %v4880_v44  ;;  %v5616_v44 = vand.u32 4294901760, %v5580_v51 }
  0xd9   : > { %3618 = vmatmul.mubr.f32.vlgmr.msra.gmra.mrb[0].mxu0 %v5589_v3  ;;  %v5617_v3 = vand.u32 4294901760, %v5581_v2 }
  0xda   : > { %3932 = vmatpush3.bf16.msra.mxu0 %v3929_v35  ;;  %3620 = vmatprep.mubr.f32.mxu0 %v5595_v56  ;;  %v5629_v35 = vld [vmem:[#allocation34_spill] sm:$0xff] }
  0xdb   : > { %3810 = vmatmul.mubr.f32.vlgmr.msra.gmra.mrb[0].mxu1 %v5594_v12  ;;  %3934 = vmatprep.subr.bf16.mxu0 %v3933_v40 }
  0xdc   : > { %3980 = vmatpush3.bf16.msra.mxu1 %v3977_v59  ;;  %3812 = vmatprep.mubr.f32.mxu1 %v5596_v24  ;;  %v5624_v59 = vld [vmem:[#allocation28_spill] sm:$0xff] }
  0xdd   : > { %3621 = vmatmul.mubr.f32.gmra.mrb[2].mxu0 %v5597_v34  ;;  %3982 = vmatprep.subr.bf16.mxu1 %v3981_v7 }
  0xde   : > { %3623 = vmatprep.mubr.f32.mxu0 %v5599_v42  ;;  %3936 = vmatpush3.bf16.msra.mxu0 %v3933_v40  ;;  %v5614_v40 = vand.u32 4294901760, %v5578_v32  ;;  %v5641_v32 = vld [vmem:[#allocation15_spill] sm:$0xff] }
  0xdf   : > { %3813 = vmatmul.mubr.f32.gmra.mrb[2].mxu1 %v5598_v9  ;;  %3938 = vmatprep.subr.bf16.mxu0 %v5558_v8 }
  0xe0   : > { %3815 = vmatprep.mubr.f32.mxu1 %v5600_v21  ;;  %3984 = vmatpush3.bf16.msra.mxu1 %v3981_v7  ;;  %v5608_v7 = vand.u32 4294901760, %v4887_v23  ;;  %v5618_v23 = vand.u32 4294901760, %v5582_v15  ;;  %v5623_v15 = vld [vmem:[#allocation27_spill] sm:$0xff] }
  0xe1   : > { %3624 = vmatmul.mubr.f32.gmra.mrb[4].mxu0 %v5601_v14  ;;  %3986 = vmatprep.subr.bf16.mxu1 %v5559_v10 }
  0xe2   : > { %3626 = vmatprep.mubr.f32.mxu0 %v5603_v17 }
  0xe3   : > { %3816 = vmatmul.mubr.f32.gmra.mrb[4].mxu1 %v5602_v61 }
  0xe4   : > { %3818 = vmatprep.mubr.f32.mxu1 %v5604_v1 }
  0xe5   : > { %3627 = vmatmul.mubr.f32.gmra.mrb[6].mxu0 %v5605_v16 }
  0xe6   : > { %3629 = vmatprep.mubr.f32.mxu0 %v5607_v49 }
  0xe7   : > { %3819 = vmatmul.mubr.f32.gmra.mrb[6].mxu1 %v5606_v57 }
  0xe8   : > { %3821 = vmatprep.mubr.f32.mxu1 %v5608_v7 }
  0xe9   : > { %3630 = vmatmul.mubr.f32.gmra.mrb[8].mxu0 %v5609_v58 }
  0xea   : > { %3632 = vmatprep.mubr.f32.mxu0 %v5611_v47 }
  0xeb   : > { %3822 = vmatmul.mubr.f32.gmra.mrb[8].mxu1 %v5610_v63 }
  0xec   : > { %3824 = vmatprep.mubr.f32.mxu1 %v5612_v60 }
  0xed   : > { %3633 = vmatmul.mubr.f32.gmra.mrb[10].mxu0 %v5613_v50 }
  0xee   : > { %3635 = vmatprep.mubr.f32.mxu0 %v5615_v26 }
  0xef   : > { %3825 = vmatmul.mubr.f32.gmra.mrb[10].mxu1 %v5614_v40 }
  0xf0   : > { %3827 = vmatprep.mubr.f32.mxu1 %v5616_v44 }
  0xf1   : > { %3636 = vmatmul.mubr.f32.gmra.mrb[12].mxu0 %v5617_v3 }
  0xf2   : > { %3638 = vmatprep.mubr.f32.mxu0 %v5619_v11 }
  0xf3   : > { %3828 = vmatmul.mubr.f32.gmra.mrb[12].mxu1 %v5618_v23 }
  0xf4   : > { %3830 = vmatprep.mubr.f32.mxu1 %v5620_v28 }
  0xf5   : > { %3639 = vmatmul.mubr.f32.gmra.mrb[14].mxu0 %v5621_v45 }
  0xf6   : > { %3649 = vmatprep.mubr.f32.mxu0 %v4646_v6 }
  0xf7   : > { %3831 = vmatmul.mubr.f32.gmra.mrb[14].mxu1 %v5622_v36 }
  0xf8   : > { %3841 = vmatprep.mubr.f32.mxu1 %v4648_v4 }
  0xf9   : > { %3650 = vmatmul.mubr.f32.vlgmr.msra.gmra.mrb[0].mxu0 %v4650_v39 }
  0xfa   : > { %3940 = vmatpush3.bf16.msra.mxu0 %v5558_v8  ;;  %3652 = vmatprep.mubr.f32.mxu0 %v4684_v54  ;;  %v5631_v8 = vld [vmem:[#allocation37_spill] sm:$0xff] }
  0xfb   : > { %3842 = vmatmul.mubr.f32.vlgmr.msra.gmra.mrb[0].mxu1 %v5555_v46  ;;  %3942 = vmatprep.subr.bf16.mxu0 %v5564_v0 }
  0xfc   : > { %3988 = vmatpush3.bf16.msra.mxu1 %v5559_v10  ;;  %3844 = vmatprep.mubr.f32.mxu1 %v4686_v5  ;;  %v5632_v10 = vld [vmem:[#allocation38_spill] sm:$0xff] }
  0xfd   : > { %3653 = vmatmul.mubr.f32.gmra.mrb[2].mxu0 %v4688_v37  ;;  %3990 = vmatprep.subr.bf16.mxu1 %v5569_v62 }
  0xfe   : > { %3655 = vmatprep.mubr.f32.mxu0 %v4755_v43  ;;  %3944 = vmatpush3.bf16.msra.mxu0 %v5564_v0  ;;  %v5636_v0 = vld [vmem:[#allocation21_spill] sm:$0xff] }
  0xff   : > { %3845 = vmatmul.mubr.f32.gmra.mrb[2].mxu1 %v4690_v27 }
 0x100   : > { %3847 = vmatprep.mubr.f32.mxu1 %v4757_v48  ;;  %3992 = vmatpush3.bf16.msra.mxu1 %v5569_v62  ;;  %v5630_v62 = vld [vmem:[#allocation36_spill] sm:$0xff] }
 0x101   : > { %3656 = vmatmul.mubr.f32.gmra.mrb[4].mxu0 %v4759_v55 }
 0x102   : > { %3658 = vmatprep.mubr.f32.mxu0 %v4812_v52 }
 0x103   : > { %3848 = vmatmul.mubr.f32.gmra.mrb[4].mxu1 %v4785_v18 }
 0x104   : > { %3850 = vmatprep.mubr.f32.mxu1 %v5623_v15 }
 0x105   : > { %3659 = vmatmul.mubr.f32.gmra.mrb[6].mxu0 %v5624_v59 }
 0x106   : > { %3661 = vmatprep.mubr.f32.mxu0 %v5626_v30 }
 0x107   : > { %3851 = vmatmul.mubr.f32.gmra.mrb[6].mxu1 %v5625_v29 }
 0x108   : > { %3853 = vmatprep.mubr.f32.mxu1 %v5627_v20 }
 0x109   : > { %3662 = vmatmul.mubr.f32.gmra.mrb[8].mxu0 %v5628_v31 }
 0x10a   : > { %3664 = vmatprep.mubr.f32.mxu0 %v5630_v62 }
 0x10b   : > { %3854 = vmatmul.mubr.f32.gmra.mrb[8].mxu1 %v5629_v35 }
 0x10c   : > { %3856 = vmatprep.mubr.f32.mxu1 %v5631_v8 }
 0x10d   : > { %3665 = vmatmul.mubr.f32.gmra.mrb[10].mxu0 %v5632_v10 }
 0x10e   : > { %3667 = vmatprep.mubr.f32.mxu0 %v5634_v22 }
 0x10f   : > { %3857 = vmatmul.mubr.f32.gmra.mrb[10].mxu1 %v5633_v13 }
 0x110   : > { %3859 = vmatprep.mubr.f32.mxu1 %v5635_v41 }
 0x111   : > { %3668 = vmatmul.mubr.f32.gmra.mrb[12].mxu0 %v5636_v0 }
 0x112   : > { %3670 = vmatprep.mubr.f32.mxu0 %v5638_v38 }
 0x113   : > { %3860 = vmatmul.mubr.f32.gmra.mrb[12].mxu1 %v5637_v25 }
 0x114   : > { %3862 = vmatprep.mubr.f32.mxu1 %v5639_v19 }
 0x115   : > { %3671 = vmatmul.mubr.f32.gmra.mrb[14].mxu0 %v5640_v33 }
 0x116   : > { %3681 = vmatprep.mubr.f32.mxu0 %v4646_v6 }
 0x117   : > { %3863 = vmatmul.mubr.f32.gmra.mrb[14].mxu1 %v5641_v32 }
 0x118   : > { %3873 = vmatprep.mubr.f32.mxu1 %v4648_v4 }
 0x119   : > { %3682 = vmatmul.mubr.f32.vlgmr.msra.gmra.mrb[0].mxu0 %v4650_v39 }
 0x11a   : > { %3684 = vmatprep.mubr.f32.mxu0 %v4684_v54 }
 0x11b   : > { %3874 = vmatmul.mubr.f32.vlgmr.msra.gmra.mrb[0].mxu1 %v5555_v46 }
 0x11c   : > { %3876 = vmatprep.mubr.f32.mxu1 %v4686_v5 }
 0x11d   : > { %3685 = vmatmul.mubr.f32.gmra.mrb[2].mxu0 %v4688_v37 }
 0x11e   : > { %3687 = vmatprep.mubr.f32.mxu0 %v4755_v43 }
 0x11f   : > { %3877 = vmatmul.mubr.f32.gmra.mrb[2].mxu1 %v4690_v27 }
 0x120   : > { %3879 = vmatprep.mubr.f32.mxu1 %v4757_v48 }
 0x121   : > { %3688 = vmatmul.mubr.f32.gmra.mrb[4].mxu0 %v4759_v55 }
 0x122   : > { %3690 = vmatprep.mubr.f32.mxu0 %v4812_v52 }
 0x123   : > { %3880 = vmatmul.mubr.f32.gmra.mrb[4].mxu1 %v4785_v18 }
 0x124   : > { %3882 = vmatprep.mubr.f32.mxu1 %v5623_v15 }
 0x125   : > { %3691 = vmatmul.mubr.f32.gmra.mrb[6].mxu0 %v5624_v59 }
 0x126   : > { %3693 = vmatprep.mubr.f32.mxu0 %v5626_v30 }
 0x127   : > { %3883 = vmatmul.mubr.f32.gmra.mrb[6].mxu1 %v5625_v29 }
 0x128   : > { %3885 = vmatprep.mubr.f32.mxu1 %v5627_v20 }
 0x129   : > { %3694 = vmatmul.mubr.f32.gmra.mrb[8].mxu0 %v5628_v31 }
 0x12a   : > { %3696 = vmatprep.mubr.f32.mxu0 %v5630_v62 }
 0x12b   : > { %3886 = vmatmul.mubr.f32.gmra.mrb[8].mxu1 %v5629_v35 }
 0x12c   : > { %3888 = vmatprep.mubr.f32.mxu1 %v5631_v8 }
 0x12d   : > { %3697 = vmatmul.mubr.f32.gmra.mrb[10].mxu0 %v5632_v10 }
 0x12e   : > { %3699 = vmatprep.mubr.f32.mxu0 %v5634_v22 }
 0x12f   : > { %3889 = vmatmul.mubr.f32.gmra.mrb[10].mxu1 %v5633_v13 }
 0x130   : > { %3891 = vmatprep.mubr.f32.mxu1 %v5635_v41 }
 0x131   : > { %3700 = vmatmul.mubr.f32.gmra.mrb[12].mxu0 %v5636_v0 }
 0x132   : > { %3702 = vmatprep.mubr.f32.mxu0 %v5638_v38 }
 0x133   : > { %3892 = vmatmul.mubr.f32.gmra.mrb[12].mxu1 %v5637_v25 }
 0x134   : > { %3894 = vmatprep.mubr.f32.mxu1 %v5639_v19 }
 0x135   : > { %3703 = vmatmul.mubr.f32.gmra.mrb[14].mxu0 %v5640_v33 }
 0x137   : > { %3895 = vmatmul.mubr.f32.gmra.mrb[14].mxu1 %v5641_v32 }
 0x1ec   : > { %v3683_v6 = vpop.f32.mrb[0].mxu0 }
 0x1ed   : > { %2998 = vst [vmem:[%s5317_s10 + $0x10] sm:$0xff] %v3683_v6  ;;  %v3072_v4 = vmul.f32 %v3683_v6, %v3683_v6  ;;  %v1720_v54 = vpop.f32.mrb[1].mxu0 }
 0x1ee   : > { %v3875_v39 = vpop.f32.mrb[0].mxu1  ;;  %2996 = vst [vmem:[%s5317_s10] sm:$0xff] %v1720_v54  ;;  %v3028_v37 = vadd.f32 %v3683_v6, %v1720_v54  ;;  %v3070_v27 = vmul.f32 %v1720_v54, %v1720_v54 }
 0x1ef   : > { %2999 = vst [vmem:[%s5317_s10 + $0x18] sm:$0xff] %v3875_v39  ;;  %v3073_v5 = vmul.f32 %v3875_v39, %v3875_v39  ;;  %v2902_v43 = vpop.f32.mrb[1].mxu1 }
 0x1f0   : > { %2997 = vst [vmem:[%s5317_s10 + $0x8] sm:$0xff] %v2902_v43  ;;  %v3049_v48 = vadd.f32 %v3875_v39, %v2902_v43  ;;  %v3071_v55 = vmul.f32 %v2902_v43, %v2902_v43  ;;  %v3102_v18 = vadd.f32 %v3072_v4, %v3070_v27  ;;  %v3686_v52 = vpop.f32.mrb[2].mxu0 }
 0x1f1   : > { %3002 = vst [vmem:[%s5317_s10 + $0x30] sm:$0xff] %v3686_v52  ;;  %v1732_v51 = vpop.f32.mrb[3].mxu0  ;;  %v3076_v9 = vmul.f32 %v3686_v52, %v3686_v52 }
 0x1f2   : > { %v3123_v46 = vadd.f32 %v3073_v5, %v3071_v55  ;;  %v3878_v53 = vpop.f32.mrb[2].mxu1  ;;  %3000 = vst [vmem:[%s5317_s10 + $0x20] sm:$0xff] %v1732_v51  ;;  %v3029_v2 = vadd.f32 %v3028_v37, %v1732_v51  ;;  %v3074_v12 = vmul.f32 %v1732_v51, %v1732_v51 }
 0x1f3   : > { %3003 = vst [vmem:[%s5317_s10 + $0x38] sm:$0xff] %v3878_v53  ;;  %v2914_v56 = vpop.f32.mrb[3].mxu1  ;;  %v3077_v61 = vmul.f32 %v3878_v53, %v3878_v53 }
 0x1f4   : > { %3001 = vst [vmem:[%s5317_s10 + $0x28] sm:$0xff] %v2914_v56  ;;  %v3050_v24 = vadd.f32 %v3049_v48, %v2914_v56  ;;  %v3075_v34 = vmul.f32 %v2914_v56, %v2914_v56  ;;  %v3103_v42 = vadd.f32 %v3102_v18, %v3074_v12  ;;  %v3689_v21 = vpop.f32.mrb[4].mxu0  ;;  %v3030_v14 = vadd.f32 %v3686_v52, %v3029_v2 }
 0x1f5   : > { %3006 = vst [vmem:[%s5317_s10 + $0x50] sm:$0xff] %v3689_v21  ;;  %v1744_v16 = vpop.f32.mrb[5].mxu0  ;;  %v3080_v40 = vmul.f32 %v3689_v21, %v3689_v21 }
 0x1f6   : > { %v3124_v17 = vadd.f32 %v3123_v46, %v3075_v34  ;;  %v3881_v1 = vpop.f32.mrb[4].mxu1  ;;  %v3051_v57 = vadd.f32 %v3878_v53, %v3050_v24  ;;  %3004 = vst [vmem:[%s5317_s10 + $0x40] sm:$0xff] %v1744_v16  ;;  %v3031_v49 = vadd.f32 %v3030_v14, %v1744_v16  ;;  %v3078_v7 = vmul.f32 %v1744_v16, %v1744_v16 }
 0x1f7   : > { %3007 = vst [vmem:[%s5317_s10 + $0x58] sm:$0xff] %v3881_v1  ;;  %v3104_v58 = vadd.f32 %v3103_v42, %v3076_v9  ;;  %v2926_v63 = vpop.f32.mrb[5].mxu1  ;;  %v3081_v23 = vmul.f32 %v3881_v1, %v3881_v1 }
 0x1f8   : > { %3005 = vst [vmem:[%s5317_s10 + $0x48] sm:$0xff] %v2926_v63  ;;  %v3052_v47 = vadd.f32 %v3051_v57, %v2926_v63  ;;  %v3079_v60 = vmul.f32 %v2926_v63, %v2926_v63  ;;  %v3125_v50 = vadd.f32 %v3124_v17, %v3077_v61  ;;  %v3692_v44 = vpop.f32.mrb[6].mxu0  ;;  %v3032_v3 = vadd.f32 %v3689_v21, %v3031_v49 }
 0x1f9   : > { %v3105_v26 = vadd.f32 %v3104_v58, %v3078_v7  ;;  %3010 = vst [vmem:[%s5317_s10 + $0x70] sm:$0xff] %v3692_v44  ;;  %v1756_v45 = vpop.f32.mrb[7].mxu0  ;;  %v3084_v62 = vmul.f32 %v3692_v44, %v3692_v44 }
 0x1fa   : > { %v3126_v11 = vadd.f32 %v3125_v50, %v3079_v60  ;;  %v3884_v28 = vpop.f32.mrb[6].mxu1  ;;  %v3053_v36 = vadd.f32 %v3881_v1, %v3052_v47  ;;  %3008 = vst [vmem:[%s5317_s10 + $0x60] sm:$0xff] %v1756_v45  ;;  %v3033_v15 = vadd.f32 %v3032_v3, %v1756_v45  ;;  %v3082_v59 = vmul.f32 %v1756_v45, %v1756_v45 }
 0x1fb   : > { %3011 = vst [vmem:[%s5317_s10 + $0x78] sm:$0xff] %v3884_v28  ;;  %v3106_v29 = vadd.f32 %v3105_v26, %v3080_v40  ;;  %v2938_v30 = vpop.f32.mrb[7].mxu1  ;;  %v3085_v22 = vmul.f32 %v3884_v28, %v3884_v28 }
 0x1fc   : > { %3009 = vst [vmem:[%s5317_s10 + $0x68] sm:$0xff] %v2938_v30  ;;  %v3054_v20 = vadd.f32 %v3053_v36, %v2938_v30  ;;  %v3083_v31 = vmul.f32 %v2938_v30, %v2938_v30  ;;  %v3127_v35 = vadd.f32 %v3126_v11, %v3081_v23  ;;  %v3695_v10 = vpop.f32.mrb[8].mxu0  ;;  %v3034_v13 = vadd.f32 %v3692_v44, %v3033_v15 }
 0x1fd   : > { %v3107_v8 = vadd.f32 %v3106_v29, %v3082_v59  ;;  %3014 = vst [vmem:[%s5317_s10 + $0x90] sm:$0xff] %v3695_v10  ;;  %v1768_v25 = vpop.f32.mrb[9].mxu0  ;;  %v3088_v5 = vmul.f32 %v3695_v10, %v3695_v10 }
 0x1fe   : > { %v3128_v41 = vadd.f32 %v3127_v35, %v3083_v31  ;;  %v3887_v0 = vpop.f32.mrb[8].mxu1  ;;  %v3055_v38 = vadd.f32 %v3884_v28, %v3054_v20  ;;  %3012 = vst [vmem:[%s5317_s10 + $0x80] sm:$0xff] %v1768_v25  ;;  %v3035_v19 = vadd.f32 %v3034_v13, %v1768_v25  ;;  %v3086_v33 = vmul.f32 %v1768_v25, %v1768_v25 }
 0x1ff   : > { %3015 = vst [vmem:[%s5317_s10 + $0x98] sm:$0xff] %v3887_v0  ;;  %v3108_v32 = vadd.f32 %v3107_v8, %v3084_v62  ;;  %v2950_v6 = vpop.f32.mrb[9].mxu1  ;;  %v3089_v48 = vmul.f32 %v3887_v0, %v3887_v0 }
 0x200   : > { %3013 = vst [vmem:[%s5317_s10 + $0x88] sm:$0xff] %v2950_v6  ;;  %v3056_v4 = vadd.f32 %v3055_v38, %v2950_v6  ;;  %v3087_v39 = vmul.f32 %v2950_v6, %v2950_v6  ;;  %v3129_v54 = vadd.f32 %v3128_v41, %v3085_v22  ;;  %v3698_v27 = vpop.f32.mrb[10].mxu0  ;;  %v3036_v43 = vadd.f32 %v3695_v10, %v3035_v19 }
 0x201   : > { %v3109_v37 = vadd.f32 %v3108_v32, %v3086_v33  ;;  %3018 = vst [vmem:[%s5317_s10 + $0xb0] sm:$0xff] %v3698_v27  ;;  %v1780_v52 = vpop.f32.mrb[11].mxu0  ;;  %v3092_v9 = vmul.f32 %v3698_v27, %v3698_v27 }
 0x202   : > { %v3130_v55 = vadd.f32 %v3129_v54, %v3087_v39  ;;  %v3890_v18 = vpop.f32.mrb[10].mxu1  ;;  %v3057_v46 = vadd.f32 %v3887_v0, %v3056_v4  ;;  %3016 = vst [vmem:[%s5317_s10 + $0xa0] sm:$0xff] %v1780_v52  ;;  %v3037_v53 = vadd.f32 %v3036_v43, %v1780_v52  ;;  %v3090_v51 = vmul.f32 %v1780_v52, %v1780_v52 }
 0x203   : > { %3019 = vst [vmem:[%s5317_s10 + $0xb8] sm:$0xff] %v3890_v18  ;;  %v3110_v2 = vadd.f32 %v3109_v37, %v3088_v5  ;;  %v2962_v12 = vpop.f32.mrb[11].mxu1  ;;  %v3093_v61 = vmul.f32 %v3890_v18, %v3890_v18 }
 0x204   : > { %3017 = vst [vmem:[%s5317_s10 + $0xa8] sm:$0xff] %v2962_v12  ;;  %v3058_v56 = vadd.f32 %v3057_v46, %v2962_v12  ;;  %v3091_v24 = vmul.f32 %v2962_v12, %v2962_v12  ;;  %v3131_v34 = vadd.f32 %v3130_v55, %v3089_v48  ;;  %v3701_v21 = vpop.f32.mrb[12].mxu0  ;;  %v3038_v14 = vadd.f32 %v3698_v27, %v3037_v53 }
 0x205   : > { %v3111_v42 = vadd.f32 %v3110_v2, %v3090_v51  ;;  %3022 = vst [vmem:[%s5317_s10 + $0xd0] sm:$0xff] %v3701_v21  ;;  %v1792_v16 = vpop.f32.mrb[13].mxu0  ;;  %v3096_v40 = vmul.f32 %v3701_v21, %v3701_v21 }
 0x206   : > { %v3132_v17 = vadd.f32 %v3131_v34, %v3091_v24  ;;  %v3893_v1 = vpop.f32.mrb[12].mxu1  ;;  %v3059_v57 = vadd.f32 %v3890_v18, %v3058_v56  ;;  %3020 = vst [vmem:[%s5317_s10 + $0xc0] sm:$0xff] %v1792_v16  ;;  %v3039_v49 = vadd.f32 %v3038_v14, %v1792_v16  ;;  %v3094_v7 = vmul.f32 %v1792_v16, %v1792_v16 }
 0x207   : > { %3023 = vst [vmem:[%s5317_s10 + $0xd8] sm:$0xff] %v3893_v1  ;;  %v3112_v58 = vadd.f32 %v3111_v42, %v3092_v9  ;;  %v2974_v63 = vpop.f32.mrb[13].mxu1  ;;  %v3097_v23 = vmul.f32 %v3893_v1, %v3893_v1 }
 0x208   : > { %3021 = vst [vmem:[%s5317_s10 + $0xc8] sm:$0xff] %v2974_v63  ;;  %v3060_v47 = vadd.f32 %v3059_v57, %v2974_v63  ;;  %v3095_v60 = vmul.f32 %v2974_v63, %v2974_v63  ;;  %v3133_v50 = vadd.f32 %v3132_v17, %v3093_v61  ;;  %v3704_v44 = vpop.f32.mrb[14].mxu0  ;;  %v3040_v3 = vadd.f32 %v3701_v21, %v3039_v49 }
 0x209   : > { %v3113_v26 = vadd.f32 %v3112_v58, %v3094_v7  ;;  %3026 = vst [vmem:[%s5317_s10 + $0xf0] sm:$0xff] %v3704_v44  ;;  %v1804_v45 = vpop.f32.mrb[15].mxu0  ;;  %v3100_v62 = vmul.f32 %v3704_v44, %v3704_v44 }
 0x20a   : > { %v3134_v11 = vadd.f32 %v3133_v50, %v3095_v60  ;;  %v3896_v28 = vpop.f32.mrb[14].mxu1  ;;  %v3061_v36 = vadd.f32 %v3893_v1, %v3060_v47  ;;  %3024 = vst [vmem:[%s5317_s10 + $0xe0] sm:$0xff] %v1804_v45  ;;  %v3041_v15 = vadd.f32 %v3040_v3, %v1804_v45  ;;  %v3098_v59 = vmul.f32 %v1804_v45, %v1804_v45 }
 0x20b   : > { %3027 = vst [vmem:[%s5317_s10 + $0xf8] sm:$0xff] %v3896_v28  ;;  %v3114_v29 = vadd.f32 %v3113_v26, %v3096_v40  ;;  %v2986_v30 = vpop.f32.mrb[15].mxu1  ;;  %v3101_v13 = vmul.f32 %v3896_v28, %v3896_v28 }
 0x20c   : > { %3025 = vst [vmem:[%s5317_s10 + $0xe8] sm:$0xff] %v2986_v30  ;;  %v3062_v20 = vadd.f32 %v3061_v36, %v2986_v30  ;;  %v3099_v31 = vmul.f32 %v2986_v30, %v2986_v30  ;;  %v3135_v35 = vadd.f32 %v3134_v11, %v3097_v23  ;;  %v3042_v8 = vadd.f32 %v3704_v44, %v3041_v15 }
 0x20d   : > { %v3115_v10 = vadd.f32 %v3114_v29, %v3098_v59 }
 0x20e   : > { %v3063_v22 = vadd.f32 %v3896_v28, %v3062_v20  ;;  %v3136_v41 = vadd.f32 %v3135_v35, %v3099_v31  ;;  %v3043_v0 = vrot.slane %v3042_v8, 4 }
 0x20f   : > { %v3116_v25 = vadd.f32 %v3115_v10, %v3100_v62 }
 0x210   : > { %v3064_v38 = vrot.slane %v3063_v22, 4  ;;  %v3137_v19 = vadd.f32 %v3136_v41, %v3101_v13  ;;  %v3044_v33 = vadd.f32 %v3043_v0, %v3042_v8 }
 0x211   : > { %v3117_v32 = vrot.slane %v3116_v25, 4 }
 0x212   : > { %v3065_v6 = vadd.f32 %v3064_v38, %v3063_v22  ;;  %v3138_v4 = vrot.slane %v3137_v19, 4  ;;  %v3045_v39 = vrot.slane %v3044_v33, 2 }
 0x213   : > { %v3118_v54 = vadd.f32 %v3117_v32, %v3116_v25 }
 0x214   : > { %v3066_v5 = vrot.slane %v3065_v6, 2  ;;  %v3139_v37 = vadd.f32 %v3138_v4, %v3137_v19  ;;  %v3046_v27 = vadd.f32 %v3045_v39, %v3044_v33 }
 0x215   : > { %v3119_v43 = vrot.slane %v3118_v54, 2 }
 0x216   : > { %v3067_v48 = vadd.f32 %v3066_v5, %v3065_v6  ;;  %v3140_v55 = vrot.slane %v3139_v37, 2  ;;  %v3047_v18 = vrot.slane %v3046_v27, 1 }
 0x217   : > { %v3120_v52 = vadd.f32 %v3119_v43, %v3118_v54 }
 0x218   : > { %v3068_v46 = vrot.slane %v3067_v48, 1  ;;  %v3141_v53 = vadd.f32 %v3140_v55, %v3139_v37  ;;  %v3048_v12 = vadd.f32 %v3047_v18, %v3046_v27 }
 0x219   : > { %v3121_v51 = vrot.slane %v3120_v52, 1 }
 0x21a   : > { %v3142_v2 = vrot.slane %v3141_v53, 1  ;;  %v3069_v24 = vadd.f32 %v3068_v46, %v3067_v48 }
 0x21b   : > { %v3122_v56 = vadd.f32 %v3121_v51, %v3120_v52 }
 0x21c   : > { %v3143_v34 = vadd.f32 %v3142_v2, %v3141_v53 }
 0x21d   : > { %v3145_v9 = vsel %vm3144_vm2, %v3048_v12, %v3122_v56 }
 0x21e   : > { %v3146_v42 = vsel %vm3144_vm2, %v3069_v24, %v3143_v34 }
 0x21f   : > { %v3149_v21 = vcombine.low %v3145_v9, %v3146_v42 }
 0x221   : > { %3267 = vst.sshfl [vmem:[%s272_s14] sm:$0x33 pattern:$0x76325410] %v3149_v21 }
 0x222 PF: > { %s17_s21 = sadd.s32 1, %s4172_s21  }
 0x223   : > { %p14_p5 = scmp.ge.s32.totalorder %s17_s21, 4  }
 0x225   :  { %16 = sbr.rel (!%p14_p5) target bundleno = 1 (0x1), region = 83 }

</bundles_post_ra>
